<compile_context>
chip_gen: v5e
topology: v5e:2x2
jax: 0.10.0
libtpu: 0.0.40
codegen_flags: <defaults>
</compile_context>

<pallas_src>
from functools import partial

import jax
import jax.numpy as jnp
import numpy as np
from jax import lax
from jax.experimental import pallas as pl
from jax.experimental.pallas import tpu as pltpu

# --- small, module-consistent shapes -----------------------------------------
B = 2            # batch
N = 128          # env_cfg['geodex']['sample_num_points']
D_OUT = 256      # encoder_cfg['pointnet_output_dim']
E_OUT = 128      # encoder_cfg['obs_emb_dim']
BN_EPS = 1e-5    # nn.BatchNorm1d default eps
NORM_EPS = 1e-12 # F.normalize default eps
B_TILE = 32      # batch elements per grid step (multiple of 8; amortizes per-step overhead)


# ------------------------------ Pallas kernel ---------------------------------
def pointnet_encoder_kernel(x_ref, w1_ref, b1_ref, w2_ref, b2_ref,
                            w3_ref, b3_ref, wfc_ref, bfc_ref,
                            emb_ref, feat_ref, *, n_points):
    """One B_TILE slab of batch elements per grid step.

    x_ref: [bt*N, 12] pre-packed, pre-flattened point slab (obj_pts, obj_norms,
    goal_pts, goal_norms along the channel axis).  BN is folded into w/b.
    Matmul operands are x_ref.dtype (bf16 or f32); accumulation / elementwise
    math is f32.
    """
    m = x_ref.shape[0]
    bt = m // n_points
    cdt = x_ref.dtype
    f32 = jnp.float32

    # conv1 (folded BN): single K=12 matmul on the packed slab.
    h = jnp.dot(x_ref[...], w1_ref[...], preferred_element_type=f32) + b1_ref[...]
    h = jnp.maximum(h, 0.0)                                               # [m, 64]

    # conv2 (folded BN)
    h = jnp.dot(h.astype(cdt), w2_ref[...], preferred_element_type=f32) + b2_ref[...]
    h = jnp.maximum(h, 0.0)                                               # [m, 128]

    # conv3 (folded BN), bias hoisted past the max over points.
    h = jnp.dot(h.astype(cdt), w3_ref[...], preferred_element_type=f32)   # [m, D]
    feat = jnp.max(h.reshape(bt, n_points, h.shape[-1]), axis=1) + b3_ref[...]  # [bt, D]

    # points_fc + ReLU + L2 normalize.
    emb = jnp.dot(feat.astype(cdt), wfc_ref[...], preferred_element_type=f32) + bfc_ref[...]
    emb = jnp.maximum(emb, 0.0)                                           # [bt, E]

    # F.normalize(dim=-1): x / max(||x||, eps)  ==  x * rsqrt(max(||x||^2, eps^2))
    ss = jnp.sum(emb * emb, axis=-1, keepdims=True)
    inv = lax.rsqrt(jnp.maximum(ss, NORM_EPS * NORM_EPS))

    emb_ref[...] = emb * inv
    feat_ref[...] = feat


# ------------------------------ parameter setup -------------------------------
def init_params(key):
    ks = jax.random.split(key, 8)

    def lin(k, cin, cout, scale=0.1):
        kw, kb = jax.random.split(k)
        w = scale * jax.random.normal(kw, (cin, cout), jnp.float32)
        b = scale * jax.random.normal(kb, (cout,), jnp.float32)
        return w, b

    def bn(k, c):
        k1, k2, k3, k4 = jax.random.split(k, 4)
        gamma = 1.0 + 0.1 * jax.random.normal(k1, (c,), jnp.float32)
        beta = 0.1 * jax.random.normal(k2, (c,), jnp.float32)
        mean = 0.1 * jax.random.normal(k3, (c,), jnp.float32)
        var = jax.random.uniform(k4, (c,), jnp.float32, minval=0.5, maxval=1.5)
        return gamma, beta, mean, var

    p = {}
    p["w1"], p["b1"] = lin(ks[0], 12, 64)
    p["bn1"] = bn(ks[1], 64)
    p["w2"], p["b2"] = lin(ks[2], 64, 128)
    p["bn2"] = bn(ks[3], 128)
    p["w3"], p["b3"] = lin(ks[4], 128, D_OUT)
    p["bn3"] = bn(ks[5], D_OUT)
    p["wfc"], p["bfc"] = lin(ks[6], D_OUT, E_OUT)
    return p


def fold_conv_bn(w, b, gamma, beta, mean, var):
    """Eval-mode BN folded into the 1x1 conv:  y = x@w' + b'."""
    s = gamma / jnp.sqrt(var + BN_EPS)
    return w * s[None, :], (b - mean) * s + beta


# ------------------------------ wrappers --------------------------------------
def forward_obs(params, obj_pnts, obj_norms, goal_pnts, goal_norms,
                b_tile=B_TILE, compute_dtype=jnp.bfloat16):
    bn = obj_pnts.shape[0]
    n = obj_pnts.shape[1] // 3

    # Tile sizing: pad the batch to a multiple of 8 (sublane-dense output
    # stores); whole batch in one step if small, otherwise B_TILE-sized tiles.
    bn_pad8 = ((bn + 7) // 8) * 8
    b_tile = min(b_tile, bn_pad8)
    b_tile = ((b_tile + 7) // 8) * 8
    n_tiles = pl.cdiv(bn_pad8, b_tile)
    bn_pad = n_tiles * b_tile

    # Pack the four streams into one [bn_pad*N, 12] slab.  PyTorch channel
    # order after cat(points, normals, dim=-1) -> transpose -> cat(obj, goal,
    # dim=1): [obj_pts(3), obj_norms(3), goal_pts(3), goal_norms(3)].
    x = jnp.concatenate(
        [obj_pnts.reshape(bn, n, 3), obj_norms.reshape(bn, n, 3),
         goal_pnts.reshape(bn, n, 3), goal_norms.reshape(bn, n, 3)], axis=-1)
    if bn_pad != bn:
        x = jnp.pad(x, ((0, bn_pad - bn), (0, 0), (0, 0)))
    x = x.reshape(bn_pad * n, 12).astype(compute_dtype)

    w1, b1 = fold_conv_bn(params["w1"], params["b1"], *params["bn1"])
    w2, b2 = fold_conv_bn(params["w2"], params["b2"], *params["bn2"])
    w3, b3 = fold_conv_bn(params["w3"], params["b3"], *params["bn3"])
    wfc, bfc = params["wfc"], params["bfc"]

    # Matmul operands in compute_dtype (bf16 on MXU-friendly chips); biases and
    # all elementwise math stay f32.
    w1, w2, w3, wfc = (w.astype(compute_dtype) for w in (w1, w2, w3, wfc))

    d_out = w3.shape[1]
    e_out = wfc.shape[1]

    x_spec = pl.BlockSpec((b_tile * n, 12), lambda i: (i, 0))
    rep = lambda shape: pl.BlockSpec(shape, lambda i: (0, 0))

    emb, feat = pl.pallas_call(
        partial(pointnet_encoder_kernel, n_points=n),
        out_shape=(jax.ShapeDtypeStruct((bn_pad, e_out), jnp.float32),
                   jax.ShapeDtypeStruct((bn_pad, d_out), jnp.float32)),
        grid=(n_tiles,),
        in_specs=[
            x_spec,
            rep((12, 64)), rep((1, 64)),
            rep((64, 128)), rep((1, 128)),
            rep((128, d_out)), rep((1, d_out)),
            rep((d_out, e_out)), rep((1, e_out)),
        ],
        out_specs=(pl.BlockSpec((b_tile, e_out), lambda i: (i, 0)),
                   pl.BlockSpec((b_tile, d_out), lambda i: (i, 0))),
        compiler_params=pltpu.CompilerParams(
            dimension_semantics=("parallel",),
            vmem_limit_bytes=48 * 1024 * 1024),
    )(x,
      w1, b1.reshape(1, -1),
      w2, b2.reshape(1, -1),
      w3, b3.reshape(1, -1),
      wfc, bfc.reshape(1, -1))

    # Drop zero-padded batch rows (never exposed as real outputs).
    return emb[:bn], feat[:bn]


def forward(params, feat):
    """Encoder_GeoDex_cold.forward(feat): Linear -> ReLU -> L2 normalize.

    For tiny batches a dedicated pallas_call is pure launch/DMA overhead; the
    fused Pallas implementation of this fc is inside pointnet_encoder_kernel
    for the forward_obs path.
    """
    emb = jax.nn.relu(feat @ params["wfc"] + params["bfc"])
    return emb / jnp.maximum(jnp.linalg.norm(emb, axis=-1, keepdims=True), NORM_EPS)


# ------------------------------ pure-JAX reference ----------------------------
def ref_forward_obs(params, obj_pnts, obj_norms, goal_pnts, goal_norms):
    bn = obj_pnts.shape[0]
    n = obj_pnts.shape[1] // 3
    x = jnp.concatenate([obj_pnts.reshape(bn, n, 3), obj_norms.reshape(bn, n, 3),
                         goal_pnts.reshape(bn, n, 3), goal_norms.reshape(bn, n, 3)],
                        axis=-1)                                       # [B, N, 12]

    def conv_bn(h, w, b, stats):
        gamma, beta, mean, var = stats
        y = h @ w + b
        return gamma * (y - mean) / jnp.sqrt(var + BN_EPS) + beta

    h = jax.nn.relu(conv_bn(x, params["w1"], params["b1"], params["bn1"]))
    h = jax.nn.relu(conv_bn(h, params["w2"], params["b2"], params["bn2"]))
    h = conv_bn(h, params["w3"], params["b3"], params["bn3"])
    feat = jnp.max(h, axis=1)                                          # [B, D]
    emb = jax.nn.relu(feat @ params["wfc"] + params["bfc"])
    emb = emb / jnp.maximum(jnp.linalg.norm(emb, axis=-1, keepdims=True), NORM_EPS)
    return emb, feat


def ref_forward(params, feat):
    emb = jax.nn.relu(feat @ params["wfc"] + params["bfc"])
    return emb / jnp.maximum(jnp.linalg.norm(emb, axis=-1, keepdims=True), NORM_EPS)


# ------------------------------ main ------------------------------------------
if __name__ == "__main__":
    key = jax.random.PRNGKey(0)
    kp, k1, k2, k3, k4, k5 = jax.random.split(key, 6)
    params = init_params(kp)

    # --- small test (module-consistent B=2), exact f32 path --------------------
    obj_pnts = jax.random.normal(k1, (B, N * 3), jnp.float32)
    obj_norms = jax.random.normal(k2, (B, N * 3), jnp.float32)
    goal_pnts = jax.random.normal(k3, (B, N * 3), jnp.float32)
    goal_norms = jax.random.normal(k4, (B, N * 3), jnp.float32)

    emb, feat = forward_obs(params, obj_pnts, obj_norms, goal_pnts, goal_norms,
                            compute_dtype=jnp.float32)
    emb = jax.block_until_ready(emb)
    feat = jax.block_until_ready(feat)

    emb_ref, feat_ref = ref_forward_obs(params, obj_pnts, obj_norms, goal_pnts, goal_norms)
    np.testing.assert_allclose(np.asarray(feat), np.asarray(feat_ref), rtol=1e-4, atol=1e-4)
    np.testing.assert_allclose(np.asarray(emb), np.asarray(emb_ref), rtol=1e-4, atol=1e-4)

    # --- same small test, default bf16-matmul path -----------------------------
    emb16, feat16 = forward_obs(params, obj_pnts, obj_norms, goal_pnts, goal_norms)
    emb16 = jax.block_until_ready(emb16)
    feat16 = jax.block_until_ready(feat16)
    np.testing.assert_allclose(np.asarray(feat16), np.asarray(feat_ref), rtol=2e-2, atol=2e-2)
    np.testing.assert_allclose(np.asarray(emb16), np.asarray(emb_ref), rtol=2e-2, atol=2e-2)

    # --- batched / padded path: bn=70, B_TILE=32 -> 3 grid steps, 26 padded rows
    B2 = 70
    big = jax.random.normal(k5, (4, B2, N * 3), jnp.float32)
    emb_b, feat_b = forward_obs(params, big[0], big[1], big[2], big[3])
    emb_b = jax.block_until_ready(emb_b)
    feat_b = jax.block_until_ready(feat_b)
    emb_b_ref, feat_b_ref = ref_forward_obs(params, big[0], big[1], big[2], big[3])
    np.testing.assert_allclose(np.asarray(feat_b), np.asarray(feat_b_ref), rtol=2e-2, atol=2e-2)
    np.testing.assert_allclose(np.asarray(emb_b), np.asarray(emb_b_ref), rtol=2e-2, atol=2e-2)

    # --- module's forward(feat): Linear -> ReLU -> normalize -------------------
    emb2 = jax.block_until_ready(forward(params, feat))
    np.testing.assert_allclose(np.asarray(emb2), np.asarray(ref_forward(params, feat)),
                               rtol=1e-4, atol=1e-4)

    print("KERNEL_OK")
</pallas_src>

<mosaic_0001>
module attributes {stable_mosaic.version = 11 : i64} {
  func.func @pointnet_encoder_kernel(%arg0: i32, %arg1: memref<1024x12xf32, #tpu.memory_space<vmem>>, %arg2: memref<12x64xf32, #tpu.memory_space<vmem>>, %arg3: memref<1x64xf32, #tpu.memory_space<vmem>>, %arg4: memref<64x128xf32, #tpu.memory_space<vmem>>, %arg5: memref<1x128xf32, #tpu.memory_space<vmem>>, %arg6: memref<128x256xf32, #tpu.memory_space<vmem>>, %arg7: memref<1x256xf32, #tpu.memory_space<vmem>>, %arg8: memref<256x128xf32, #tpu.memory_space<vmem>>, %arg9: memref<1x128xf32, #tpu.memory_space<vmem>>, %arg10: memref<8x128xf32, #tpu.memory_space<vmem>>, %arg11: memref<8x256xf32, #tpu.memory_space<vmem>>) attributes {dimension_semantics = [#tpu.dimension_semantics<parallel>], iteration_bounds = array<i64: 1>, scalar_prefetch = 0 : i64, scratch_operands = 0 : i64, tpu.core_type = #tpu.core_type<tc>, window_params = [{transform_indices = @transform_0, window_bounds = array<i64: 1024, 12>}, {pipeline_mode = #tpu.pipeline_mode<synchronous>, transform_indices = @transform_1, window_bounds = array<i64: 12, 64>}, {pipeline_mode = #tpu.pipeline_mode<synchronous>, transform_indices = @transform_2, window_bounds = array<i64: 1, 64>}, {pipeline_mode = #tpu.pipeline_mode<synchronous>, transform_indices = @transform_3, window_bounds = array<i64: 64, 128>}, {pipeline_mode = #tpu.pipeline_mode<synchronous>, transform_indices = @transform_4, window_bounds = array<i64: 1, 128>}, {pipeline_mode = #tpu.pipeline_mode<synchronous>, transform_indices = @transform_5, window_bounds = array<i64: 128, 256>}, {pipeline_mode = #tpu.pipeline_mode<synchronous>, transform_indices = @transform_6, window_bounds = array<i64: 1, 256>}, {pipeline_mode = #tpu.pipeline_mode<synchronous>, transform_indices = @transform_7, window_bounds = array<i64: 256, 128>}, {pipeline_mode = #tpu.pipeline_mode<synchronous>, transform_indices = @transform_8, window_bounds = array<i64: 1, 128>}, {transform_indices = @transform_9, window_bounds = array<i64: 8, 128>}, {transform_indices = @transform_10, window_bounds = array<i64: 8, 256>}]} {
    %c0 = arith.constant 0 : index
    %c0_0 = arith.constant 0 : index
    %0 = vector.load %arg1[%c0, %c0_0] : memref<1024x12xf32, #tpu.memory_space<vmem>>, vector<1024x12xf32>
    %c0_1 = arith.constant 0 : index
    %c0_2 = arith.constant 0 : index
    %1 = vector.load %arg2[%c0_1, %c0_2] : memref<12x64xf32, #tpu.memory_space<vmem>>, vector<12x64xf32>
    %cst = arith.constant dense<0.000000e+00> : vector<1024x64xf32>
    %2 = tpu.matmul %0, %1, %cst {dimension_numbers = #tpu.dot_dimension_numbers<[1], [0], [0], [1], [0, 0, 1, 1], [], []>} : vector<1024x12xf32>, vector<12x64xf32>, vector<1024x64xf32> -> vector<1024x64xf32>
    %c0_3 = arith.constant 0 : index
    %c0_4 = arith.constant 0 : index
    %3 = vector.load %arg3[%c0_3, %c0_4] : memref<1x64xf32, #tpu.memory_space<vmem>>, vector<1x64xf32>
    %4 = vector.broadcast %3 : vector<1x64xf32> to vector<1024x64xf32>
    %5 = arith.addf %2, %4 : vector<1024x64xf32>
    %cst_5 = arith.constant 0.000000e+00 : f32
    %6 = vector.broadcast %cst_5 : f32 to vector<1024x64xf32>
    %7 = arith.maximumf %5, %6 : vector<1024x64xf32>
    %c0_6 = arith.constant 0 : index
    %c0_7 = arith.constant 0 : index
    %8 = vector.load %arg4[%c0_6, %c0_7] : memref<64x128xf32, #tpu.memory_space<vmem>>, vector<64x128xf32>
    %cst_8 = arith.constant dense<0.000000e+00> : vector<1024x128xf32>
    %9 = tpu.matmul %7, %8, %cst_8 {dimension_numbers = #tpu.dot_dimension_numbers<[1], [0], [0], [1], [0, 0, 1, 1], [], []>} : vector<1024x64xf32>, vector<64x128xf32>, vector<1024x128xf32> -> vector<1024x128xf32>
    %c0_9 = arith.constant 0 : index
    %c0_10 = arith.constant 0 : index
    %10 = vector.load %arg5[%c0_9, %c0_10] : memref<1x128xf32, #tpu.memory_space<vmem>>, vector<1x128xf32>
    %11 = vector.broadcast %10 : vector<1x128xf32> to vector<1024x128xf32>
    %12 = arith.addf %9, %11 : vector<1024x128xf32>
    %cst_11 = arith.constant 0.000000e+00 : f32
    %13 = vector.broadcast %cst_11 : f32 to vector<1024x128xf32>
    %14 = arith.maximumf %12, %13 : vector<1024x128xf32>
    %c0_12 = arith.constant 0 : index
    %c0_13 = arith.constant 0 : index
    %15 = vector.load %arg6[%c0_12, %c0_13] : memref<128x256xf32, #tpu.memory_space<vmem>>, vector<128x256xf32>
    %cst_14 = arith.constant dense<0.000000e+00> : vector<1024x256xf32>
    %16 = tpu.matmul %14, %15, %cst_14 {dimension_numbers = #tpu.dot_dimension_numbers<[1], [0], [0], [1], [0, 0, 1, 1], [], []>} : vector<1024x128xf32>, vector<128x256xf32>, vector<1024x256xf32> -> vector<1024x256xf32>
    %17 = vector.shape_cast %16 : vector<1024x256xf32> to vector<8x128x256xf32>
    %cst_15 = arith.constant dense<0xFF800000> : vector<8x256xf32>
    %18 = vector.multi_reduction <maximumf>, %17, %cst_15 [1] : vector<8x128x256xf32> to vector<8x256xf32>
    %c0_16 = arith.constant 0 : index
    %c0_17 = arith.constant 0 : index
    %19 = vector.load %arg7[%c0_16, %c0_17] : memref<1x256xf32, #tpu.memory_space<vmem>>, vector<1x256xf32>
    %20 = vector.broadcast %19 : vector<1x256xf32> to vector<8x256xf32>
    %21 = arith.addf %18, %20 : vector<8x256xf32>
    %c0_18 = arith.constant 0 : index
    %c0_19 = arith.constant 0 : index
    %22 = vector.load %arg8[%c0_18, %c0_19] : memref<256x128xf32, #tpu.memory_space<vmem>>, vector<256x128xf32>
    %cst_20 = arith.constant dense<0.000000e+00> : vector<8x128xf32>
    %23 = tpu.matmul %21, %22, %cst_20 {dimension_numbers = #tpu.dot_dimension_numbers<[1], [0], [0], [1], [0, 0, 1, 1], [], []>} : vector<8x256xf32>, vector<256x128xf32>, vector<8x128xf32> -> vector<8x128xf32>
    %c0_21 = arith.constant 0 : index
    %c0_22 = arith.constant 0 : index
    %24 = vector.load %arg9[%c0_21, %c0_22] : memref<1x128xf32, #tpu.memory_space<vmem>>, vector<1x128xf32>
    %25 = vector.broadcast %24 : vector<1x128xf32> to vector<8x128xf32>
    %26 = arith.addf %23, %25 : vector<8x128xf32>
    %cst_23 = arith.constant 0.000000e+00 : f32
    %27 = vector.broadcast %cst_23 : f32 to vector<8x128xf32>
    %28 = arith.maximumf %26, %27 : vector<8x128xf32>
    %29 = arith.mulf %28, %28 : vector<8x128xf32>
    %cst_24 = arith.constant dense<0.000000e+00> : vector<8xf32>
    %30 = vector.multi_reduction <add>, %29, %cst_24 [1] : vector<8x128xf32> to vector<8xf32>
    %31 = vector.shape_cast %30 : vector<8xf32> to vector<8x1xf32>
    %cst_25 = arith.constant 1.000000e-24 : f32
    %32 = vector.broadcast %cst_25 : f32 to vector<8x1xf32>
    %33 = arith.maximumf %31, %32 : vector<8x1xf32>
    %34 = math.rsqrt %33 : vector<8x1xf32>
    %35 = vector.broadcast %34 : vector<8x1xf32> to vector<8x128xf32>
    %36 = arith.mulf %28, %35 : vector<8x128xf32>
    %c0_26 = arith.constant 0 : index
    %c0_27 = arith.constant 0 : index
    %37 = vector.load %arg10[%c0_26, %c0_27] : memref<8x128xf32, #tpu.memory_space<vmem>>, vector<8x128xf32>
    tpu.vector_store %arg10[%c0_26, %c0_27], %36 {strides = array<i32>} : memref<8x128xf32, #tpu.memory_space<vmem>>, vector<8x128xf32>,
    %c0_28 = arith.constant 0 : index
    %c0_29 = arith.constant 0 : index
    %38 = vector.load %arg11[%c0_28, %c0_29] : memref<8x256xf32, #tpu.memory_space<vmem>>, vector<8x256xf32>
    tpu.vector_store %arg11[%c0_28, %c0_29], %21 {strides = array<i32>} : memref<8x256xf32, #tpu.memory_space<vmem>>, vector<8x256xf32>,
    return
  }
  func.func @transform_0(%arg0: i32) -> (i32, i32) {
    %c0_i32 = arith.constant 0 : i32
    %c0_i32_0 = arith.constant 0 : i32
    return %arg0, %c0_i32 : i32, i32
  }
  func.func @transform_1(%arg0: i32) -> (i32, i32) {
    %c0_i32 = arith.constant 0 : i32
    %c0_i32_0 = arith.constant 0 : i32
    %c0_i32_1 = arith.constant 0 : i32
    return %c0_i32, %c0_i32_0 : i32, i32
  }
  func.func @transform_2(%arg0: i32) -> (i32, i32) {
    %c0_i32 = arith.constant 0 : i32
    %c0_i32_0 = arith.constant 0 : i32
    %c0_i32_1 = arith.constant 0 : i32
    return %c0_i32, %c0_i32_0 : i32, i32
  }
  func.func @transform_3(%arg0: i32) -> (i32, i32) {
    %c0_i32 = arith.constant 0 : i32
    %c0_i32_0 = arith.constant 0 : i32
    %c0_i32_1 = arith.constant 0 : i32
    return %c0_i32, %c0_i32_0 : i32, i32
  }
  func.func @transform_4(%arg0: i32) -> (i32, i32) {
    %c0_i32 = arith.constant 0 : i32
    %c0_i32_0 = arith.constant 0 : i32
    %c0_i32_1 = arith.constant 0 : i32
    return %c0_i32, %c0_i32_0 : i32, i32
  }
  func.func @transform_5(%arg0: i32) -> (i32, i32) {
    %c0_i32 = arith.constant 0 : i32
    %c0_i32_0 = arith.constant 0 : i32
    %c0_i32_1 = arith.constant 0 : i32
    return %c0_i32, %c0_i32_0 : i32, i32
  }
  func.func @transform_6(%arg0: i32) -> (i32, i32) {
    %c0_i32 = arith.constant 0 : i32
    %c0_i32_0 = arith.constant 0 : i32
    %c0_i32_1 = arith.constant 0 : i32
    return %c0_i32, %c0_i32_0 : i32, i32
  }
  func.func @transform_7(%arg0: i32) -> (i32, i32) {
    %c0_i32 = arith.constant 0 : i32
    %c0_i32_0 = arith.constant 0 : i32
    %c0_i32_1 = arith.constant 0 : i32
    return %c0_i32, %c0_i32_0 : i32, i32
  }
  func.func @transform_8(%arg0: i32) -> (i32, i32) {
    %c0_i32 = arith.constant 0 : i32
    %c0_i32_0 = arith.constant 0 : i32
    %c0_i32_1 = arith.constant 0 : i32
    return %c0_i32, %c0_i32_0 : i32, i32
  }
  func.func @transform_9(%arg0: i32) -> (i32, i32) {
    %c0_i32 = arith.constant 0 : i32
    %c0_i32_0 = arith.constant 0 : i32
    return %arg0, %c0_i32 : i32, i32
  }
  func.func @transform_10(%arg0: i32) -> (i32, i32) {
    %c0_i32 = arith.constant 0 : i32
    %c0_i32_0 = arith.constant 0 : i32
    return %arg0, %c0_i32 : i32, i32
  }
}

</mosaic_0001>

<bundles_post_ra>
// kernel: tpu_custom_call.1
= control target key start
LH: loop header
LB: loop body
LE: loop exit
PB: predicated region body
PF: predicated region fallthrough
CT: control target
= control target key end

     0   :  { %16 = vsyncpa [#allocation3], 0  ;;  %vm555_vm0 = vcmask 1043456   ;;  %vm170_vm1 = vcmask 97280   ;;  %s5001_s0 = inlined_call_operand.vmem [shape: f32[1024,12], index: 0, kind: input, shape index: {}]   ;;  %s5002_s1 = inlined_call_operand.vmem [shape: f32[12,64], index: 1, kind: input, shape index: {}]   ;;  %s5003_s2 = inlined_call_operand.vmem [shape: f32[1,64], index: 2, kind: input, shape index: {}]   ;;  %s5004_s3 = inlined_call_operand.vmem [shape: f32[64,128], index: 3, kind: input, shape index: {}]   ;;  %s5005_s4 = inlined_call_operand.vmem [shape: f32[1,128], index: 4, kind: input, shape index: {}]   ;;  %s5006_s5 = inlined_call_operand.vmem [shape: f32[128,256], index: 5, kind: input, shape index: {}]   ;;  %s5007_s6 = inlined_call_operand.vmem [shape: f32[1,256], index: 6, kind: input, shape index: {}]   ;;  %s5008_s7 = inlined_call_operand.vmem [shape: f32[256,128], index: 7, kind: input, shape index: {}]   ;;  %s5009_s8 = inlined_call_operand.vmem [shape: f32[1,128], index: 8, kind: input, shape index: {}]   ;;  %s5010_s9 = inlined_call_operand.hbm [shape: f32[8,128], index: 9, kind: output, shape index: {0}]   ;;  %s5011_s10 = inlined_call_operand.hbm [shape: f32[8,256], index: 10, kind: output, shape index: {1}]  }
   0x1   :  { %v165_v0 = vld [vmem:[%s5002_s1 + $0x8] sm:$0xf]  ;;  %v164_v1 = vld [vmem:[%s5002_s1] sm:$0xff] }
   0x2   :  { %3386 = vmatpush.msk.msra.mxu0 %vm555_vm0, %v165_v0  ;;  %v36_v2 = vld [vmem:[%s5001_s0] sm:$0xff] }
   0x4   :  { %574 = vmatpush.msra.mxu0 %v164_v1 }
   0x5   :  { %17 = vsyncpa [#allocation5], 0  ;;  %3387 = vmatmul.msk.f32.vlgmr.msra.gmra.mxu0 %vm170_vm1, %v36_v2  ;;  %v37_v3 = vld [vmem:[%s5001_s0 + $0x8] sm:$0xff]  ;;  %v38_v4 = vld [vmem:[%s5001_s0 + $0x10] sm:$0xff]  ;;  %vm1100_vm2 = vcmask 523264   ;;  %vm3259_vm3 = vcmask 1041409  }
   0x6   :  { %v39_v5 = vld [vmem:[%s5001_s0 + $0x18] sm:$0xff]  ;;  %v40_v6 = vld [vmem:[%s5001_s0 + $0x20] sm:$0xff]  ;;  %v41_v7 = vld [vmem:[%s5001_s0 + $0x28] sm:$0xff]  ;;  %vm3262_vm4 = vcmask 1042434   ;;  %vm3265_vm5 = vcmask 1043459   ;;  %vm3268_vm6 = vcmask 1044484  }
   0x7   :  { %v42_v8 = vld [vmem:[%s5001_s0 + $0x30] sm:$0xff]  ;;  %v43_v9 = vld [vmem:[%s5001_s0 + $0x38] sm:$0xff]  ;;  %v44_v10 = vld [vmem:[%s5001_s0 + $0x40] sm:$0xff]  ;;  %vm3271_vm7 = vcmask 1045509   ;;  %vm3274_vm8 = vcmask 1046534   ;;  %vm3277_vm9 = vcmask 1047559  }
   0x8   :  { %v45_v11 = vld [vmem:[%s5001_s0 + $0x48] sm:$0xff]  ;;  %v46_v12 = vld [vmem:[%s5001_s0 + $0x50] sm:$0xff]  ;;  %v1095_v13 = vld [vmem:[%s5004_s3 + $0x38] sm:$0xff]  ;;  %s3708_s20 = smov [#allocation4]  }
   0x9   :  { %v1094_v14 = vld [vmem:[%s5004_s3 + $0x30] sm:$0xff]  ;;  %1493 = vmatpush.msra.mxu1 %v1095_v13  ;;  %v1093_v15 = vld [vmem:[%s5004_s3 + $0x28] sm:$0xff]  ;;  %v47_v16 = vld [vmem:[%s5001_s0 + $0x58] sm:$0xff]  ;;  %s3370_s21 = sshll.u32 %s3708_s20, 4  ;;  %s3371_s21 = int_to_ptr.vmem [resolvable:$true] %s3370_s21 }
   0xa   :  { %v1092_v17 = vld [vmem:[%s5004_s3 + $0x20] sm:$0xff]  ;;  %v1091_v18 = vld [vmem:[%s5004_s3 + $0x18] sm:$0xff]  ;;  %v1090_v19 = vld [vmem:[%s5004_s3 + $0x10] sm:$0xff] }
   0xb   :  { %1494 = vmatpush.msra.mxu1 %v1094_v14  ;;  %v48_v20 = vld [vmem:[%s5001_s0 + $0x60] sm:$0xff]  ;;  %v1089_v21 = vld [vmem:[%s5004_s3 + $0x8] sm:$0xff]  ;;  %v50_v24 = vld [vmem:[%s5001_s0 + $0x70] sm:$0xff] }
   0xc   :  { %v1088_v22 = vld [vmem:[%s5004_s3] sm:$0xff]  ;;  %v49_v23 = vld [vmem:[%s5001_s0 + $0x68] sm:$0xff]  ;;  %v51_v25 = vld [vmem:[%s5001_s0 + $0x78] sm:$0xff] }
   0xd   :  { %3388 = vmatmul.msk.f32.gmra.mxu0 %vm170_vm1, %v37_v3  ;;  %1495 = vmatpush.msra.mxu1 %v1093_v15  ;;  %v3862_v26 = vld [vmem:[%s5003_s2] ss:$0 sm:$0xff]  ;;  %v53_v32 = vld [vmem:[%s5001_s0 + $0x88] sm:$0xff]  ;;  %v54_v36 = vld [vmem:[%s5001_s0 + $0x90] sm:$0xff] }
   0xe   :  { %v52_v28 = vld [vmem:[%s5001_s0 + $0x80] sm:$0xff]  ;;  %v55_v40 = vld [vmem:[%s5001_s0 + $0x98] sm:$0xff]  ;;  %v57_v48 = vld [vmem:[%s5001_s0 + $0xa8] sm:$0xff] }
   0xf   :  { %1496 = vmatpush.msra.mxu1 %v1092_v17  ;;  %v56_v44 = vld [vmem:[%s5001_s0 + $0xa0] sm:$0xff]  ;;  %v58_v52 = vld [vmem:[%s5001_s0 + $0xb0] sm:$0xff]  ;;  %v59_v56 = vld [vmem:[%s5001_s0 + $0xb8] sm:$0xff] }
  0x10   :  { %v60_v60 = vld [vmem:[%s5001_s0 + $0xc0] sm:$0xff]  ;;  %v2044_v63 = vld [vmem:[%s5006_s5 + $0xf0] sm:$0xff]  ;;  %v2045_v0 = vld [vmem:[%s5006_s5 + $0xf8] sm:$0xff] }
  0x11   :  { %1497 = vmatpush.msra.mxu1 %v1091_v18  ;;  %v61_v2 = vld [vmem:[%s5001_s0 + $0xc8] sm:$0xff]  ;;  %2046 = vmatpush.msra.mxu2 %v2044_v63  ;;  %v62_v14 = vld [vmem:[%s5001_s0 + $0xd0] sm:$0xff] }
  0x12   :  { %2447 = vmatpush.msra.mxu3 %v2045_v0  ;;  %v2035_v17 = vld [vmem:[%s5006_s5 + $0xa8] sm:$0xff] }
  0x13   :  { %1498 = vmatpush.msra.mxu1 %v1090_v19  ;;  %v2032_v19 = vld [vmem:[%s5006_s5 + $0x90] sm:$0xff] }
  0x15   :  { %3389 = vmatmul.msk.f32.gmra.mxu0 %vm170_vm1, %v38_v4  ;;  %1499 = vmatpush.msra.mxu1 %v1089_v21  ;;  %v2042_v4 = vld [vmem:[%s5006_s5 + $0xe0] sm:$0xff] }
  0x16   :  { %2047 = vmatpush.msra.mxu2 %v2042_v4  ;;  %v2030_v21 = vld [vmem:[%s5006_s5 + $0x80] sm:$0xff] }
  0x17   :  { %1500 = vmatpush.msra.mxu1 %v1088_v22  ;;  %v2031_v22 = vld [vmem:[%s5006_s5 + $0x88] sm:$0xff] }
  0x1d   :  { %3390 = vmatmul.msk.f32.gmra.mxu0 %vm170_vm1, %v39_v5  ;;  %v2043_v5 = vld [vmem:[%s5006_s5 + $0xe8] sm:$0xff] }
  0x1e   :  { %2448 = vmatpush.msra.mxu3 %v2043_v5  ;;  %v69_v5 = vld [vmem:[%s5001_s0 + $0x108] sm:$0xff] }
  0x25   :  { %3391 = vmatmul.msk.f32.gmra.mxu0 %vm170_vm1, %v40_v6 }
  0x2d   :  { %3392 = vmatmul.msk.f32.gmra.mxu0 %vm170_vm1, %v41_v7  ;;  %v2040_v7 = vld [vmem:[%s5006_s5 + $0xd0] sm:$0xff] }
  0x2e   :  { %2048 = vmatpush.msra.mxu2 %v2040_v7 }
  0x35   :  { %3393 = vmatmul.msk.f32.gmra.mxu0 %vm170_vm1, %v42_v8  ;;  %v2041_v8 = vld [vmem:[%s5006_s5 + $0xd8] sm:$0xff] }
  0x36   :  { %2449 = vmatpush.msra.mxu3 %v2041_v8 }
  0x3d   :  { %3394 = vmatmul.msk.f32.gmra.mxu0 %vm170_vm1, %v43_v9  ;;  %v2038_v9 = vld [vmem:[%s5006_s5 + $0xc0] sm:$0xff] }
  0x3e   :  { %2049 = vmatpush.msra.mxu2 %v2038_v9 }
  0x45   :  { %3395 = vmatmul.msk.f32.gmra.mxu0 %vm170_vm1, %v44_v10  ;;  %v2039_v10 = vld [vmem:[%s5006_s5 + $0xc8] sm:$0xff] }
  0x46   :  { %2450 = vmatpush.msra.mxu3 %v2039_v10 }
  0x4d   :  { %3396 = vmatmul.msk.f32.gmra.mxu0 %vm170_vm1, %v45_v11  ;;  %v2036_v11 = vld [vmem:[%s5006_s5 + $0xb0] sm:$0xff] }
  0x4e   :  { %2050 = vmatpush.msra.mxu2 %v2036_v11 }
  0x55   :  { %3397 = vmatmul.msk.f32.gmra.mxu0 %vm170_vm1, %v46_v12  ;;  %v2037_v12 = vld [vmem:[%s5006_s5 + $0xb8] sm:$0xff] }
  0x56   :  { %2451 = vmatpush.msra.mxu3 %v2037_v12  ;;  %v70_v12 = vld [vmem:[%s5001_s0 + $0x110] sm:$0xff] }
  0x58   :  { %2452 = vmatpush.msra.mxu3 %v2035_v17 }
  0x5d   :  { %3398 = vmatmul.msk.f32.gmra.mxu0 %vm170_vm1, %v47_v16  ;;  %v2034_v16 = vld [vmem:[%s5006_s5 + $0xa0] sm:$0xff] }
  0x5e   :  { %2051 = vmatpush.msra.mxu2 %v2034_v16 }
  0x60   :  { %2052 = vmatpush.msra.mxu2 %v2032_v19  ;;  %v71_v19 = vld [vmem:[%s5001_s0 + $0x118] sm:$0xff] }
  0x62   :  { %2053 = vmatpush.msra.mxu2 %v2030_v21 }
  0x65   :  { %3399 = vmatmul.msk.f32.gmra.mxu0 %vm170_vm1, %v48_v20  ;;  %v2033_v20 = vld [vmem:[%s5006_s5 + $0x98] sm:$0xff] }
  0x66   :  { %2453 = vmatpush.msra.mxu3 %v2033_v20 }
  0x68   :  { %2454 = vmatpush.msra.mxu3 %v2031_v22 }
  0x6d   :  { %3400 = vmatmul.msk.f32.gmra.mxu0 %vm170_vm1, %v49_v23  ;;  %v2028_v23 = vld [vmem:[%s5006_s5 + $0x70] sm:$0xff] }
  0x6e   :  { %2054 = vmatpush.msra.mxu2 %v2028_v23 }
  0x75   :  { %3401 = vmatmul.msk.f32.gmra.mxu0 %vm170_vm1, %v50_v24  ;;  %v2029_v24 = vld [vmem:[%s5006_s5 + $0x78] sm:$0xff] }
  0x76   :  { %2455 = vmatpush.msra.mxu3 %v2029_v24 }
  0x7d   :  { %3402 = vmatmul.msk.f32.gmra.mxu0 %vm170_vm1, %v51_v25 }
  0x82   :  { %v576_v27 = vpop.f32.mrf.mxu0 }
  0x83   :  { %v577_v29 = vadd.f32 %v3862_v26, %v576_v27  ;;  %v63_v27 = vld [vmem:[%s5001_s0 + $0xd8] sm:$0xff] }
  0x85   :  { %v960_v30 = vmax.f32 %v577_v29, 0.0  ;;  %3403 = vmatmul.msk.f32.gmra.mxu0 %vm170_vm1, %v52_v28  ;;  %v2026_v29 = vld [vmem:[%s5006_s5 + $0x60] sm:$0xff] }
  0x86   :  { %2055 = vmatpush.msra.mxu2 %v2026_v29 }
  0x87   :  { %3515 = vmatmul.msk.f32.vlgmr.msra.gmra.mxu1 %vm1100_vm2, %v960_v30  ;;  %v2027_v30 = vld [vmem:[%s5006_s5 + $0x68] sm:$0xff] }
  0x88   :  { %2456 = vmatpush.msra.mxu3 %v2027_v30 }
  0x8a   :  { %v579_v31 = vpop.f32.mrf.mxu0 }
  0x8b   :  { %v580_v33 = vadd.f32 %v3862_v26, %v579_v31 }
  0x8d   :  { %v961_v34 = vmax.f32 %v580_v33, 0.0  ;;  %3404 = vmatmul.msk.f32.gmra.mxu0 %vm170_vm1, %v53_v32  ;;  %v2024_v32 = vld [vmem:[%s5006_s5 + $0x50] sm:$0xff]  ;;  %v2025_v33 = vld [vmem:[%s5006_s5 + $0x58] sm:$0xff] }
  0x8e   :  { %2056 = vmatpush.msra.mxu2 %v2024_v32  ;;  %2457 = vmatpush.msra.mxu3 %v2025_v33 }
  0x8f   :  { %3516 = vmatmul.msk.f32.gmra.mxu1 %vm1100_vm2, %v961_v34  ;;  %v2022_v34 = vld [vmem:[%s5006_s5 + $0x40] sm:$0xff] }
  0x90   :  { %2057 = vmatpush.msra.mxu2 %v2022_v34  ;;  %v73_v34 = vld [vmem:[%s5001_s0 + $0x128] sm:$0xff] }
  0x92   :  { %v582_v35 = vpop.f32.mrf.mxu0 }
  0x93   :  { %v583_v37 = vadd.f32 %v3862_v26, %v582_v35  ;;  %v2023_v35 = vld [vmem:[%s5006_s5 + $0x48] sm:$0xff] }
  0x94   :  { %2458 = vmatpush.msra.mxu3 %v2023_v35 }
  0x95   :  { %v962_v38 = vmax.f32 %v583_v37, 0.0  ;;  %3405 = vmatmul.msk.f32.gmra.mxu0 %vm170_vm1, %v54_v36  ;;  %v2020_v36 = vld [vmem:[%s5006_s5 + $0x30] sm:$0xff]  ;;  %v2021_v37 = vld [vmem:[%s5006_s5 + $0x38] sm:$0xff] }
  0x96   :  { %2058 = vmatpush.msra.mxu2 %v2020_v36  ;;  %2459 = vmatpush.msra.mxu3 %v2021_v37 }
  0x97   :  { %3517 = vmatmul.msk.f32.gmra.mxu1 %vm1100_vm2, %v962_v38 }
  0x9a   :  { %v585_v39 = vpop.f32.mrf.mxu0 }
  0x9b   :  { %v586_v41 = vadd.f32 %v3862_v26, %v585_v39  ;;  %v64_v39 = vld [vmem:[%s5001_s0 + $0xe0] sm:$0xff] }
  0x9d   :  { %v963_v42 = vmax.f32 %v586_v41, 0.0  ;;  %3406 = vmatmul.msk.f32.gmra.mxu0 %vm170_vm1, %v55_v40  ;;  %v2018_v41 = vld [vmem:[%s5006_s5 + $0x20] sm:$0xff] }
  0x9e   :  { %2059 = vmatpush.msra.mxu2 %v2018_v41  ;;  %v74_v41 = vld [vmem:[%s5001_s0 + $0x130] sm:$0xff] }
  0x9f   :  { %3518 = vmatmul.msk.f32.gmra.mxu1 %vm1100_vm2, %v963_v42  ;;  %v2019_v42 = vld [vmem:[%s5006_s5 + $0x28] sm:$0xff] }
  0xa0   :  { %2460 = vmatpush.msra.mxu3 %v2019_v42 }
  0xa2   :  { %v588_v43 = vpop.f32.mrf.mxu0 }
  0xa3   :  { %v589_v45 = vadd.f32 %v3862_v26, %v588_v43 }
  0xa5   :  { %v964_v46 = vmax.f32 %v589_v45, 0.0  ;;  %3407 = vmatmul.msk.f32.gmra.mxu0 %vm170_vm1, %v56_v44  ;;  %v2016_v44 = vld [vmem:[%s5006_s5 + $0x10] sm:$0xff]  ;;  %v2017_v45 = vld [vmem:[%s5006_s5 + $0x18] sm:$0xff] }
  0xa6   :  { %2060 = vmatpush.msra.mxu2 %v2016_v44  ;;  %2461 = vmatpush.msra.mxu3 %v2017_v45 }
  0xa7   :  { %3519 = vmatmul.msk.f32.gmra.mxu1 %vm1100_vm2, %v964_v46  ;;  %v2014_v46 = vld [vmem:[%s5006_s5] sm:$0xff] }
  0xa8   :  { %2061 = vmatpush.msra.mxu2 %v2014_v46 }
  0xaa   :  { %v591_v47 = vpop.f32.mrf.mxu0 }
  0xab   :  { %v592_v49 = vadd.f32 %v3862_v26, %v591_v47  ;;  %v2015_v47 = vld [vmem:[%s5006_s5 + $0x8] sm:$0xff] }
  0xac   :  { %2462 = vmatpush.msra.mxu3 %v2015_v47 }
  0xad   :  { %v965_v50 = vmax.f32 %v592_v49, 0.0  ;;  %3408 = vmatmul.msk.f32.gmra.mxu0 %vm170_vm1, %v57_v48  ;;  %v65_v49 = vld [vmem:[%s5001_s0 + $0xe8] sm:$0xff] }
  0xaf   :  { %3520 = vmatmul.msk.f32.gmra.mxu1 %vm1100_vm2, %v965_v50 }
  0xb2   :  { %v594_v51 = vpop.f32.mrf.mxu0 }
  0xb3   :  { %v595_v53 = vadd.f32 %v3862_v26, %v594_v51 }
  0xb5   :  { %v966_v54 = vmax.f32 %v595_v53, 0.0  ;;  %3409 = vmatmul.msk.f32.gmra.mxu0 %vm170_vm1, %v58_v52  ;;  %v66_v53 = vld [vmem:[%s5001_s0 + $0xf0] sm:$0xff] }
  0xb7   :  { %3521 = vmatmul.msk.f32.gmra.mxu1 %vm1100_vm2, %v966_v54 }
  0xba   :  { %v597_v55 = vpop.f32.mrf.mxu0 }
  0xbb   :  { %v598_v57 = vadd.f32 %v3862_v26, %v597_v55 }
  0xbd   :  { %v967_v58 = vmax.f32 %v598_v57, 0.0  ;;  %3410 = vmatmul.msk.f32.gmra.mxu0 %vm170_vm1, %v59_v56  ;;  %v67_v57 = vld [vmem:[%s5001_s0 + $0xf8] sm:$0xff] }
  0xbf   :  { %3522 = vmatmul.msk.f32.gmra.mxu1 %vm1100_vm2, %v967_v58 }
  0xc2   :  { %v600_v59 = vpop.f32.mrf.mxu0 }
  0xc3   :  { %v601_v61 = vadd.f32 %v3862_v26, %v600_v59 }
  0xc5   :  { %v968_v62 = vmax.f32 %v601_v61, 0.0  ;;  %3411 = vmatmul.msk.f32.gmra.mxu0 %vm170_vm1, %v60_v60  ;;  %v4059_v60 = vld [vmem:[%s5005_s4] ss:$0 sm:$0xff] }
  0xc7   :  { %3523 = vmatmul.msk.f32.gmra.mxu1 %vm1100_vm2, %v968_v62  ;;  %v68_v62 = vld [vmem:[%s5001_s0 + $0x100] sm:$0xff] }
  0xca   :  { %v603_v1 = vpop.f32.mrf.mxu0 }
  0xcb   :  { %v604_v3 = vadd.f32 %v3862_v26, %v603_v1 }
  0xcd   :  { %v969_v6 = vmax.f32 %v604_v3, 0.0  ;;  %3412 = vmatmul.msk.f32.gmra.mxu0 %vm170_vm1, %v61_v2 }
  0xcf   :  { %3524 = vmatmul.msk.f32.gmra.mxu1 %vm1100_vm2, %v969_v6 }
  0xd2   :  { %v606_v13 = vpop.f32.mrf.mxu0 }
  0xd3   :  { %v607_v15 = vadd.f32 %v3862_v26, %v606_v13 }
  0xd5   :  { %v970_v18 = vmax.f32 %v607_v15, 0.0  ;;  %3413 = vmatmul.msk.f32.gmra.mxu0 %vm170_vm1, %v62_v14 }
  0xd7   :  { %3525 = vmatmul.msk.f32.gmra.mxu1 %vm1100_vm2, %v970_v18 }
  0xda   :  { %v609_v25 = vpop.f32.mrf.mxu0 }
  0xdb   :  { %v610_v28 = vadd.f32 %v3862_v26, %v609_v25 }
  0xdd   :  { %v971_v31 = vmax.f32 %v610_v28, 0.0  ;;  %3414 = vmatmul.msk.f32.gmra.mxu0 %vm170_vm1, %v63_v27  ;;  %v72_v27 = vld [vmem:[%s5001_s0 + $0x120] sm:$0xff] }
  0xdf   :  { %3526 = vmatmul.msk.f32.gmra.mxu1 %vm1100_vm2, %v971_v31 }
  0xe2   :  { %v612_v38 = vpop.f32.mrf.mxu0 }
  0xe3   :  { %v613_v40 = vadd.f32 %v3862_v26, %v612_v38 }
  0xe5   :  { %v972_v43 = vmax.f32 %v613_v40, 0.0  ;;  %3415 = vmatmul.msk.f32.gmra.mxu0 %vm170_vm1, %v64_v39 }
  0xe7   :  { %3527 = vmatmul.msk.f32.gmra.mxu1 %vm1100_vm2, %v972_v43 }
  0xea   :  { %v615_v48 = vpop.f32.mrf.mxu0 }
  0xeb   :  { %v616_v50 = vadd.f32 %v3862_v26, %v615_v48  ;;  %v75_v48 = vld [vmem:[%s5001_s0 + $0x138] sm:$0xff] }
  0xed   :  { %v973_v51 = vmax.f32 %v616_v50, 0.0  ;;  %3416 = vmatmul.msk.f32.gmra.mxu0 %vm170_vm1, %v65_v49 }
  0xef   :  { %3528 = vmatmul.msk.f32.gmra.mxu1 %vm1100_vm2, %v973_v51 }
  0xf2   :  { %v618_v52 = vpop.f32.mrf.mxu0 }
  0xf3   :  { %v619_v54 = vadd.f32 %v3862_v26, %v618_v52 }
  0xf5   :  { %v974_v55 = vmax.f32 %v619_v54, 0.0  ;;  %3417 = vmatmul.msk.f32.gmra.mxu0 %vm170_vm1, %v66_v53 }
  0xf7   :  { %3529 = vmatmul.msk.f32.gmra.mxu1 %vm1100_vm2, %v974_v55  ;;  %v76_v55 = vld [vmem:[%s5001_s0 + $0x140] sm:$0xff] }
  0xfa   :  { %v621_v56 = vpop.f32.mrf.mxu0 }
  0xfb   :  { %v622_v58 = vadd.f32 %v3862_v26, %v621_v56 }
  0xfd   :  { %v975_v59 = vmax.f32 %v622_v58, 0.0  ;;  %3418 = vmatmul.msk.f32.gmra.mxu0 %vm170_vm1, %v67_v57 }
  0xff   :  { %3530 = vmatmul.msk.f32.gmra.mxu1 %vm1100_vm2, %v975_v59 }
 0x102   :  { %v624_v61 = vpop.f32.mrf.mxu0 }
 0x103   :  { %v625_v63 = vadd.f32 %v3862_v26, %v624_v61 }
 0x104   :  { %v1502_v0 = vpop.f32.mrf.mxu1 }
 0x105   :  { %v976_v1 = vmax.f32 %v625_v63, 0.0  ;;  %v1503_v2 = vadd.f32 %v4059_v60, %v1502_v0  ;;  %3419 = vmatmul.msk.f32.gmra.mxu0 %vm170_vm1, %v68_v62  ;;  %v77_v63 = vld [vmem:[%s5001_s0 + $0x148] sm:$0xff] }
 0x107   :  { %3531 = vmatmul.msk.f32.gmra.mxu1 %vm1100_vm2, %v976_v1  ;;  %v1886_v3 = vmax.f32 %v1503_v2, 0.0 }
 0x109   :  { %2062 = vmatmul.f32.vlgmr.msra.gmra.mxu2 %v1886_v3  ;;  %2463 = vmatmul.f32.vlgmr.msra.gmra.mxu3 %v1886_v3 }
 0x10a   :  { %v627_v4 = vpop.f32.mrf.mxu0 }
 0x10b   :  { %v628_v6 = vadd.f32 %v3862_v26, %v627_v4 }
 0x10c   :  { %v1505_v7 = vpop.f32.mrf.mxu1 }
 0x10d   :  { %v977_v8 = vmax.f32 %v628_v6, 0.0  ;;  %v1506_v9 = vadd.f32 %v4059_v60, %v1505_v7  ;;  %3420 = vmatmul.msk.f32.gmra.mxu0 %vm170_vm1, %v69_v5  ;;  %v78_v6 = vld [vmem:[%s5001_s0 + $0x150] sm:$0xff] }
 0x10f   :  { %3532 = vmatmul.msk.f32.gmra.mxu1 %vm1100_vm2, %v977_v8  ;;  %v1887_v10 = vmax.f32 %v1506_v9, 0.0 }
 0x111   :  { %2065 = vmatmul.f32.gmra.mxu2 %v1887_v10  ;;  %2466 = vmatmul.f32.gmra.mxu3 %v1887_v10 }
 0x112   :  { %v630_v11 = vpop.f32.mrf.mxu0 }
 0x113   :  { %v631_v13 = vadd.f32 %v3862_v26, %v630_v11 }
 0x114   :  { %v1508_v14 = vpop.f32.mrf.mxu1 }
 0x115   :  { %v978_v15 = vmax.f32 %v631_v13, 0.0  ;;  %v1509_v16 = vadd.f32 %v4059_v60, %v1508_v14  ;;  %3421 = vmatmul.msk.f32.gmra.mxu0 %vm170_vm1, %v70_v12  ;;  %v79_v13 = vld [vmem:[%s5001_s0 + $0x158] sm:$0xff] }
 0x117   :  { %3533 = vmatmul.msk.f32.gmra.mxu1 %vm1100_vm2, %v978_v15  ;;  %v1888_v17 = vmax.f32 %v1509_v16, 0.0 }
 0x119   :  { %2068 = vmatmul.f32.gmra.mxu2 %v1888_v17  ;;  %2469 = vmatmul.f32.gmra.mxu3 %v1888_v17 }
 0x11a   :  { %v633_v18 = vpop.f32.mrf.mxu0 }
 0x11b   :  { %v634_v20 = vadd.f32 %v3862_v26, %v633_v18 }
 0x11c   :  { %v1511_v21 = vpop.f32.mrf.mxu1 }
 0x11d   :  { %v979_v22 = vmax.f32 %v634_v20, 0.0  ;;  %v1512_v23 = vadd.f32 %v4059_v60, %v1511_v21  ;;  %3422 = vmatmul.msk.f32.gmra.mxu0 %vm170_vm1, %v71_v19  ;;  %v80_v20 = vld [vmem:[%s5001_s0 + $0x160] sm:$0xff] }
 0x11f   :  { %3534 = vmatmul.msk.f32.gmra.mxu1 %vm1100_vm2, %v979_v22  ;;  %v1889_v24 = vmax.f32 %v1512_v23, 0.0 }
 0x121   :  { %2071 = vmatmul.f32.gmra.mxu2 %v1889_v24  ;;  %2472 = vmatmul.f32.gmra.mxu3 %v1889_v24 }
 0x122   :  { %v636_v25 = vpop.f32.mrf.mxu0 }
 0x123   :  { %v637_v28 = vadd.f32 %v3862_v26, %v636_v25 }
 0x124   :  { %v1514_v29 = vpop.f32.mrf.mxu1 }
 0x125   :  { %v980_v30 = vmax.f32 %v637_v28, 0.0  ;;  %v1515_v31 = vadd.f32 %v4059_v60, %v1514_v29  ;;  %3423 = vmatmul.msk.f32.gmra.mxu0 %vm170_vm1, %v72_v27  ;;  %v81_v28 = vld [vmem:[%s5001_s0 + $0x168] sm:$0xff] }
 0x127   :  { %3535 = vmatmul.msk.f32.gmra.mxu1 %vm1100_vm2, %v980_v30  ;;  %v1890_v32 = vmax.f32 %v1515_v31, 0.0 }
 0x129   :  { %2074 = vmatmul.f32.gmra.mxu2 %v1890_v32  ;;  %2475 = vmatmul.f32.gmra.mxu3 %v1890_v32 }
 0x12a   :  { %v639_v33 = vpop.f32.mrf.mxu0 }
 0x12b   :  { %v640_v35 = vadd.f32 %v3862_v26, %v639_v33 }
 0x12c   :  { %v1517_v36 = vpop.f32.mrf.mxu1 }
 0x12d   :  { %v981_v37 = vmax.f32 %v640_v35, 0.0  ;;  %v1518_v38 = vadd.f32 %v4059_v60, %v1517_v36  ;;  %3424 = vmatmul.msk.f32.gmra.mxu0 %vm170_vm1, %v73_v34  ;;  %v82_v35 = vld [vmem:[%s5001_s0 + $0x170] sm:$0xff] }
 0x12f   :  { %3536 = vmatmul.msk.f32.gmra.mxu1 %vm1100_vm2, %v981_v37  ;;  %v1891_v39 = vmax.f32 %v1518_v38, 0.0 }
 0x131   :  { %2077 = vmatmul.f32.gmra.mxu2 %v1891_v39  ;;  %2478 = vmatmul.f32.gmra.mxu3 %v1891_v39 }
 0x132   :  { %v642_v40 = vpop.f32.mrf.mxu0 }
 0x133   :  { %v643_v42 = vadd.f32 %v3862_v26, %v642_v40 }
 0x134   :  { %v1520_v43 = vpop.f32.mrf.mxu1 }
 0x135   :  { %v982_v44 = vmax.f32 %v643_v42, 0.0  ;;  %v1521_v45 = vadd.f32 %v4059_v60, %v1520_v43  ;;  %3425 = vmatmul.msk.f32.gmra.mxu0 %vm170_vm1, %v74_v41  ;;  %v3221_v41 = vld [vmem:[%s5008_s7 + $0x78] sm:$0xff] }
 0x136   :  { %3295 = vmatpush.msrb.mxu0 %v3221_v41  ;;  %v83_v43 = vld [vmem:[%s5001_s0 + $0x178] sm:$0xff] }
 0x137   :  { %3537 = vmatmul.msk.f32.gmra.mxu1 %vm1100_vm2, %v982_v44  ;;  %v1892_v46 = vmax.f32 %v1521_v45, 0.0 }
 0x139   :  { %2080 = vmatmul.f32.gmra.mxu2 %v1892_v46  ;;  %2481 = vmatmul.f32.gmra.mxu3 %v1892_v46 }
 0x13a   :  { %v645_v47 = vpop.f32.mrf.mxu0 }
 0x13b   :  { %v646_v49 = vadd.f32 %v3862_v26, %v645_v47 }
 0x13c   :  { %v1523_v50 = vpop.f32.mrf.mxu1 }
 0x13d   :  { %v983_v51 = vmax.f32 %v646_v49, 0.0  ;;  %v1524_v52 = vadd.f32 %v4059_v60, %v1523_v50  ;;  %3426 = vmatmul.msk.f32.gmra.mxu0 %vm170_vm1, %v75_v48  ;;  %v3237_v48 = vld [vmem:[%s5008_s7 + $0xf8] sm:$0xff] }
 0x13e   :  { %3315 = vmatpush.msrb.mxu1 %v3237_v48 }
 0x13f   :  { %3538 = vmatmul.msk.f32.gmra.mxu1 %vm1100_vm2, %v983_v51  ;;  %v1893_v53 = vmax.f32 %v1524_v52, 0.0  ;;  %v84_v51 = vld [vmem:[%s5001_s0 + $0x180] sm:$0xff] }
 0x141   :  { %2083 = vmatmul.f32.gmra.mxu2 %v1893_v53  ;;  %2484 = vmatmul.f32.gmra.mxu3 %v1893_v53 }
 0x142   :  { %v648_v54 = vpop.f32.mrf.mxu0 }
 0x143   :  { %v649_v56 = vadd.f32 %v3862_v26, %v648_v54 }
 0x144   :  { %v1526_v57 = vpop.f32.mrf.mxu1 }
 0x145   :  { %v984_v58 = vmax.f32 %v649_v56, 0.0  ;;  %v1527_v59 = vadd.f32 %v4059_v60, %v1526_v57  ;;  %3427 = vmatmul.msk.f32.gmra.mxu0 %vm170_vm1, %v76_v55 }
 0x147   :  { %3539 = vmatmul.msk.f32.gmra.mxu1 %vm1100_vm2, %v984_v58  ;;  %v1894_v61 = vmax.f32 %v1527_v59, 0.0  ;;  %v85_v58 = vld [vmem:[%s5001_s0 + $0x188] sm:$0xff] }
 0x149   :  { %2086 = vmatmul.f32.gmra.mxu2 %v1894_v61  ;;  %2487 = vmatmul.f32.gmra.mxu3 %v1894_v61 }
 0x14a   :  { %v651_v62 = vpop.f32.mrf.mxu0 }
 0x14b   :  { %v652_v0 = vadd.f32 %v3862_v26, %v651_v62 }
 0x14c   :  { %v1529_v1 = vpop.f32.mrf.mxu1 }
 0x14d   :  { %v985_v2 = vmax.f32 %v652_v0, 0.0  ;;  %v1530_v3 = vadd.f32 %v4059_v60, %v1529_v1  ;;  %3428 = vmatmul.msk.f32.gmra.mxu0 %vm170_vm1, %v77_v63 }
 0x14f   :  { %3540 = vmatmul.msk.f32.gmra.mxu1 %vm1100_vm2, %v985_v2  ;;  %v1895_v4 = vmax.f32 %v1530_v3, 0.0 }
 0x151   :  { %2089 = vmatmul.f32.gmra.mxu2 %v1895_v4  ;;  %2490 = vmatmul.f32.gmra.mxu3 %v1895_v4  ;;  %v86_v4 = vld [vmem:[%s5001_s0 + $0x190] sm:$0xff] }
 0x152   :  { %v654_v5 = vpop.f32.mrf.mxu0 }
 0x153   :  { %v655_v7 = vadd.f32 %v3862_v26, %v654_v5 }
 0x154   :  { %v1532_v8 = vpop.f32.mrf.mxu1 }
 0x155   :  { %v986_v9 = vmax.f32 %v655_v7, 0.0  ;;  %v1533_v10 = vadd.f32 %v4059_v60, %v1532_v8  ;;  %3429 = vmatmul.msk.f32.gmra.mxu0 %vm170_vm1, %v78_v6 }
 0x157   :  { %3541 = vmatmul.msk.f32.gmra.mxu1 %vm1100_vm2, %v986_v9  ;;  %v1896_v11 = vmax.f32 %v1533_v10, 0.0 }
 0x159   :  { %2092 = vmatmul.f32.gmra.mxu2 %v1896_v11  ;;  %2493 = vmatmul.f32.gmra.mxu3 %v1896_v11 }
 0x15a   :  { %v657_v12 = vpop.f32.mrf.mxu0 }
 0x15b   :  { %v658_v14 = vadd.f32 %v3862_v26, %v657_v12 }
 0x15c   :  { %v1535_v15 = vpop.f32.mrf.mxu1 }
 0x15d   :  { %v987_v16 = vmax.f32 %v658_v14, 0.0  ;;  %v1536_v17 = vadd.f32 %v4059_v60, %v1535_v15  ;;  %3430 = vmatmul.msk.f32.gmra.mxu0 %vm170_vm1, %v79_v13  ;;  %v87_v15 = vld [vmem:[%s5001_s0 + $0x198] sm:$0xff] }
 0x15f   :  { %3542 = vmatmul.msk.f32.gmra.mxu1 %vm1100_vm2, %v987_v16  ;;  %v1897_v18 = vmax.f32 %v1536_v17, 0.0 }
 0x161   :  { %2095 = vmatmul.f32.gmra.mxu2 %v1897_v18  ;;  %2496 = vmatmul.f32.gmra.mxu3 %v1897_v18 }
 0x162   :  { %v660_v19 = vpop.f32.mrf.mxu0 }
 0x163   :  { %v661_v21 = vadd.f32 %v3862_v26, %v660_v19 }
 0x164   :  { %v1538_v22 = vpop.f32.mrf.mxu1 }
 0x165   :  { %v988_v23 = vmax.f32 %v661_v21, 0.0  ;;  %v1539_v24 = vadd.f32 %v4059_v60, %v1538_v22  ;;  %3431 = vmatmul.msk.f32.gmra.mxu0 %vm170_vm1, %v80_v20 }
 0x167   :  { %3543 = vmatmul.msk.f32.gmra.mxu1 %vm1100_vm2, %v988_v23  ;;  %v1898_v25 = vmax.f32 %v1539_v24, 0.0 }
 0x169   :  { %2098 = vmatmul.f32.gmra.mxu2 %v1898_v25  ;;  %2499 = vmatmul.f32.gmra.mxu3 %v1898_v25 }
 0x16a   :  { %v663_v27 = vpop.f32.mrf.mxu0 }
 0x16b   :  { %v664_v29 = vadd.f32 %v3862_v26, %v663_v27  ;;  %v88_v27 = vld [vmem:[%s5001_s0 + $0x1a0] sm:$0xff] }
 0x16c   :  { %v1541_v30 = vpop.f32.mrf.mxu1 }
 0x16d   :  { %v989_v31 = vmax.f32 %v664_v29, 0.0  ;;  %v1542_v32 = vadd.f32 %v4059_v60, %v1541_v30  ;;  %3432 = vmatmul.msk.f32.gmra.mxu0 %vm170_vm1, %v81_v28 }
 0x16f   :  { %3544 = vmatmul.msk.f32.gmra.mxu1 %vm1100_vm2, %v989_v31  ;;  %v1899_v33 = vmax.f32 %v1542_v32, 0.0 }
 0x171   :  { %2101 = vmatmul.f32.gmra.mxu2 %v1899_v33  ;;  %2502 = vmatmul.f32.gmra.mxu3 %v1899_v33 }
 0x172   :  { %v666_v34 = vpop.f32.mrf.mxu0 }
 0x173   :  { %v667_v36 = vadd.f32 %v3862_v26, %v666_v34 }
 0x174   :  { %v1544_v37 = vpop.f32.mrf.mxu1 }
 0x175   :  { %v990_v38 = vmax.f32 %v667_v36, 0.0  ;;  %v1545_v39 = vadd.f32 %v4059_v60, %v1544_v37  ;;  %3433 = vmatmul.msk.f32.gmra.mxu0 %vm170_vm1, %v82_v35 }
 0x177   :  { %3545 = vmatmul.msk.f32.gmra.mxu1 %vm1100_vm2, %v990_v38  ;;  %v1900_v40 = vmax.f32 %v1545_v39, 0.0  ;;  %v89_v38 = vld [vmem:[%s5001_s0 + $0x1a8] sm:$0xff] }
 0x179   :  { %2104 = vmatmul.f32.gmra.mxu2 %v1900_v40  ;;  %2505 = vmatmul.f32.gmra.mxu3 %v1900_v40 }
 0x17a   :  { %v669_v42 = vpop.f32.mrf.mxu0 }
 0x17b   :  { %v670_v44 = vadd.f32 %v3862_v26, %v669_v42 }
 0x17c   :  { %v1547_v45 = vpop.f32.mrf.mxu1 }
 0x17d   :  { %v991_v46 = vmax.f32 %v670_v44, 0.0  ;;  %v1548_v47 = vadd.f32 %v4059_v60, %v1547_v45  ;;  %3434 = vmatmul.msk.f32.gmra.mxu0 %vm170_vm1, %v83_v43 }
 0x17f   :  { %3546 = vmatmul.msk.f32.gmra.mxu1 %vm1100_vm2, %v991_v46  ;;  %v1901_v49 = vmax.f32 %v1548_v47, 0.0 }
 0x181   :  { %2107 = vmatmul.f32.gmra.mxu2 %v1901_v49  ;;  %2508 = vmatmul.f32.gmra.mxu3 %v1901_v49  ;;  %v90_v49 = vld [vmem:[%s5001_s0 + $0x1b0] sm:$0xff] }
 0x182   :  { %v672_v50 = vpop.f32.mrf.mxu0 }
 0x183   :  { %v673_v52 = vadd.f32 %v3862_v26, %v672_v50 }
 0x184   :  { %v1550_v53 = vpop.f32.mrf.mxu1 }
 0x185   :  { %v992_v54 = vmax.f32 %v673_v52, 0.0  ;;  %v1551_v55 = vadd.f32 %v4059_v60, %v1550_v53  ;;  %3435 = vmatmul.msk.f32.gmra.mxu0 %vm170_vm1, %v84_v51 }
 0x187   :  { %3547 = vmatmul.msk.f32.gmra.mxu1 %vm1100_vm2, %v992_v54  ;;  %v1902_v56 = vmax.f32 %v1551_v55, 0.0 }
 0x189   :  { %2110 = vmatmul.f32.gmra.mxu2 %v1902_v56  ;;  %2511 = vmatmul.f32.gmra.mxu3 %v1902_v56 }
 0x18a   :  { %v675_v57 = vpop.f32.mrf.mxu0 }
 0x18b   :  { %v676_v59 = vadd.f32 %v3862_v26, %v675_v57 }
 0x18c   :  { %v1553_v61 = vpop.f32.mrf.mxu1  ;;  %v2063_v62 = vpop.f32.mrf.mxu2 }
 0x18d   :  { %v993_v63 = vmax.f32 %v676_v59, 0.0  ;;  %v1554_v0 = vadd.f32 %v4059_v60, %v1553_v61  ;;  %v2464_v1 = vpop.f32.mrf.mxu3  ;;  %3436 = vmatmul.msk.f32.gmra.mxu0 %vm170_vm1, %v85_v58  ;;  %v3220_v59 = vld [vmem:[%s5008_s7 + $0x70] sm:$0xff] }
 0x18e   :  { %3296 = vmatpush.msrb.mxu0 %v3220_v59 }
 0x18f   :  { %3548 = vmatmul.msk.f32.gmra.mxu1 %vm1100_vm2, %v993_v63  ;;  %v1903_v2 = vmax.f32 %v1554_v0, 0.0 }
 0x191   :  { %2113 = vmatmul.f32.gmra.mxu2 %v1903_v2  ;;  %2514 = vmatmul.f32.gmra.mxu3 %v1903_v2 }
 0x192   :  { %v678_v3 = vpop.f32.mrf.mxu0 }
 0x193   :  { %v679_v5 = vadd.f32 %v3862_v26, %v678_v3 }
 0x194   :  { %v1556_v6 = vpop.f32.mrf.mxu1  ;;  %v2066_v7 = vpop.f32.mrf.mxu2 }
 0x195   :  { %v994_v8 = vmax.f32 %v679_v5, 0.0  ;;  %v1557_v9 = vadd.f32 %v4059_v60, %v1556_v6  ;;  %v2848_v10 = vmax.f32 %v2063_v62, %v2066_v7  ;;  %v2467_v11 = vpop.f32.mrf.mxu3  ;;  %3437 = vmatmul.msk.f32.gmra.mxu0 %vm170_vm1, %v86_v4  ;;  %v91_v62 = vld [vmem:[%s5001_s0 + $0x1b8] sm:$0xff]  ;;  %v3236_v6 = vld [vmem:[%s5008_s7 + $0xf0] sm:$0xff] }
 0x196   :  { %v2869_v12 = vmax.f32 %v2464_v1, %v2467_v11  ;;  %3316 = vmatpush.msrb.mxu1 %v3236_v6 }
 0x197   :  { %3549 = vmatmul.msk.f32.gmra.mxu1 %vm1100_vm2, %v994_v8  ;;  %v1904_v13 = vmax.f32 %v1557_v9, 0.0 }
 0x199   :  { %2116 = vmatmul.f32.gmra.mxu2 %v1904_v13  ;;  %2517 = vmatmul.f32.gmra.mxu3 %v1904_v13 }
 0x19a   :  { %v681_v14 = vpop.f32.mrf.mxu0 }
 0x19b   :  { %v682_v16 = vadd.f32 %v3862_v26, %v681_v14 }
 0x19c   :  { %v1559_v17 = vpop.f32.mrf.mxu1  ;;  %v2069_v18 = vpop.f32.mrf.mxu2 }
 0x19d   :  { %v995_v19 = vmax.f32 %v682_v16, 0.0  ;;  %v1560_v20 = vadd.f32 %v4059_v60, %v1559_v17  ;;  %v2849_v21 = vmax.f32 %v2848_v10, %v2069_v18  ;;  %v2470_v22 = vpop.f32.mrf.mxu3  ;;  %3438 = vmatmul.msk.f32.gmra.mxu0 %vm170_vm1, %v87_v15  ;;  %v92_v10 = vld [vmem:[%s5001_s0 + $0x1c0] sm:$0xff] }
 0x19e   :  { %v2870_v23 = vmax.f32 %v2869_v12, %v2470_v22 }
 0x19f   :  { %3550 = vmatmul.msk.f32.gmra.mxu1 %vm1100_vm2, %v995_v19  ;;  %v1905_v24 = vmax.f32 %v1560_v20, 0.0 }
 0x1a1   :  { %2119 = vmatmul.f32.gmra.mxu2 %v1905_v24  ;;  %2520 = vmatmul.f32.gmra.mxu3 %v1905_v24 }
 0x1a2   :  { %v684_v25 = vpop.f32.mrf.mxu0 }
 0x1a3   :  { %v685_v28 = vadd.f32 %v3862_v26, %v684_v25 }
 0x1a4   :  { %v1562_v29 = vpop.f32.mrf.mxu1  ;;  %v2072_v30 = vpop.f32.mrf.mxu2 }
 0x1a5   :  { %v996_v31 = vmax.f32 %v685_v28, 0.0  ;;  %v1563_v32 = vadd.f32 %v4059_v60, %v1562_v29  ;;  %v2850_v33 = vmax.f32 %v2849_v21, %v2072_v30  ;;  %v2473_v34 = vpop.f32.mrf.mxu3  ;;  %3439 = vmatmul.msk.f32.gmra.mxu0 %vm170_vm1, %v88_v27  ;;  %v93_v21 = vld [vmem:[%s5001_s0 + $0x1c8] sm:$0xff] }
 0x1a6   :  { %v2871_v35 = vmax.f32 %v2870_v23, %v2473_v34 }
 0x1a7   :  { %3551 = vmatmul.msk.f32.gmra.mxu1 %vm1100_vm2, %v996_v31  ;;  %v1906_v36 = vmax.f32 %v1563_v32, 0.0 }
 0x1a9   :  { %2122 = vmatmul.f32.gmra.mxu2 %v1906_v36  ;;  %2523 = vmatmul.f32.gmra.mxu3 %v1906_v36 }
 0x1aa   :  { %v687_v37 = vpop.f32.mrf.mxu0 }
 0x1ab   :  { %v688_v39 = vadd.f32 %v3862_v26, %v687_v37 }
 0x1ac   :  { %v1565_v40 = vpop.f32.mrf.mxu1  ;;  %v2075_v41 = vpop.f32.mrf.mxu2 }
 0x1ad   :  { %v997_v42 = vmax.f32 %v688_v39, 0.0  ;;  %v1566_v43 = vadd.f32 %v4059_v60, %v1565_v40  ;;  %v2851_v44 = vmax.f32 %v2850_v33, %v2075_v41  ;;  %v2476_v45 = vpop.f32.mrf.mxu3  ;;  %3440 = vmatmul.msk.f32.gmra.mxu0 %vm170_vm1, %v89_v38  ;;  %v94_v33 = vld [vmem:[%s5001_s0 + $0x1d0] sm:$0xff] }
 0x1ae   :  { %v2872_v46 = vmax.f32 %v2871_v35, %v2476_v45 }
 0x1af   :  { %3552 = vmatmul.msk.f32.gmra.mxu1 %vm1100_vm2, %v997_v42  ;;  %v1907_v47 = vmax.f32 %v1566_v43, 0.0 }
 0x1b1   :  { %2125 = vmatmul.f32.gmra.mxu2 %v1907_v47  ;;  %2526 = vmatmul.f32.gmra.mxu3 %v1907_v47 }
 0x1b2   :  { %v690_v48 = vpop.f32.mrf.mxu0 }
 0x1b3   :  { %v691_v50 = vadd.f32 %v3862_v26, %v690_v48 }
 0x1b4   :  { %v1568_v51 = vpop.f32.mrf.mxu1  ;;  %v2078_v52 = vpop.f32.mrf.mxu2 }
 0x1b5   :  { %v998_v53 = vmax.f32 %v691_v50, 0.0  ;;  %v1569_v54 = vadd.f32 %v4059_v60, %v1568_v51  ;;  %v2852_v55 = vmax.f32 %v2851_v44, %v2078_v52  ;;  %v2479_v56 = vpop.f32.mrf.mxu3  ;;  %3441 = vmatmul.msk.f32.gmra.mxu0 %vm170_vm1, %v90_v49  ;;  %v95_v44 = vld [vmem:[%s5001_s0 + $0x1d8] sm:$0xff] }
 0x1b6   :  { %v2873_v57 = vmax.f32 %v2872_v46, %v2479_v56 }
 0x1b7   :  { %3553 = vmatmul.msk.f32.gmra.mxu1 %vm1100_vm2, %v998_v53  ;;  %v1908_v58 = vmax.f32 %v1569_v54, 0.0 }
 0x1b9   :  { %2128 = vmatmul.f32.gmra.mxu2 %v1908_v58  ;;  %2529 = vmatmul.f32.gmra.mxu3 %v1908_v58 }
 0x1ba   :  { %v693_v61 = vpop.f32.mrf.mxu0 }
 0x1bb   :  { %v694_v63 = vadd.f32 %v3862_v26, %v693_v61 }
 0x1bc   :  { %v1571_v0 = vpop.f32.mrf.mxu1  ;;  %v2081_v1 = vpop.f32.mrf.mxu2 }
 0x1bd   :  { %v999_v2 = vmax.f32 %v694_v63, 0.0  ;;  %v1572_v3 = vadd.f32 %v4059_v60, %v1571_v0  ;;  %v2853_v4 = vmax.f32 %v2852_v55, %v2081_v1  ;;  %v2482_v5 = vpop.f32.mrf.mxu3  ;;  %3442 = vmatmul.msk.f32.gmra.mxu0 %vm170_vm1, %v91_v62  ;;  %v4275_v55 = vld [vmem:[%s5003_s2] ss:$0 sm:$0xff] }
 0x1be   :  { %v2874_v7 = vmax.f32 %v2873_v57, %v2482_v5 }
 0x1bf   :  { %3554 = vmatmul.msk.f32.gmra.mxu1 %vm1100_vm2, %v999_v2  ;;  %v1909_v8 = vmax.f32 %v1572_v3, 0.0  ;;  %v97_v3 = vld [vmem:[%s5001_s0 + $0x1e8] sm:$0xff] }
 0x1c1   :  { %2131 = vmatmul.f32.gmra.mxu2 %v1909_v8  ;;  %2532 = vmatmul.f32.gmra.mxu3 %v1909_v8 }
 0x1c2   :  { %v696_v9 = vpop.f32.mrf.mxu0 }
 0x1c3   :  { %v697_v11 = vadd.f32 %v3862_v26, %v696_v9 }
 0x1c4   :  { %v1574_v12 = vpop.f32.mrf.mxu1  ;;  %v2084_v13 = vpop.f32.mrf.mxu2 }
 0x1c5   :  { %v1000_v14 = vmax.f32 %v697_v11, 0.0  ;;  %v1575_v15 = vadd.f32 %v4059_v60, %v1574_v12  ;;  %v2854_v16 = vmax.f32 %v2853_v4, %v2084_v13  ;;  %v2485_v17 = vpop.f32.mrf.mxu3  ;;  %3443 = vmatmul.msk.f32.gmra.mxu0 %vm170_vm1, %v92_v10 }
 0x1c6   :  { %v2875_v18 = vmax.f32 %v2874_v7, %v2485_v17 }
 0x1c7   :  { %v1910_v19 = vmax.f32 %v1575_v15, 0.0  ;;  %3555 = vmatmul.msk.f32.gmra.mxu1 %vm1100_vm2, %v1000_v14  ;;  %v98_v14 = vld [vmem:[%s5001_s0 + $0x1f0] sm:$0xff] }
 0x1c9   :  { %2134 = vmatmul.f32.gmra.mxu2 %v1910_v19  ;;  %2535 = vmatmul.f32.gmra.mxu3 %v1910_v19 }
 0x1ca   :  { %v699_v20 = vpop.f32.mrf.mxu0 }
 0x1cb   :  { %v700_v22 = vadd.f32 %v3862_v26, %v699_v20 }
 0x1cc   :  { %v1577_v23 = vpop.f32.mrf.mxu1  ;;  %v2087_v24 = vpop.f32.mrf.mxu2 }
 0x1cd   :  { %v1001_v25 = vmax.f32 %v700_v22, 0.0  ;;  %v1578_v27 = vadd.f32 %v4059_v60, %v1577_v23  ;;  %v2855_v28 = vmax.f32 %v2854_v16, %v2087_v24  ;;  %v2488_v29 = vpop.f32.mrf.mxu3  ;;  %3444 = vmatmul.msk.f32.gmra.mxu0 %vm170_vm1, %v93_v21  ;;  %v3219_v24 = vld [vmem:[%s5008_s7 + $0x68] sm:$0xff] }
 0x1ce   :  { %v2876_v30 = vmax.f32 %v2875_v18, %v2488_v29  ;;  %3297 = vmatpush.msrb.mxu0 %v3219_v24 }
 0x1cf   :  { %v1911_v31 = vmax.f32 %v1578_v27, 0.0  ;;  %3556 = vmatmul.msk.f32.gmra.mxu1 %vm1100_vm2, %v1001_v25  ;;  %v99_v27 = vld [vmem:[%s5001_s0 + $0x1f8] sm:$0xff] }
 0x1d1   :  { %2137 = vmatmul.f32.gmra.mxu2 %v1911_v31  ;;  %2538 = vmatmul.f32.gmra.mxu3 %v1911_v31 }
 0x1d2   :  { %v702_v32 = vpop.f32.mrf.mxu0 }
 0x1d3   :  { %v703_v34 = vadd.f32 %v3862_v26, %v702_v32 }
 0x1d4   :  { %v1580_v35 = vpop.f32.mrf.mxu1  ;;  %v2090_v36 = vpop.f32.mrf.mxu2 }
 0x1d5   :  { %v1002_v37 = vmax.f32 %v703_v34, 0.0  ;;  %v1581_v38 = vadd.f32 %v4059_v60, %v1580_v35  ;;  %v2856_v39 = vmax.f32 %v2855_v28, %v2090_v36  ;;  %v2491_v40 = vpop.f32.mrf.mxu3  ;;  %3445 = vmatmul.msk.f32.gmra.mxu0 %vm170_vm1, %v94_v33  ;;  %v3235_v35 = vld [vmem:[%s5008_s7 + $0xe8] sm:$0xff] }
 0x1d6   :  { %v2877_v41 = vmax.f32 %v2876_v30, %v2491_v40  ;;  %3317 = vmatpush.msrb.mxu1 %v3235_v35 }
 0x1d7   :  { %v1912_v42 = vmax.f32 %v1581_v38, 0.0  ;;  %3557 = vmatmul.msk.f32.gmra.mxu1 %vm1100_vm2, %v1002_v37 }
 0x1d9   :  { %2140 = vmatmul.f32.gmra.mxu2 %v1912_v42  ;;  %2541 = vmatmul.f32.gmra.mxu3 %v1912_v42 }
 0x1da   :  { %v705_v43 = vpop.f32.mrf.mxu0 }
 0x1db   :  { %v706_v45 = vadd.f32 %v3862_v26, %v705_v43  ;;  %v96_v26 = vld [vmem:[%s5001_s0 + $0x1e0] sm:$0xff] }
 0x1dc   :  { %v1583_v46 = vpop.f32.mrf.mxu1  ;;  %v2093_v47 = vpop.f32.mrf.mxu2 }
 0x1dd   :  { %v1003_v48 = vmax.f32 %v706_v45, 0.0  ;;  %v1584_v49 = vadd.f32 %v4059_v60, %v1583_v46  ;;  %v2857_v50 = vmax.f32 %v2856_v39, %v2093_v47  ;;  %v2494_v51 = vpop.f32.mrf.mxu3  ;;  %3446 = vmatmul.msk.f32.gmra.mxu0 %vm170_vm1, %v95_v44  ;;  %v100_v39 = vld [vmem:[%s5001_s0 + $0x200] sm:$0xff] }
 0x1de   :  { %v2878_v52 = vmax.f32 %v2877_v41, %v2494_v51 }
 0x1df   :  { %v1913_v53 = vmax.f32 %v1584_v49, 0.0  ;;  %3558 = vmatmul.msk.f32.gmra.mxu1 %vm1100_vm2, %v1003_v48 }
 0x1e1   :  { %2143 = vmatmul.f32.gmra.mxu2 %v1913_v53  ;;  %2544 = vmatmul.f32.gmra.mxu3 %v1913_v53 }
 0x1e2   :  { %v708_v54 = vpop.f32.mrf.mxu0 }
 0x1e3   :  { %v709_v56 = vadd.f32 %v4275_v55, %v708_v54 }
 0x1e4   :  { %v1586_v57 = vpop.f32.mrf.mxu1  ;;  %v2096_v58 = vpop.f32.mrf.mxu2 }
 0x1e5   :  { %v1004_v59 = vmax.f32 %v709_v56, 0.0  ;;  %v1587_v61 = vadd.f32 %v4059_v60, %v1586_v57  ;;  %v2858_v62 = vmax.f32 %v2857_v50, %v2096_v58  ;;  %v2497_v63 = vpop.f32.mrf.mxu3  ;;  %3447 = vmatmul.msk.f32.gmra.mxu0 %vm170_vm1, %v96_v26  ;;  %v101_v50 = vld [vmem:[%s5001_s0 + $0x208] sm:$0xff] }
 0x1e6   :  { %v2879_v0 = vmax.f32 %v2878_v52, %v2497_v63 }
 0x1e7   :  { %v1914_v1 = vmax.f32 %v1587_v61, 0.0  ;;  %3559 = vmatmul.msk.f32.gmra.mxu1 %vm1100_vm2, %v1004_v59  ;;  %v102_v59 = vld [vmem:[%s5001_s0 + $0x210] sm:$0xff] }
 0x1e9   :  { %2146 = vmatmul.f32.gmra.mxu2 %v1914_v1  ;;  %2547 = vmatmul.f32.gmra.mxu3 %v1914_v1 }
 0x1ea   :  { %v711_v2 = vpop.f32.mrf.mxu0 }
 0x1eb   :  { %v712_v4 = vadd.f32 %v4275_v55, %v711_v2 }
 0x1ec   :  { %v1589_v5 = vpop.f32.mrf.mxu1  ;;  %v2099_v6 = vpop.f32.mrf.mxu2 }
 0x1ed   :  { %v1005_v7 = vmax.f32 %v712_v4, 0.0  ;;  %v1590_v8 = vadd.f32 %v4059_v60, %v1589_v5  ;;  %v2859_v9 = vmax.f32 %v2858_v62, %v2099_v6  ;;  %v2500_v10 = vpop.f32.mrf.mxu3  ;;  %3448 = vmatmul.msk.f32.gmra.mxu0 %vm170_vm1, %v97_v3 }
 0x1ee   :  { %v2880_v11 = vmax.f32 %v2879_v0, %v2500_v10 }
 0x1ef   :  { %v1915_v12 = vmax.f32 %v1590_v8, 0.0  ;;  %3560 = vmatmul.msk.f32.gmra.mxu1 %vm1100_vm2, %v1005_v7  ;;  %v103_v7 = vld [vmem:[%s5001_s0 + $0x218] sm:$0xff] }
 0x1f1   :  { %2149 = vmatmul.f32.gmra.mxu2 %v1915_v12  ;;  %2550 = vmatmul.f32.gmra.mxu3 %v1915_v12 }
 0x1f2   :  { %v714_v13 = vpop.f32.mrf.mxu0 }
 0x1f3   :  { %v715_v15 = vadd.f32 %v4275_v55, %v714_v13 }
 0x1f4   :  { %v1592_v16 = vpop.f32.mrf.mxu1  ;;  %v2102_v17 = vpop.f32.mrf.mxu2 }
 0x1f5   :  { %v1006_v18 = vmax.f32 %v715_v15, 0.0  ;;  %v1593_v19 = vadd.f32 %v4059_v60, %v1592_v16  ;;  %v2860_v20 = vmax.f32 %v2859_v9, %v2102_v17  ;;  %v2503_v21 = vpop.f32.mrf.mxu3  ;;  %3449 = vmatmul.msk.f32.gmra.mxu0 %vm170_vm1, %v98_v14 }
 0x1f6   :  { %v2881_v22 = vmax.f32 %v2880_v11, %v2503_v21 }
 0x1f7   :  { %v1916_v23 = vmax.f32 %v1593_v19, 0.0  ;;  %3561 = vmatmul.msk.f32.gmra.mxu1 %vm1100_vm2, %v1006_v18  ;;  %v104_v18 = vld [vmem:[%s5001_s0 + $0x220] sm:$0xff] }
 0x1f9   :  { %2152 = vmatmul.f32.gmra.mxu2 %v1916_v23  ;;  %2553 = vmatmul.f32.gmra.mxu3 %v1916_v23 }
 0x1fa   :  { %v717_v25 = vpop.f32.mrf.mxu0 }
 0x1fb   :  { %v718_v28 = vadd.f32 %v4275_v55, %v717_v25 }
 0x1fc   :  { %v1595_v29 = vpop.f32.mrf.mxu1  ;;  %v2105_v30 = vpop.f32.mrf.mxu2 }
 0x1fd   :  { %v1007_v31 = vmax.f32 %v718_v28, 0.0  ;;  %v1596_v32 = vadd.f32 %v4059_v60, %v1595_v29  ;;  %v2861_v33 = vmax.f32 %v2860_v20, %v2105_v30  ;;  %v2506_v34 = vpop.f32.mrf.mxu3  ;;  %3450 = vmatmul.msk.f32.gmra.mxu0 %vm170_vm1, %v99_v27  ;;  %v105_v30 = vld [vmem:[%s5001_s0 + $0x228] sm:$0xff] }
 0x1fe   :  { %v2882_v36 = vmax.f32 %v2881_v22, %v2506_v34 }
 0x1ff   :  { %v1917_v37 = vmax.f32 %v1596_v32, 0.0  ;;  %3562 = vmatmul.msk.f32.gmra.mxu1 %vm1100_vm2, %v1007_v31 }
 0x201   :  { %2155 = vmatmul.f32.gmra.mxu2 %v1917_v37  ;;  %2556 = vmatmul.f32.gmra.mxu3 %v1917_v37 }
 0x202   :  { %v720_v38 = vpop.f32.mrf.mxu0 }
 0x203   :  { %v721_v40 = vadd.f32 %v4275_v55, %v720_v38 }
 0x204   :  { %v1598_v41 = vpop.f32.mrf.mxu1  ;;  %v2108_v42 = vpop.f32.mrf.mxu2 }
 0x205   :  { %v1008_v43 = vmax.f32 %v721_v40, 0.0  ;;  %v1599_v44 = vadd.f32 %v4059_v60, %v1598_v41  ;;  %v4313_v45 = vmax.f32 %v2861_v33, %v2108_v42  ;;  %v2509_v46 = vpop.f32.mrf.mxu3  ;;  %3451 = vmatmul.msk.f32.gmra.mxu0 %vm170_vm1, %v100_v39  ;;  %v106_v41 = vld [vmem:[%s5001_s0 + $0x230] sm:$0xff] }
 0x206   :  { %v4316_v47 = vmax.f32 %v2882_v36, %v2509_v46  ;;  %v4361_v46 = vld [vmem:[%s5005_s4] ss:$0 sm:$0xff] }
 0x207   :  { %v1918_v48 = vmax.f32 %v1599_v44, 0.0  ;;  %3563 = vmatmul.msk.f32.gmra.mxu1 %vm1100_vm2, %v1008_v43 }
 0x209   :  { %2158 = vmatmul.f32.gmra.mxu2 %v1918_v48  ;;  %2559 = vmatmul.f32.gmra.mxu3 %v1918_v48 }
 0x20a   :  { %v723_v49 = vpop.f32.mrf.mxu0 }
 0x20b   :  { %v724_v51 = vadd.f32 %v4275_v55, %v723_v49 }
 0x20c   :  { %v1601_v52 = vpop.f32.mrf.mxu1  ;;  %v2111_v53 = vpop.f32.mrf.mxu2 }
 0x20d   :  { %v1009_v54 = vmax.f32 %v724_v51, 0.0  ;;  %v1602_v26 = vadd.f32 %v4059_v60, %v1601_v52  ;;  %v2512_v56 = vpop.f32.mrf.mxu3  ;;  %3452 = vmatmul.msk.f32.gmra.mxu0 %vm170_vm1, %v101_v50 }
 0x20f   :  { %v1919_v57 = vmax.f32 %v1602_v26, 0.0  ;;  %3564 = vmatmul.msk.f32.gmra.mxu1 %vm1100_vm2, %v1009_v54  ;;  %v107_v26 = vld [vmem:[%s5001_s0 + $0x238] sm:$0xff] }
 0x211   :  { %2161 = vmatmul.f32.gmra.mxu2 %v1919_v57  ;;  %2562 = vmatmul.f32.gmra.mxu3 %v1919_v57 }
 0x212   :  { %v726_v58 = vpop.f32.mrf.mxu0 }
 0x213   :  { %v727_v61 = vadd.f32 %v4275_v55, %v726_v58 }
 0x214   :  { %v1604_v62 = vpop.f32.mrf.mxu1  ;;  %v2114_v63 = vpop.f32.mrf.mxu2 }
 0x215   :  { %v1010_v0 = vmax.f32 %v727_v61, 0.0  ;;  %v1605_v1 = vadd.f32 %v4059_v60, %v1604_v62  ;;  %v2890_v2 = vmax.f32 %v2111_v53, %v2114_v63  ;;  %v2515_v3 = vpop.f32.mrf.mxu3  ;;  %3453 = vmatmul.msk.f32.gmra.mxu0 %vm170_vm1, %v102_v59  ;;  %v3218_v53 = vld [vmem:[%s5008_s7 + $0x60] sm:$0xff] }
 0x216   :  { %v2911_v4 = vmax.f32 %v2512_v56, %v2515_v3  ;;  %3298 = vmatpush.msrb.mxu0 %v3218_v53 }
 0x217   :  { %v1920_v5 = vmax.f32 %v1605_v1, 0.0  ;;  %3565 = vmatmul.msk.f32.gmra.mxu1 %vm1100_vm2, %v1010_v0  ;;  %v3234_v0 = vld [vmem:[%s5008_s7 + $0xe0] sm:$0xff] }
 0x218   :  { %3318 = vmatpush.msrb.mxu1 %v3234_v0 }
 0x219   :  { %2164 = vmatmul.f32.gmra.mxu2 %v1920_v5  ;;  %2565 = vmatmul.f32.gmra.mxu3 %v1920_v5 }
 0x21a   :  { %v729_v6 = vpop.f32.mrf.mxu0 }
 0x21b   :  { %v730_v8 = vadd.f32 %v4275_v55, %v729_v6 }
 0x21c   :  { %v1607_v9 = vpop.f32.mrf.mxu1  ;;  %v2117_v10 = vpop.f32.mrf.mxu2 }
 0x21d   :  { %v1011_v11 = vmax.f32 %v730_v8, 0.0  ;;  %v1608_v12 = vadd.f32 %v4059_v60, %v1607_v9  ;;  %v2891_v13 = vmax.f32 %v2890_v2, %v2117_v10  ;;  %v2518_v14 = vpop.f32.mrf.mxu3  ;;  %3454 = vmatmul.msk.f32.gmra.mxu0 %vm170_vm1, %v103_v7 }
 0x21e   :  { %v2912_v15 = vmax.f32 %v2911_v4, %v2518_v14  ;;  %v108_v4 = vld [vmem:[%s5001_s0 + $0x240] sm:$0xff] }
 0x21f   :  { %v1921_v16 = vmax.f32 %v1608_v12, 0.0  ;;  %3566 = vmatmul.msk.f32.gmra.mxu1 %vm1100_vm2, %v1011_v11 }
 0x221   :  { %2167 = vmatmul.f32.gmra.mxu2 %v1921_v16  ;;  %2568 = vmatmul.f32.gmra.mxu3 %v1921_v16 }
 0x222   :  { %v732_v17 = vpop.f32.mrf.mxu0 }
 0x223   :  { %v733_v19 = vadd.f32 %v4275_v55, %v732_v17 }
 0x224   :  { %v1610_v20 = vpop.f32.mrf.mxu1  ;;  %v2120_v21 = vpop.f32.mrf.mxu2 }
 0x225   :  { %v1012_v22 = vmax.f32 %v733_v19, 0.0  ;;  %v1611_v23 = vadd.f32 %v4059_v60, %v1610_v20  ;;  %v2892_v24 = vmax.f32 %v2891_v13, %v2120_v21  ;;  %v2521_v25 = vpop.f32.mrf.mxu3  ;;  %3455 = vmatmul.msk.f32.gmra.mxu0 %vm170_vm1, %v104_v18 }
 0x226   :  { %v2913_v27 = vmax.f32 %v2912_v15, %v2521_v25  ;;  %v109_v15 = vld [vmem:[%s5001_s0 + $0x248] sm:$0xff] }
 0x227   :  { %v1922_v28 = vmax.f32 %v1611_v23, 0.0  ;;  %3567 = vmatmul.msk.f32.gmra.mxu1 %vm1100_vm2, %v1012_v22 }
 0x229   :  { %2170 = vmatmul.f32.gmra.mxu2 %v1922_v28  ;;  %2571 = vmatmul.f32.gmra.mxu3 %v1922_v28 }
 0x22a   :  { %v735_v29 = vpop.f32.mrf.mxu0 }
 0x22b   :  { %v736_v31 = vadd.f32 %v4275_v55, %v735_v29 }
 0x22c   :  { %v1613_v32 = vpop.f32.mrf.mxu1  ;;  %v2123_v33 = vpop.f32.mrf.mxu2 }
 0x22d   :  { %v1013_v34 = vmax.f32 %v736_v31, 0.0  ;;  %v1614_v35 = vadd.f32 %v4059_v60, %v1613_v32  ;;  %v2893_v36 = vmax.f32 %v2892_v24, %v2123_v33  ;;  %v2524_v37 = vpop.f32.mrf.mxu3  ;;  %3456 = vmatmul.msk.f32.gmra.mxu0 %vm170_vm1, %v105_v30 }
 0x22e   :  { %v2914_v38 = vmax.f32 %v2913_v27, %v2524_v37  ;;  %v110_v27 = vld [vmem:[%s5001_s0 + $0x250] sm:$0xff] }
 0x22f   :  { %v1923_v39 = vmax.f32 %v1614_v35, 0.0  ;;  %3568 = vmatmul.msk.f32.gmra.mxu1 %vm1100_vm2, %v1013_v34 }
 0x231   :  { %2173 = vmatmul.f32.gmra.mxu2 %v1923_v39  ;;  %2574 = vmatmul.f32.gmra.mxu3 %v1923_v39 }
 0x232   :  { %v738_v40 = vpop.f32.mrf.mxu0 }
 0x233   :  { %v739_v42 = vadd.f32 %v4275_v55, %v738_v40 }
 0x234   :  { %v1616_v43 = vpop.f32.mrf.mxu1  ;;  %v2126_v44 = vpop.f32.mrf.mxu2 }
 0x235   :  { %v1014_v60 = vmax.f32 %v739_v42, 0.0  ;;  %v1617_v48 = vadd.f32 %v4361_v46, %v1616_v43  ;;  %v2894_v49 = vmax.f32 %v2893_v36, %v2126_v44  ;;  %v2527_v50 = vpop.f32.mrf.mxu3  ;;  %3457 = vmatmul.msk.f32.gmra.mxu0 %vm170_vm1, %v106_v41 }
 0x236   :  { %v2915_v51 = vmax.f32 %v2914_v38, %v2527_v50  ;;  %v111_v38 = vld [vmem:[%s5001_s0 + $0x258] sm:$0xff] }
 0x237   :  { %v1924_v52 = vmax.f32 %v1617_v48, 0.0  ;;  %3569 = vmatmul.msk.f32.gmra.mxu1 %vm1100_vm2, %v1014_v60 }
 0x239   :  { %2176 = vmatmul.f32.gmra.mxu2 %v1924_v52  ;;  %2577 = vmatmul.f32.gmra.mxu3 %v1924_v52 }
 0x23a   :  { %v741_v54 = vpop.f32.mrf.mxu0 }
 0x23b   :  { %v742_v56 = vadd.f32 %v4275_v55, %v741_v54 }
 0x23c   :  { %v1619_v57 = vpop.f32.mrf.mxu1  ;;  %v2129_v58 = vpop.f32.mrf.mxu2 }
 0x23d   :  { %v1015_v59 = vmax.f32 %v742_v56, 0.0  ;;  %v1620_v61 = vadd.f32 %v4361_v46, %v1619_v57  ;;  %v2895_v62 = vmax.f32 %v2894_v49, %v2129_v58  ;;  %v2530_v63 = vpop.f32.mrf.mxu3  ;;  %3458 = vmatmul.msk.f32.gmra.mxu0 %vm170_vm1, %v107_v26 }
 0x23e   :  { %v2916_v1 = vmax.f32 %v2915_v51, %v2530_v63  ;;  %v112_v51 = vld [vmem:[%s5001_s0 + $0x260] sm:$0xff]  ;;  %v113_v63 = vld [vmem:[%s5001_s0 + $0x268] sm:$0xff] }
 0x23f   :  { %v1925_v2 = vmax.f32 %v1620_v61, 0.0  ;;  %3570 = vmatmul.msk.f32.gmra.mxu1 %vm1100_vm2, %v1015_v59 }
 0x241   :  { %2179 = vmatmul.f32.gmra.mxu2 %v1925_v2  ;;  %2580 = vmatmul.f32.gmra.mxu3 %v1925_v2 }
 0x242   :  { %v744_v3 = vpop.f32.mrf.mxu0 }
 0x243   :  { %v745_v5 = vadd.f32 %v4275_v55, %v744_v3 }
 0x244   :  { %v1622_v6 = vpop.f32.mrf.mxu1  ;;  %v2132_v7 = vpop.f32.mrf.mxu2 }
 0x245   :  { %v1016_v8 = vmax.f32 %v745_v5, 0.0  ;;  %v1623_v9 = vadd.f32 %v4361_v46, %v1622_v6  ;;  %v2896_v10 = vmax.f32 %v2895_v62, %v2132_v7  ;;  %v2533_v11 = vpop.f32.mrf.mxu3  ;;  %3459 = vmatmul.msk.f32.gmra.mxu0 %vm170_vm1, %v108_v4 }
 0x246   :  { %v2917_v12 = vmax.f32 %v2916_v1, %v2533_v11 }
 0x247   :  { %v1926_v13 = vmax.f32 %v1623_v9, 0.0  ;;  %3571 = vmatmul.msk.f32.gmra.mxu1 %vm1100_vm2, %v1016_v8 }
 0x249   :  { %2182 = vmatmul.f32.gmra.mxu2 %v1926_v13  ;;  %2583 = vmatmul.f32.gmra.mxu3 %v1926_v13 }
 0x24a   :  { %v747_v14 = vpop.f32.mrf.mxu0 }
 0x24b   :  { %v748_v16 = vadd.f32 %v4275_v55, %v747_v14 }
 0x24c   :  { %v1625_v17 = vpop.f32.mrf.mxu1  ;;  %v2135_v18 = vpop.f32.mrf.mxu2 }
 0x24d   :  { %v1017_v19 = vmax.f32 %v748_v16, 0.0  ;;  %v1626_v20 = vadd.f32 %v4361_v46, %v1625_v17  ;;  %v2897_v21 = vmax.f32 %v2896_v10, %v2135_v18  ;;  %v2536_v22 = vpop.f32.mrf.mxu3  ;;  %3460 = vmatmul.msk.f32.gmra.mxu0 %vm170_vm1, %v109_v15  ;;  %v114_v10 = vld [vmem:[%s5001_s0 + $0x270] sm:$0xff] }
 0x24e   :  { %v2918_v23 = vmax.f32 %v2917_v12, %v2536_v22  ;;  %v115_v22 = vld [vmem:[%s5001_s0 + $0x278] sm:$0xff] }
 0x24f   :  { %v1927_v24 = vmax.f32 %v1626_v20, 0.0  ;;  %3572 = vmatmul.msk.f32.gmra.mxu1 %vm1100_vm2, %v1017_v19  ;;  %v3217_v20 = vld [vmem:[%s5008_s7 + $0x58] sm:$0xff] }
 0x250   :  { %3299 = vmatpush.msrb.mxu0 %v3217_v20 }
 0x251   :  { %2185 = vmatmul.f32.gmra.mxu2 %v1927_v24  ;;  %2586 = vmatmul.f32.gmra.mxu3 %v1927_v24  ;;  %v2863_v24 = vrot.slane %v4313_v45, 4 }
 0x252   :  { %v750_v25 = vpop.f32.mrf.mxu0 }
 0x253   :  { %v751_v28 = vadd.f32 %v4275_v55, %v750_v25 }
 0x254   :  { %v1628_v29 = vpop.f32.mrf.mxu1  ;;  %v2138_v30 = vpop.f32.mrf.mxu2 }
 0x255   :  { %v1018_v31 = vmax.f32 %v751_v28, 0.0  ;;  %v1629_v32 = vadd.f32 %v4361_v46, %v1628_v29  ;;  %v2898_v33 = vmax.f32 %v2897_v21, %v2138_v30  ;;  %v2539_v34 = vpop.f32.mrf.mxu3  ;;  %3461 = vmatmul.msk.f32.gmra.mxu0 %vm170_vm1, %v110_v27 }
 0x256   :  { %v2919_v35 = vmax.f32 %v2918_v23, %v2539_v34 }
 0x257   :  { %v1928_v36 = vmax.f32 %v1629_v32, 0.0  ;;  %3573 = vmatmul.msk.f32.gmra.mxu1 %vm1100_vm2, %v1018_v31  ;;  %v3233_v32 = vld [vmem:[%s5008_s7 + $0xd8] sm:$0xff] }
 0x258   :  { %3319 = vmatpush.msrb.mxu1 %v3233_v32 }
 0x259   :  { %2188 = vmatmul.f32.gmra.mxu2 %v1928_v36  ;;  %2589 = vmatmul.f32.gmra.mxu3 %v1928_v36  ;;  %v2864_v36 = vmax.f32 %v4313_v45, %v2863_v24 }
 0x25a   :  { %v753_v37 = vpop.f32.mrf.mxu0 }
 0x25b   :  { %v754_v39 = vadd.f32 %v4275_v55, %v753_v37 }
 0x25c   :  { %v1631_v40 = vpop.f32.mrf.mxu1  ;;  %v2141_v41 = vpop.f32.mrf.mxu2 }
 0x25d   :  { %v1019_v42 = vmax.f32 %v754_v39, 0.0  ;;  %v1632_v43 = vadd.f32 %v4361_v46, %v1631_v40  ;;  %v2899_v44 = vmax.f32 %v2898_v33, %v2141_v41  ;;  %v2542_v60 = vpop.f32.mrf.mxu3  ;;  %3462 = vmatmul.msk.f32.gmra.mxu0 %vm170_vm1, %v111_v38  ;;  %v2884_v33 = vrot.slane %v4316_v47, 4  ;;  %v116_v39 = vld [vmem:[%s5001_s0 + $0x280] sm:$0xff] }
 0x25e   :  { %v2920_v48 = vmax.f32 %v2919_v35, %v2542_v60  ;;  %v2865_v41 = vrot.slane %v2864_v36, 2 }
 0x25f   :  { %v1929_v49 = vmax.f32 %v1632_v43, 0.0  ;;  %3574 = vmatmul.msk.f32.gmra.mxu1 %vm1100_vm2, %v1019_v42  ;;  %v2885_v37 = vmax.f32 %v4316_v47, %v2884_v33 }
 0x261   :  { %2191 = vmatmul.f32.gmra.mxu2 %v1929_v49  ;;  %2592 = vmatmul.f32.gmra.mxu3 %v1929_v49  ;;  %v2886_v45 = vrot.slane %v2885_v37, 2 }
 0x262   :  { %v756_v50 = vpop.f32.mrf.mxu0 }
 0x263   :  { %v757_v52 = vadd.f32 %v4275_v55, %v756_v50 }
 0x264   :  { %v1634_v53 = vpop.f32.mrf.mxu1  ;;  %v2144_v54 = vpop.f32.mrf.mxu2 }
 0x265   :  { %v1020_v26 = vmax.f32 %v757_v52, 0.0  ;;  %v1635_v56 = vadd.f32 %v4361_v46, %v1634_v53  ;;  %v2900_v57 = vmax.f32 %v2899_v44, %v2144_v54  ;;  %v2545_v58 = vpop.f32.mrf.mxu3  ;;  %3463 = vmatmul.msk.f32.gmra.mxu0 %vm170_vm1, %v112_v51  ;;  %v2866_v52 = vmax.f32 %v2864_v36, %v2865_v41 }
 0x266   :  { %v2921_v59 = vmax.f32 %v2920_v48, %v2545_v58  ;;  %v117_v58 = vld [vmem:[%s5001_s0 + $0x288] sm:$0xff] }
 0x267   :  { %v1930_v61 = vmax.f32 %v1635_v56, 0.0  ;;  %3575 = vmatmul.msk.f32.gmra.mxu1 %vm1100_vm2, %v1020_v26  ;;  %v2887_v26 = vmax.f32 %v2885_v37, %v2886_v45 }
 0x269   :  { %2194 = vmatmul.f32.gmra.mxu2 %v1930_v61  ;;  %2595 = vmatmul.f32.gmra.mxu3 %v1930_v61 }
 0x26a   :  { %v759_v62 = vpop.f32.mrf.mxu0 }
 0x26b   :  { %v760_v0 = vadd.f32 %v4275_v55, %v759_v62  ;;  %v2867_v62 = vrot.slane %v2866_v52, 1 }
 0x26c   :  { %v1637_v1 = vpop.f32.mrf.mxu1  ;;  %v2147_v2 = vpop.f32.mrf.mxu2 }
 0x26d   :  { %v1021_v3 = vmax.f32 %v760_v0, 0.0  ;;  %v1638_v4 = vadd.f32 %v4361_v46, %v1637_v1  ;;  %v2901_v5 = vmax.f32 %v2900_v57, %v2147_v2  ;;  %v2548_v6 = vpop.f32.mrf.mxu3  ;;  %3464 = vmatmul.msk.f32.gmra.mxu0 %vm170_vm1, %v113_v63  ;;  %v3184_v2 = vld [vmem:[%s5007_s6] sm:$0x3] }
 0x26e   :  { %v2922_v7 = vmax.f32 %v2921_v59, %v2548_v6 }
 0x26f   :  { %v1931_v8 = vmax.f32 %v1638_v4, 0.0  ;;  %3576 = vmatmul.msk.f32.gmra.mxu1 %vm1100_vm2, %v1021_v3 }
 0x271   :  { %2197 = vmatmul.f32.gmra.mxu2 %v1931_v8  ;;  %2598 = vmatmul.f32.gmra.mxu3 %v1931_v8 }
 0x272   :  { %v762_v9 = vpop.f32.mrf.mxu0 }
 0x273   :  { %v763_v11 = vadd.f32 %v4275_v55, %v762_v9 }
 0x274   :  { %v1640_v12 = vpop.f32.mrf.mxu1  ;;  %v2150_v13 = vpop.f32.mrf.mxu2 }
 0x275   :  { %v1022_v14 = vmax.f32 %v763_v11, 0.0  ;;  %v1641_v15 = vadd.f32 %v4361_v46, %v1640_v12  ;;  %v2902_v16 = vmax.f32 %v2901_v5, %v2150_v13  ;;  %v2551_v17 = vpop.f32.mrf.mxu3  ;;  %3465 = vmatmul.msk.f32.gmra.mxu0 %vm170_vm1, %v114_v10  ;;  %v2868_v11 = vmax.f32 %v2866_v52, %v2867_v62  ;;  %v121_v62 = vld [vmem:[%s5001_s0 + $0x2a8] sm:$0xff] }
 0x276   :  { %v2923_v18 = vmax.f32 %v2922_v7, %v2551_v17  ;;  %v2888_v7 = vrot.slane %v2887_v26, 1  ;;  %v4462_v12 = vperm.slane %v3184_v2, 0 }
 0x277   :  { %v1932_v19 = vmax.f32 %v1641_v15, 0.0  ;;  %3577 = vmatmul.msk.f32.gmra.mxu1 %vm1100_vm2, %v1022_v14 }
 0x278   :  { %v2889_v15 = vmax.f32 %v2887_v26, %v2888_v7 }
 0x279   :  { %2200 = vmatmul.f32.gmra.mxu2 %v1932_v19  ;;  %2601 = vmatmul.f32.gmra.mxu3 %v1932_v19  ;;  %v118_v19 = vld [vmem:[%s5001_s0 + $0x290] sm:$0xff] }
 0x27a   :  { %v765_v21 = vpop.f32.mrf.mxu0 }
 0x27b   :  { %v766_v23 = vadd.f32 %v4275_v55, %v765_v21 }
 0x27c   :  { %v1643_v25 = vpop.f32.mrf.mxu1  ;;  %v2153_v27 = vpop.f32.mrf.mxu2 }
 0x27d   :  { %v1023_v28 = vmax.f32 %v766_v23, 0.0  ;;  %v1644_v29 = vadd.f32 %v4361_v46, %v1643_v25  ;;  %v2903_v30 = vmax.f32 %v2902_v16, %v2153_v27  ;;  %v2554_v31 = vpop.f32.mrf.mxu3  ;;  %3466 = vmatmul.msk.f32.gmra.mxu0 %vm170_vm1, %v115_v22  ;;  %v4464_v16 = vperm.slane %v3184_v2, 1 }
 0x27e   :  { %v2924_v34 = vmax.f32 %v2923_v18, %v2554_v31  ;;  %v3190_v22 = vadd.f32 %v4462_v12, %v2868_v11 }
 0x27f   :  { %v1933_v35 = vmax.f32 %v1644_v29, 0.0  ;;  %3578 = vmatmul.msk.f32.gmra.mxu1 %vm1100_vm2, %v1023_v28  ;;  %v3191_v32 = vadd.f32 %v4464_v16, %v2889_v15 }
 0x281   :  { %2203 = vmatmul.f32.gmra.mxu2 %v1933_v35  ;;  %2604 = vmatmul.f32.gmra.mxu3 %v1933_v35 }
 0x282   :  { %v768_v38 = vpop.f32.mrf.mxu0 }
 0x283   :  { %v769_v40 = vadd.f32 %v4275_v55, %v768_v38 }
 0x284   :  { %v1646_v42 = vpop.f32.mrf.mxu1  ;;  %v2156_v43 = vpop.f32.mrf.mxu2 }
 0x285   :  { %v1024_v44 = vmax.f32 %v769_v40, 0.0  ;;  %v1647_v60 = vadd.f32 %v4361_v46, %v1646_v42  ;;  %v2904_v48 = vmax.f32 %v2903_v30, %v2156_v43  ;;  %v2557_v49 = vpop.f32.mrf.mxu3  ;;  %3467 = vmatmul.msk.f32.gmra.mxu0 %vm170_vm1, %v116_v39  ;;  %v119_v39 = vld [vmem:[%s5001_s0 + $0x298] sm:$0xff] }
 0x286   :  { %v2925_v50 = vmax.f32 %v2924_v34, %v2557_v49 }
 0x287   :  { %v1934_v47 = vmax.f32 %v1647_v60, 0.0  ;;  %v2905_v51 = vrot.slane %v2904_v48, 4  ;;  %3579 = vmatmul.msk.f32.gmra.mxu1 %vm1100_vm2, %v1024_v44 }
 0x288   :  { %v2926_v53 = vrot.slane %v2925_v50, 4 }
 0x289   :  { %v2906_v54 = vmax.f32 %v2904_v48, %v2905_v51  ;;  %2206 = vmatmul.f32.gmra.mxu2 %v1934_v47  ;;  %2607 = vmatmul.f32.gmra.mxu3 %v1934_v47  ;;  %v120_v47 = vld [vmem:[%s5001_s0 + $0x2a0] sm:$0xff] }
 0x28a   :  { %v2927_v56 = vmax.f32 %v2925_v50, %v2926_v53  ;;  %v771_v57 = vpop.f32.mrf.mxu0 }
 0x28b   :  { %v2907_v59 = vrot.slane %v2906_v54, 2  ;;  %v772_v61 = vadd.f32 %v4275_v55, %v771_v57 }
 0x28c   :  { %v2928_v63 = vrot.slane %v2927_v56, 2  ;;  %v1649_v0 = vpop.f32.mrf.mxu1  ;;  %v2159_v1 = vpop.f32.mrf.mxu2 }
 0x28d   :  { %v2908_v3 = vmax.f32 %v2906_v54, %v2907_v59  ;;  %v1025_v4 = vmax.f32 %v772_v61, 0.0  ;;  %v1650_v5 = vadd.f32 %v4361_v46, %v1649_v0  ;;  %v2560_v6 = vpop.f32.mrf.mxu3  ;;  %3468 = vmatmul.msk.f32.gmra.mxu0 %vm170_vm1, %v117_v58 }
 0x28e   :  { %v2929_v8 = vmax.f32 %v2927_v56, %v2928_v63 }
 0x28f   :  { %v2909_v9 = vrot.slane %v2908_v3, 1  ;;  %v1935_v10 = vmax.f32 %v1650_v5, 0.0  ;;  %3580 = vmatmul.msk.f32.gmra.mxu1 %vm1100_vm2, %v1025_v4 }
 0x290   :  { %v2930_v13 = vrot.slane %v2929_v8, 1 }
 0x291   :  { %v2910_v14 = vmax.f32 %v2908_v3, %v2909_v9  ;;  %2209 = vmatmul.f32.gmra.mxu2 %v1935_v10  ;;  %2610 = vmatmul.f32.gmra.mxu3 %v1935_v10  ;;  %v122_v9 = vld [vmem:[%s5001_s0 + $0x2b0] sm:$0xff] }
 0x292   :  { %v2931_v17 = vmax.f32 %v2929_v8, %v2930_v13  ;;  %v774_v18 = vpop.f32.mrf.mxu0 }
 0x293   :  { %v3192_v20 = vadd.f32 %v4462_v12, %v2910_v14  ;;  %v775_v21 = vadd.f32 %v4275_v55, %v774_v18 }
 0x294   :  { %v3193_v23 = vadd.f32 %v4464_v16, %v2931_v17  ;;  %v1652_v24 = vpop.f32.mrf.mxu1  ;;  %v2162_v25 = vpop.f32.mrf.mxu2 }
 0x295   :  { %v3258_v27 = vrot.slane %v3192_v20, 7  ;;  %v1026_v28 = vmax.f32 %v775_v21, 0.0  ;;  %v1653_v29 = vadd.f32 %v4361_v46, %v1652_v24  ;;  %v2932_v30 = vmax.f32 %v2159_v1, %v2162_v25  ;;  %v2563_v31 = vpop.f32.mrf.mxu3  ;;  %3469 = vmatmul.msk.f32.gmra.mxu0 %vm170_vm1, %v118_v19  ;;  %v3216_v21 = vld [vmem:[%s5008_s7 + $0x50] sm:$0xff] }
 0x296   :  { %v3279_v33 = vrot.slane %v3193_v23, 7  ;;  %v2953_v34 = vmax.f32 %v2560_v6, %v2563_v31  ;;  %3300 = vmatpush.msrb.mxu0 %v3216_v21  ;;  %v123_v23 = vld [vmem:[%s5001_s0 + $0x2b8] sm:$0xff]  ;;  %v128_v21 = vld [vmem:[%s5001_s0 + $0x2e0] sm:$0xff] }
 0x297   :  { %v4477_v35 = vsel %vm3259_vm3, %v3258_v27, %v3190_v22  ;;  %v1936_v36 = vmax.f32 %v1653_v29, 0.0  ;;  %3581 = vmatmul.msk.f32.gmra.mxu1 %vm1100_vm2, %v1026_v28 }
 0x298   :  { %v4481_v37 = vsel %vm3259_vm3, %v3279_v33, %v3191_v32  ;;  %v3232_v32 = vld [vmem:[%s5008_s7 + $0xd0] sm:$0xff] }
 0x299   :  { %2212 = vmatmul.f32.gmra.mxu2 %v1936_v36  ;;  %2613 = vmatmul.f32.gmra.mxu3 %v1936_v36 }
 0x29a   :  { %v777_v38 = vpop.f32.mrf.mxu0  ;;  %3320 = vmatpush.msrb.mxu1 %v3232_v32 }
 0x29b   :  { %v778_v40 = vadd.f32 %v4275_v55, %v777_v38  ;;  %v124_v38 = vld [vmem:[%s5001_s0 + $0x2c0] sm:$0xff] }
 0x29c   :  { %v1655_v41 = vpop.f32.mrf.mxu1  ;;  %v2165_v42 = vpop.f32.mrf.mxu2 }
 0x29d   :  { %v1027_v43 = vmax.f32 %v778_v40, 0.0  ;;  %v1656_v44 = vadd.f32 %v4361_v46, %v1655_v41  ;;  %v2933_v60 = vmax.f32 %v2932_v30, %v2165_v42  ;;  %v2566_v48 = vpop.f32.mrf.mxu3  ;;  %3470 = vmatmul.msk.f32.gmra.mxu0 %vm170_vm1, %v119_v39 }
 0x29e   :  { %v2954_v49 = vmax.f32 %v2953_v34, %v2566_v48 }
 0x29f   :  { %v1937_v45 = vmax.f32 %v1656_v44, 0.0  ;;  %3582 = vmatmul.msk.f32.gmra.mxu1 %vm1100_vm2, %v1027_v43 }
 0x2a1   :  { %2215 = vmatmul.f32.gmra.mxu2 %v1937_v45  ;;  %2616 = vmatmul.f32.gmra.mxu3 %v1937_v45 }
 0x2a2   :  { %v780_v50 = vpop.f32.mrf.mxu0 }
 0x2a3   :  { %v781_v51 = vadd.f32 %v4275_v55, %v780_v50  ;;  %v125_v50 = vld [vmem:[%s5001_s0 + $0x2c8] sm:$0xff] }
 0x2a4   :  { %v1658_v52 = vpop.f32.mrf.mxu1  ;;  %v2168_v53 = vpop.f32.mrf.mxu2 }
 0x2a5   :  { %v1028_v54 = vmax.f32 %v781_v51, 0.0  ;;  %v1659_v26 = vadd.f32 %v4361_v46, %v1658_v52  ;;  %v2934_v56 = vmax.f32 %v2933_v60, %v2168_v53  ;;  %v2569_v57 = vpop.f32.mrf.mxu3  ;;  %3471 = vmatmul.msk.f32.gmra.mxu0 %vm170_vm1, %v120_v47 }
 0x2a6   :  { %v2955_v58 = vmax.f32 %v2954_v49, %v2569_v57 }
 0x2a7   :  { %v1938_v59 = vmax.f32 %v1659_v26, 0.0  ;;  %3583 = vmatmul.msk.f32.gmra.mxu1 %vm1100_vm2, %v1028_v54 }
 0x2a9   :  { %2218 = vmatmul.f32.gmra.mxu2 %v1938_v59  ;;  %2619 = vmatmul.f32.gmra.mxu3 %v1938_v59 }
 0x2aa   :  { %v783_v61 = vpop.f32.mrf.mxu0 }
 0x2ab   :  { %v784_v63 = vadd.f32 %v4275_v55, %v783_v61  ;;  %v126_v61 = vld [vmem:[%s5001_s0 + $0x2d0] sm:$0xff] }
 0x2ac   :  { %v1661_v0 = vpop.f32.mrf.mxu1  ;;  %v2171_v1 = vpop.f32.mrf.mxu2 }
 0x2ad   :  { %v1029_v2 = vmax.f32 %v784_v63, 0.0  ;;  %v1662_v3 = vadd.f32 %v4361_v46, %v1661_v0  ;;  %v2935_v4 = vmax.f32 %v2934_v56, %v2171_v1  ;;  %v2572_v5 = vpop.f32.mrf.mxu3  ;;  %3472 = vmatmul.msk.f32.gmra.mxu0 %vm170_vm1, %v121_v62 }
 0x2ae   :  { %v2956_v6 = vmax.f32 %v2955_v58, %v2572_v5 }
 0x2af   :  { %v1939_v7 = vmax.f32 %v1662_v3, 0.0  ;;  %3584 = vmatmul.msk.f32.gmra.mxu1 %vm1100_vm2, %v1029_v2 }
 0x2b1   :  { %2221 = vmatmul.f32.gmra.mxu2 %v1939_v7  ;;  %2622 = vmatmul.f32.gmra.mxu3 %v1939_v7 }
 0x2b2   :  { %v786_v8 = vpop.f32.mrf.mxu0 }
 0x2b3   :  { %v787_v10 = vadd.f32 %v4275_v55, %v786_v8  ;;  %v4551_v8 = vld [vmem:[%s5003_s2] ss:$0 sm:$0xff] }
 0x2b4   :  { %v1664_v11 = vpop.f32.mrf.mxu1  ;;  %v2174_v13 = vpop.f32.mrf.mxu2 }
 0x2b5   :  { %v1030_v14 = vmax.f32 %v787_v10, 0.0  ;;  %v1665_v15 = vadd.f32 %v4361_v46, %v1664_v11  ;;  %v2936_v17 = vmax.f32 %v2935_v4, %v2174_v13  ;;  %v2575_v18 = vpop.f32.mrf.mxu3  ;;  %3473 = vmatmul.msk.f32.gmra.mxu0 %vm170_vm1, %v122_v9 }
 0x2b6   :  { %v2957_v19 = vmax.f32 %v2956_v6, %v2575_v18 }
 0x2b7   :  { %v1940_v20 = vmax.f32 %v1665_v15, 0.0  ;;  %3585 = vmatmul.msk.f32.gmra.mxu1 %vm1100_vm2, %v1030_v14 }
 0x2b9   :  { %2224 = vmatmul.f32.gmra.mxu2 %v1940_v20  ;;  %2625 = vmatmul.f32.gmra.mxu3 %v1940_v20 }
 0x2ba   :  { %v789_v22 = vpop.f32.mrf.mxu0 }
 0x2bb   :  { %v790_v24 = vadd.f32 %v4275_v55, %v789_v22 }
 0x2bc   :  { %v1667_v25 = vpop.f32.mrf.mxu1  ;;  %v2177_v27 = vpop.f32.mrf.mxu2 }
 0x2bd   :  { %v1031_v28 = vmax.f32 %v790_v24, 0.0  ;;  %v1668_v29 = vadd.f32 %v4361_v46, %v1667_v25  ;;  %v2937_v30 = vmax.f32 %v2936_v17, %v2177_v27  ;;  %v2578_v31 = vpop.f32.mrf.mxu3  ;;  %3474 = vmatmul.msk.f32.gmra.mxu0 %vm170_vm1, %v123_v23 }
 0x2be   :  { %v2958_v33 = vmax.f32 %v2957_v19, %v2578_v31 }
 0x2bf   :  { %v1941_v34 = vmax.f32 %v1668_v29, 0.0  ;;  %3586 = vmatmul.msk.f32.gmra.mxu1 %vm1100_vm2, %v1031_v28 }
 0x2c1   :  { %2227 = vmatmul.f32.gmra.mxu2 %v1941_v34  ;;  %2628 = vmatmul.f32.gmra.mxu3 %v1941_v34 }
 0x2c2   :  { %v792_v36 = vpop.f32.mrf.mxu0 }
 0x2c3   :  { %v793_v39 = vadd.f32 %v4275_v55, %v792_v36 }
 0x2c4   :  { %v1670_v40 = vpop.f32.mrf.mxu1  ;;  %v2180_v41 = vpop.f32.mrf.mxu2 }
 0x2c5   :  { %v1032_v42 = vmax.f32 %v793_v39, 0.0  ;;  %v1671_v43 = vadd.f32 %v4361_v46, %v1670_v40  ;;  %v2938_v44 = vmax.f32 %v2937_v30, %v2180_v41  ;;  %v2581_v60 = vpop.f32.mrf.mxu3  ;;  %3475 = vmatmul.msk.f32.gmra.mxu0 %vm170_vm1, %v124_v38 }
 0x2c6   :  { %v2959_v48 = vmax.f32 %v2958_v33, %v2581_v60  ;;  %v129_v33 = vld [vmem:[%s5001_s0 + $0x2e8] sm:$0xff] }
 0x2c7   :  { %v1942_v49 = vmax.f32 %v1671_v43, 0.0  ;;  %3587 = vmatmul.msk.f32.gmra.mxu1 %vm1100_vm2, %v1032_v42 }
 0x2c9   :  { %2230 = vmatmul.f32.gmra.mxu2 %v1942_v49  ;;  %2631 = vmatmul.f32.gmra.mxu3 %v1942_v49 }
 0x2ca   :  { %v795_v45 = vpop.f32.mrf.mxu0 }
 0x2cb   :  { %v796_v47 = vadd.f32 %v4275_v55, %v795_v45 }
 0x2cc   :  { %v1673_v51 = vpop.f32.mrf.mxu1  ;;  %v2183_v52 = vpop.f32.mrf.mxu2 }
 0x2cd   :  { %v1033_v53 = vmax.f32 %v796_v47, 0.0  ;;  %v1674_v54 = vadd.f32 %v4361_v46, %v1673_v51  ;;  %v2939_v26 = vmax.f32 %v2938_v44, %v2183_v52  ;;  %v2584_v56 = vpop.f32.mrf.mxu3  ;;  %3476 = vmatmul.msk.f32.gmra.mxu0 %vm170_vm1, %v125_v50 }
 0x2ce   :  { %v2960_v57 = vmax.f32 %v2959_v48, %v2584_v56  ;;  %v130_v48 = vld [vmem:[%s5001_s0 + $0x2f0] sm:$0xff]  ;;  %v3215_v56 = vld [vmem:[%s5008_s7 + $0x48] sm:$0xff] }
 0x2cf   :  { %v1943_v58 = vmax.f32 %v1674_v54, 0.0  ;;  %3588 = vmatmul.msk.f32.gmra.mxu1 %vm1100_vm2, %v1033_v53  ;;  %3301 = vmatpush.msrb.mxu0 %v3215_v56 }
 0x2d1   :  { %2233 = vmatmul.f32.gmra.mxu2 %v1943_v58  ;;  %2634 = vmatmul.f32.gmra.mxu3 %v1943_v58  ;;  %v131_v58 = vld [vmem:[%s5001_s0 + $0x2f8] sm:$0xff] }
 0x2d2   :  { %v798_v59 = vpop.f32.mrf.mxu0 }
 0x2d3   :  { %v799_v62 = vadd.f32 %v4275_v55, %v798_v59  ;;  %v127_v55 = vld [vmem:[%s5001_s0 + $0x2d8] sm:$0xff] }
 0x2d4   :  { %v1676_v63 = vpop.f32.mrf.mxu1  ;;  %v2186_v0 = vpop.f32.mrf.mxu2 }
 0x2d5   :  { %v1034_v1 = vmax.f32 %v799_v62, 0.0  ;;  %v1677_v2 = vadd.f32 %v4361_v46, %v1676_v63  ;;  %v2940_v3 = vmax.f32 %v2939_v26, %v2186_v0  ;;  %v2587_v4 = vpop.f32.mrf.mxu3  ;;  %3477 = vmatmul.msk.f32.gmra.mxu0 %vm170_vm1, %v126_v61 }
 0x2d6   :  { %v2961_v5 = vmax.f32 %v2960_v57, %v2587_v4 }
 0x2d7   :  { %v1944_v6 = vmax.f32 %v1677_v2, 0.0  ;;  %3589 = vmatmul.msk.f32.gmra.mxu1 %vm1100_vm2, %v1034_v1 }
 0x2d9   :  { %2236 = vmatmul.f32.gmra.mxu2 %v1944_v6  ;;  %2637 = vmatmul.f32.gmra.mxu3 %v1944_v6 }
 0x2da   :  { %v801_v7 = vpop.f32.mrf.mxu0 }
 0x2db   :  { %v802_v9 = vadd.f32 %v4551_v8, %v801_v7  ;;  %v132_v7 = vld [vmem:[%s5001_s0 + $0x300] sm:$0xff] }
 0x2dc   :  { %v1679_v10 = vpop.f32.mrf.mxu1  ;;  %v2189_v11 = vpop.f32.mrf.mxu2 }
 0x2dd   :  { %v1035_v13 = vmax.f32 %v802_v9, 0.0  ;;  %v1680_v14 = vadd.f32 %v4361_v46, %v1679_v10  ;;  %v2941_v15 = vmax.f32 %v2940_v3, %v2189_v11  ;;  %v2590_v17 = vpop.f32.mrf.mxu3  ;;  %3478 = vmatmul.msk.f32.gmra.mxu0 %vm170_vm1, %v127_v55  ;;  %v3231_v3 = vld [vmem:[%s5008_s7 + $0xc8] sm:$0xff] }
 0x2de   :  { %v2962_v18 = vmax.f32 %v2961_v5, %v2590_v17  ;;  %3321 = vmatpush.msrb.mxu1 %v3231_v3 }
 0x2df   :  { %v1945_v19 = vmax.f32 %v1680_v14, 0.0  ;;  %3590 = vmatmul.msk.f32.gmra.mxu1 %vm1100_vm2, %v1035_v13 }
 0x2e1   :  { %2239 = vmatmul.f32.gmra.mxu2 %v1945_v19  ;;  %2640 = vmatmul.f32.gmra.mxu3 %v1945_v19 }
 0x2e2   :  { %v804_v20 = vpop.f32.mrf.mxu0 }
 0x2e3   :  { %v805_v22 = vadd.f32 %v4551_v8, %v804_v20 }
 0x2e4   :  { %v1682_v23 = vpop.f32.mrf.mxu1  ;;  %v2192_v24 = vpop.f32.mrf.mxu2 }
 0x2e5   :  { %v1036_v25 = vmax.f32 %v805_v22, 0.0  ;;  %v1683_v27 = vadd.f32 %v4361_v46, %v1682_v23  ;;  %v2942_v28 = vmax.f32 %v2941_v15, %v2192_v24  ;;  %v2593_v29 = vpop.f32.mrf.mxu3  ;;  %3479 = vmatmul.msk.f32.gmra.mxu0 %vm170_vm1, %v128_v21  ;;  %v133_v24 = vld [vmem:[%s5001_s0 + $0x308] sm:$0xff] }
 0x2e6   :  { %v2963_v30 = vmax.f32 %v2962_v18, %v2593_v29 }
 0x2e7   :  { %v1946_v31 = vmax.f32 %v1683_v27, 0.0  ;;  %3591 = vmatmul.msk.f32.gmra.mxu1 %vm1100_vm2, %v1036_v25 }
 0x2e9   :  { %2242 = vmatmul.f32.gmra.mxu2 %v1946_v31  ;;  %2643 = vmatmul.f32.gmra.mxu3 %v1946_v31 }
 0x2ea   :  { %v807_v32 = vpop.f32.mrf.mxu0 }
 0x2eb   :  { %v808_v34 = vadd.f32 %v4551_v8, %v807_v32 }
 0x2ec   :  { %v1685_v36 = vpop.f32.mrf.mxu1  ;;  %v2195_v38 = vpop.f32.mrf.mxu2 }
 0x2ed   :  { %v1037_v39 = vmax.f32 %v808_v34, 0.0  ;;  %v1686_v40 = vadd.f32 %v4361_v46, %v1685_v36  ;;  %v2943_v41 = vmax.f32 %v2942_v28, %v2195_v38  ;;  %v2596_v42 = vpop.f32.mrf.mxu3  ;;  %3480 = vmatmul.msk.f32.gmra.mxu0 %vm170_vm1, %v129_v33 }
 0x2ee   :  { %v2964_v43 = vmax.f32 %v2963_v30, %v2596_v42 }
 0x2ef   :  { %v1947_v44 = vmax.f32 %v1686_v40, 0.0  ;;  %3592 = vmatmul.msk.f32.gmra.mxu1 %vm1100_vm2, %v1037_v39 }
 0x2f1   :  { %2245 = vmatmul.f32.gmra.mxu2 %v1947_v44  ;;  %2646 = vmatmul.f32.gmra.mxu3 %v1947_v44  ;;  %v134_v44 = vld [vmem:[%s5001_s0 + $0x310] sm:$0xff] }
 0x2f2   :  { %v810_v60 = vpop.f32.mrf.mxu0 }
 0x2f3   :  { %v811_v49 = vadd.f32 %v4551_v8, %v810_v60 }
 0x2f4   :  { %v1688_v45 = vpop.f32.mrf.mxu1  ;;  %v2198_v50 = vpop.f32.mrf.mxu2 }
 0x2f5   :  { %v1038_v47 = vmax.f32 %v811_v49, 0.0  ;;  %v1689_v51 = vadd.f32 %v4361_v46, %v1688_v45  ;;  %v2944_v52 = vmax.f32 %v2943_v41, %v2198_v50  ;;  %v2599_v53 = vpop.f32.mrf.mxu3  ;;  %3481 = vmatmul.msk.f32.gmra.mxu0 %vm170_vm1, %v130_v48 }
 0x2f6   :  { %v2965_v54 = vmax.f32 %v2964_v43, %v2599_v53 }
 0x2f7   :  { %v1948_v26 = vmax.f32 %v1689_v51, 0.0  ;;  %3593 = vmatmul.msk.f32.gmra.mxu1 %vm1100_vm2, %v1038_v47 }
 0x2f9   :  { %2248 = vmatmul.f32.gmra.mxu2 %v1948_v26  ;;  %2649 = vmatmul.f32.gmra.mxu3 %v1948_v26 }
 0x2fa   :  { %v813_v57 = vpop.f32.mrf.mxu0 }
 0x2fb   :  { %v814_v59 = vadd.f32 %v4551_v8, %v813_v57 }
 0x2fc   :  { %v1691_v61 = vpop.f32.mrf.mxu1  ;;  %v2201_v62 = vpop.f32.mrf.mxu2 }
 0x2fd   :  { %v1039_v63 = vmax.f32 %v814_v59, 0.0  ;;  %v1692_v0 = vadd.f32 %v4361_v46, %v1691_v61  ;;  %v2945_v1 = vmax.f32 %v2944_v52, %v2201_v62  ;;  %v2602_v2 = vpop.f32.mrf.mxu3  ;;  %3482 = vmatmul.msk.f32.gmra.mxu0 %vm170_vm1, %v131_v58  ;;  %v135_v62 = vld [vmem:[%s5001_s0 + $0x318] sm:$0xff] }
 0x2fe   :  { %v2966_v4 = vmax.f32 %v2965_v54, %v2602_v2 }
 0x2ff   :  { %v1949_v5 = vmax.f32 %v1692_v0, 0.0  ;;  %3594 = vmatmul.msk.f32.gmra.mxu1 %vm1100_vm2, %v1039_v63 }
 0x301   :  { %2251 = vmatmul.f32.gmra.mxu2 %v1949_v5  ;;  %2652 = vmatmul.f32.gmra.mxu3 %v1949_v5 }
 0x302   :  { %v816_v6 = vpop.f32.mrf.mxu0 }
 0x303   :  { %v817_v55 = vadd.f32 %v4551_v8, %v816_v6 }
 0x304   :  { %v1694_v9 = vpop.f32.mrf.mxu1  ;;  %v2204_v10 = vpop.f32.mrf.mxu2 }
 0x305   :  { %v1040_v11 = vmax.f32 %v817_v55, 0.0  ;;  %v1695_v13 = vadd.f32 %v4361_v46, %v1694_v9  ;;  %v2946_v14 = vmax.f32 %v2945_v1, %v2204_v10  ;;  %v2605_v15 = vpop.f32.mrf.mxu3  ;;  %3483 = vmatmul.msk.f32.gmra.mxu0 %vm170_vm1, %v132_v7  ;;  %v136_v7 = vld [vmem:[%s5001_s0 + $0x320] sm:$0xff] }
 0x306   :  { %v2967_v17 = vmax.f32 %v2966_v4, %v2605_v15 }
 0x307   :  { %v1950_v18 = vmax.f32 %v1695_v13, 0.0  ;;  %v2947_v19 = vrot.slane %v2946_v14, 4  ;;  %3595 = vmatmul.msk.f32.gmra.mxu1 %vm1100_vm2, %v1040_v11  ;;  %v4634_v11 = vld [vmem:[%s5005_s4] ss:$0 sm:$0xff] }
 0x308   :  { %v2968_v20 = vrot.slane %v2967_v17, 4 }
 0x309   :  { %v2948_v21 = vmax.f32 %v2946_v14, %v2947_v19  ;;  %2254 = vmatmul.f32.gmra.mxu2 %v1950_v18  ;;  %2655 = vmatmul.f32.gmra.mxu3 %v1950_v18 }
 0x30a   :  { %v2969_v22 = vmax.f32 %v2967_v17, %v2968_v20  ;;  %v819_v23 = vpop.f32.mrf.mxu0  ;;  %v137_v20 = vld [vmem:[%s5001_s0 + $0x328] sm:$0xff] }
 0x30b   :  { %v2949_v25 = vrot.slane %v2948_v21, 2  ;;  %v820_v27 = vadd.f32 %v4551_v8, %v819_v23 }
 0x30c   :  { %v2970_v28 = vrot.slane %v2969_v22, 2  ;;  %v1697_v29 = vpop.f32.mrf.mxu1  ;;  %v2207_v30 = vpop.f32.mrf.mxu2 }
 0x30d   :  { %v2950_v31 = vmax.f32 %v2948_v21, %v2949_v25  ;;  %v1041_v32 = vmax.f32 %v820_v27, 0.0  ;;  %v1698_v33 = vadd.f32 %v4361_v46, %v1697_v29  ;;  %v2608_v34 = vpop.f32.mrf.mxu3  ;;  %3484 = vmatmul.msk.f32.gmra.mxu0 %vm170_vm1, %v133_v24 }
 0x30e   :  { %v2971_v36 = vmax.f32 %v2969_v22, %v2970_v28 }
 0x30f   :  { %v2951_v38 = vrot.slane %v2950_v31, 1  ;;  %v1951_v39 = vmax.f32 %v1698_v33, 0.0  ;;  %3596 = vmatmul.msk.f32.gmra.mxu1 %vm1100_vm2, %v1041_v32  ;;  %v138_v32 = vld [vmem:[%s5001_s0 + $0x330] sm:$0xff] }
 0x310   :  { %v2972_v40 = vrot.slane %v2971_v36, 1 }
 0x311   :  { %v2952_v41 = vmax.f32 %v2950_v31, %v2951_v38  ;;  %2257 = vmatmul.f32.gmra.mxu2 %v1951_v39  ;;  %2658 = vmatmul.f32.gmra.mxu3 %v1951_v39 }
 0x312   :  { %v2973_v42 = vmax.f32 %v2971_v36, %v2972_v40  ;;  %v822_v43 = vpop.f32.mrf.mxu0 }
 0x313   :  { %v3194_v60 = vadd.f32 %v4462_v12, %v2952_v41  ;;  %v823_v48 = vadd.f32 %v4551_v8, %v822_v43 }
 0x314   :  { %v3195_v49 = vadd.f32 %v4464_v16, %v2973_v42  ;;  %v1700_v45 = vpop.f32.mrf.mxu1  ;;  %v2210_v50 = vpop.f32.mrf.mxu2 }
 0x315   :  { %v3261_v47 = vrot.slane %v3194_v60, 6  ;;  %v1042_v51 = vmax.f32 %v823_v48, 0.0  ;;  %v1701_v52 = vadd.f32 %v4361_v46, %v1700_v45  ;;  %v2974_v53 = vmax.f32 %v2207_v30, %v2210_v50  ;;  %v2611_v54 = vpop.f32.mrf.mxu3  ;;  %3485 = vmatmul.msk.f32.gmra.mxu0 %vm170_vm1, %v134_v44  ;;  %v3214_v44 = vld [vmem:[%s5008_s7 + $0x40] sm:$0xff]  ;;  %v139_v48 = vld [vmem:[%s5001_s0 + $0x338] sm:$0xff] }
 0x316   :  { %v3281_v26 = vrot.slane %v3195_v49, 6  ;;  %v2995_v56 = vmax.f32 %v2608_v34, %v2611_v54  ;;  %3302 = vmatpush.msrb.mxu0 %v3214_v44  ;;  %v3230_v54 = vld [vmem:[%s5008_s7 + $0xc0] sm:$0xff] }
 0x317   :  { %v1952_v57 = vmax.f32 %v1701_v52, 0.0  ;;  %3597 = vmatmul.msk.f32.gmra.mxu1 %vm1100_vm2, %v1042_v51  ;;  %v4615_v58 = vsel %vm3262_vm4, %v3261_v47, %v4477_v35  ;;  %v144_v44 = vld [vmem:[%s5001_s0 + $0x360] sm:$0xff] }
 0x318   :  { %v4618_v59 = vsel %vm3262_vm4, %v3281_v26, %v4481_v37  ;;  %3322 = vmatpush.msrb.mxu1 %v3230_v54 }
 0x319   :  { %2260 = vmatmul.f32.gmra.mxu2 %v1952_v57  ;;  %2661 = vmatmul.f32.gmra.mxu3 %v1952_v57 }
 0x31a   :  { %v825_v61 = vpop.f32.mrf.mxu0 }
 0x31b   :  { %v826_v63 = vadd.f32 %v4551_v8, %v825_v61  ;;  %v140_v61 = vld [vmem:[%s5001_s0 + $0x340] sm:$0xff] }
 0x31c   :  { %v1703_v0 = vpop.f32.mrf.mxu1  ;;  %v2213_v1 = vpop.f32.mrf.mxu2 }
 0x31d   :  { %v1043_v2 = vmax.f32 %v826_v63, 0.0  ;;  %v1704_v3 = vadd.f32 %v4361_v46, %v1703_v0  ;;  %v2975_v4 = vmax.f32 %v2974_v53, %v2213_v1  ;;  %v2614_v35 = vpop.f32.mrf.mxu3  ;;  %3486 = vmatmul.msk.f32.gmra.mxu0 %vm170_vm1, %v135_v62 }
 0x31e   :  { %v2996_v37 = vmax.f32 %v2995_v56, %v2614_v35 }
 0x31f   :  { %v1953_v5 = vmax.f32 %v1704_v3, 0.0  ;;  %3598 = vmatmul.msk.f32.gmra.mxu1 %vm1100_vm2, %v1043_v2 }
 0x321   :  { %2263 = vmatmul.f32.gmra.mxu2 %v1953_v5  ;;  %2664 = vmatmul.f32.gmra.mxu3 %v1953_v5 }
 0x322   :  { %v828_v6 = vpop.f32.mrf.mxu0 }
 0x323   :  { %v829_v55 = vadd.f32 %v4551_v8, %v828_v6  ;;  %v141_v6 = vld [vmem:[%s5001_s0 + $0x348] sm:$0xff] }
 0x324   :  { %v1706_v9 = vpop.f32.mrf.mxu1  ;;  %v2216_v10 = vpop.f32.mrf.mxu2 }
 0x325   :  { %v1044_v46 = vmax.f32 %v829_v55, 0.0  ;;  %v1707_v13 = vadd.f32 %v4634_v11, %v1706_v9  ;;  %v2976_v14 = vmax.f32 %v2975_v4, %v2216_v10  ;;  %v2617_v15 = vpop.f32.mrf.mxu3  ;;  %3487 = vmatmul.msk.f32.gmra.mxu0 %vm170_vm1, %v136_v7 }
 0x326   :  { %v2997_v17 = vmax.f32 %v2996_v37, %v2617_v15 }
 0x327   :  { %v1954_v18 = vmax.f32 %v1707_v13, 0.0  ;;  %3599 = vmatmul.msk.f32.gmra.mxu1 %vm1100_vm2, %v1044_v46 }
 0x329   :  { %2266 = vmatmul.f32.gmra.mxu2 %v1954_v18  ;;  %2667 = vmatmul.f32.gmra.mxu3 %v1954_v18 }
 0x32a   :  { %v831_v19 = vpop.f32.mrf.mxu0 }
 0x32b   :  { %v832_v21 = vadd.f32 %v4551_v8, %v831_v19  ;;  %v142_v19 = vld [vmem:[%s5001_s0 + $0x350] sm:$0xff] }
 0x32c   :  { %v1709_v22 = vpop.f32.mrf.mxu1  ;;  %v2219_v23 = vpop.f32.mrf.mxu2 }
 0x32d   :  { %v1045_v24 = vmax.f32 %v832_v21, 0.0  ;;  %v1710_v25 = vadd.f32 %v4634_v11, %v1709_v22  ;;  %v2977_v27 = vmax.f32 %v2976_v14, %v2219_v23  ;;  %v2620_v28 = vpop.f32.mrf.mxu3  ;;  %3488 = vmatmul.msk.f32.gmra.mxu0 %vm170_vm1, %v137_v20 }
 0x32e   :  { %v2998_v29 = vmax.f32 %v2997_v17, %v2620_v28 }
 0x32f   :  { %v1955_v30 = vmax.f32 %v1710_v25, 0.0  ;;  %3600 = vmatmul.msk.f32.gmra.mxu1 %vm1100_vm2, %v1045_v24 }
 0x331   :  { %2269 = vmatmul.f32.gmra.mxu2 %v1955_v30  ;;  %2670 = vmatmul.f32.gmra.mxu3 %v1955_v30 }
 0x332   :  { %v834_v31 = vpop.f32.mrf.mxu0 }
 0x333   :  { %v835_v33 = vadd.f32 %v4551_v8, %v834_v31  ;;  %v143_v31 = vld [vmem:[%s5001_s0 + $0x358] sm:$0xff] }
 0x334   :  { %v1712_v34 = vpop.f32.mrf.mxu1  ;;  %v2222_v36 = vpop.f32.mrf.mxu2 }
 0x335   :  { %v1046_v38 = vmax.f32 %v835_v33, 0.0  ;;  %v1713_v39 = vadd.f32 %v4634_v11, %v1712_v34  ;;  %v2978_v40 = vmax.f32 %v2977_v27, %v2222_v36  ;;  %v2623_v41 = vpop.f32.mrf.mxu3  ;;  %3489 = vmatmul.msk.f32.gmra.mxu0 %vm170_vm1, %v138_v32 }
 0x336   :  { %v2999_v42 = vmax.f32 %v2998_v29, %v2623_v41 }
 0x337   :  { %v1956_v43 = vmax.f32 %v1713_v39, 0.0  ;;  %3601 = vmatmul.msk.f32.gmra.mxu1 %vm1100_vm2, %v1046_v38 }
 0x339   :  { %2272 = vmatmul.f32.gmra.mxu2 %v1956_v43  ;;  %2673 = vmatmul.f32.gmra.mxu3 %v1956_v43 }
 0x33a   :  { %v837_v60 = vpop.f32.mrf.mxu0 }
 0x33b   :  { %v838_v49 = vadd.f32 %v4551_v8, %v837_v60 }
 0x33c   :  { %v1715_v45 = vpop.f32.mrf.mxu1  ;;  %v2225_v50 = vpop.f32.mrf.mxu2 }
 0x33d   :  { %v1047_v47 = vmax.f32 %v838_v49, 0.0  ;;  %v1716_v51 = vadd.f32 %v4634_v11, %v1715_v45  ;;  %v2979_v52 = vmax.f32 %v2978_v40, %v2225_v50  ;;  %v2626_v53 = vpop.f32.mrf.mxu3  ;;  %3490 = vmatmul.msk.f32.gmra.mxu0 %vm170_vm1, %v139_v48 }
 0x33e   :  { %v3000_v26 = vmax.f32 %v2999_v42, %v2626_v53 }
 0x33f   :  { %v1957_v56 = vmax.f32 %v1716_v51, 0.0  ;;  %3602 = vmatmul.msk.f32.gmra.mxu1 %vm1100_vm2, %v1047_v47 }
 0x341   :  { %2275 = vmatmul.f32.gmra.mxu2 %v1957_v56  ;;  %2676 = vmatmul.f32.gmra.mxu3 %v1957_v56 }
 0x342   :  { %v840_v57 = vpop.f32.mrf.mxu0 }
 0x343   :  { %v841_v62 = vadd.f32 %v4551_v8, %v840_v57 }
 0x344   :  { %v1718_v63 = vpop.f32.mrf.mxu1  ;;  %v2228_v0 = vpop.f32.mrf.mxu2 }
 0x345   :  { %v1048_v1 = vmax.f32 %v841_v62, 0.0  ;;  %v1719_v2 = vadd.f32 %v4634_v11, %v1718_v63  ;;  %v2980_v3 = vmax.f32 %v2979_v52, %v2228_v0  ;;  %v2629_v4 = vpop.f32.mrf.mxu3  ;;  %3491 = vmatmul.msk.f32.gmra.mxu0 %vm170_vm1, %v140_v61 }
 0x346   :  { %v3001_v35 = vmax.f32 %v3000_v26, %v2629_v4  ;;  %v145_v26 = vld [vmem:[%s5001_s0 + $0x368] sm:$0xff] }
 0x347   :  { %v1958_v37 = vmax.f32 %v1719_v2, 0.0  ;;  %3603 = vmatmul.msk.f32.gmra.mxu1 %vm1100_vm2, %v1048_v1 }
 0x349   :  { %2278 = vmatmul.f32.gmra.mxu2 %v1958_v37  ;;  %2679 = vmatmul.f32.gmra.mxu3 %v1958_v37 }
 0x34a   :  { %v843_v5 = vpop.f32.mrf.mxu0 }
 0x34b   :  { %v844_v7 = vadd.f32 %v4551_v8, %v843_v5 }
 0x34c   :  { %v1721_v55 = vpop.f32.mrf.mxu1  ;;  %v2231_v9 = vpop.f32.mrf.mxu2 }
 0x34d   :  { %v1049_v10 = vmax.f32 %v844_v7, 0.0  ;;  %v1722_v46 = vadd.f32 %v4634_v11, %v1721_v55  ;;  %v2981_v13 = vmax.f32 %v2980_v3, %v2231_v9  ;;  %v2632_v14 = vpop.f32.mrf.mxu3  ;;  %3492 = vmatmul.msk.f32.gmra.mxu0 %vm170_vm1, %v141_v6 }
 0x34e   :  { %v3002_v15 = vmax.f32 %v3001_v35, %v2632_v14  ;;  %v146_v35 = vld [vmem:[%s5001_s0 + $0x370] sm:$0xff]  ;;  %v3213_v14 = vld [vmem:[%s5008_s7 + $0x38] sm:$0xff] }
 0x34f   :  { %v1959_v17 = vmax.f32 %v1722_v46, 0.0  ;;  %3604 = vmatmul.msk.f32.gmra.mxu1 %vm1100_vm2, %v1049_v10  ;;  %3303 = vmatpush.msrb.mxu0 %v3213_v14 }
 0x351   :  { %2281 = vmatmul.f32.gmra.mxu2 %v1959_v17  ;;  %2682 = vmatmul.f32.gmra.mxu3 %v1959_v17  ;;  %v147_v17 = vld [vmem:[%s5001_s0 + $0x378] sm:$0xff] }
 0x352   :  { %v846_v18 = vpop.f32.mrf.mxu0 }
 0x353   :  { %v847_v20 = vadd.f32 %v4551_v8, %v846_v18 }
 0x354   :  { %v1724_v21 = vpop.f32.mrf.mxu1  ;;  %v2234_v22 = vpop.f32.mrf.mxu2 }
 0x355   :  { %v1050_v23 = vmax.f32 %v847_v20, 0.0  ;;  %v1725_v24 = vadd.f32 %v4634_v11, %v1724_v21  ;;  %v2982_v25 = vmax.f32 %v2981_v13, %v2234_v22  ;;  %v2635_v27 = vpop.f32.mrf.mxu3  ;;  %3493 = vmatmul.msk.f32.gmra.mxu0 %vm170_vm1, %v142_v19 }
 0x356   :  { %v3003_v28 = vmax.f32 %v3002_v15, %v2635_v27 }
 0x357   :  { %v1960_v29 = vmax.f32 %v1725_v24, 0.0  ;;  %3605 = vmatmul.msk.f32.gmra.mxu1 %vm1100_vm2, %v1050_v23 }
 0x359   :  { %2284 = vmatmul.f32.gmra.mxu2 %v1960_v29  ;;  %2685 = vmatmul.f32.gmra.mxu3 %v1960_v29 }
 0x35a   :  { %v849_v30 = vpop.f32.mrf.mxu0 }
 0x35b   :  { %v850_v32 = vadd.f32 %v4551_v8, %v849_v30  ;;  %v148_v30 = vld [vmem:[%s5001_s0 + $0x380] sm:$0xff] }
 0x35c   :  { %v1727_v33 = vpop.f32.mrf.mxu1  ;;  %v2237_v34 = vpop.f32.mrf.mxu2 }
 0x35d   :  { %v1051_v36 = vmax.f32 %v850_v32, 0.0  ;;  %v1728_v38 = vadd.f32 %v4634_v11, %v1727_v33  ;;  %v2983_v39 = vmax.f32 %v2982_v25, %v2237_v34  ;;  %v2638_v40 = vpop.f32.mrf.mxu3  ;;  %3494 = vmatmul.msk.f32.gmra.mxu0 %vm170_vm1, %v143_v31  ;;  %v3229_v25 = vld [vmem:[%s5008_s7 + $0xb8] sm:$0xff] }
 0x35e   :  { %v3004_v41 = vmax.f32 %v3003_v28, %v2638_v40  ;;  %3323 = vmatpush.msrb.mxu1 %v3229_v25 }
 0x35f   :  { %v1961_v42 = vmax.f32 %v1728_v38, 0.0  ;;  %3606 = vmatmul.msk.f32.gmra.mxu1 %vm1100_vm2, %v1051_v36 }
 0x361   :  { %2287 = vmatmul.f32.gmra.mxu2 %v1961_v42  ;;  %2688 = vmatmul.f32.gmra.mxu3 %v1961_v42 }
 0x362   :  { %v852_v43 = vpop.f32.mrf.mxu0 }
 0x363   :  { %v853_v60 = vadd.f32 %v4551_v8, %v852_v43 }
 0x364   :  { %v1730_v48 = vpop.f32.mrf.mxu1  ;;  %v2240_v49 = vpop.f32.mrf.mxu2 }
 0x365   :  { %v1052_v45 = vmax.f32 %v853_v60, 0.0  ;;  %v1731_v50 = vadd.f32 %v4634_v11, %v1730_v48  ;;  %v2984_v47 = vmax.f32 %v2983_v39, %v2240_v49  ;;  %v2641_v51 = vpop.f32.mrf.mxu3  ;;  %3495 = vmatmul.msk.f32.gmra.mxu0 %vm170_vm1, %v144_v44  ;;  %v149_v49 = vld [vmem:[%s5001_s0 + $0x388] sm:$0xff] }
 0x366   :  { %v3005_v52 = vmax.f32 %v3004_v41, %v2641_v51 }
 0x367   :  { %v1962_v53 = vmax.f32 %v1731_v50, 0.0  ;;  %3607 = vmatmul.msk.f32.gmra.mxu1 %vm1100_vm2, %v1052_v45 }
 0x369   :  { %2290 = vmatmul.f32.gmra.mxu2 %v1962_v53  ;;  %2691 = vmatmul.f32.gmra.mxu3 %v1962_v53 }
 0x36a   :  { %v855_v54 = vpop.f32.mrf.mxu0 }
 0x36b   :  { %v856_v56 = vadd.f32 %v4551_v8, %v855_v54 }
 0x36c   :  { %v1733_v57 = vpop.f32.mrf.mxu1  ;;  %v2243_v61 = vpop.f32.mrf.mxu2 }
 0x36d   :  { %v1053_v62 = vmax.f32 %v856_v56, 0.0  ;;  %v1734_v63 = vadd.f32 %v4634_v11, %v1733_v57  ;;  %v2985_v0 = vmax.f32 %v2984_v47, %v2243_v61  ;;  %v2644_v1 = vpop.f32.mrf.mxu3  ;;  %3496 = vmatmul.msk.f32.gmra.mxu0 %vm170_vm1, %v145_v26 }
 0x36e   :  { %v3006_v2 = vmax.f32 %v3005_v52, %v2644_v1 }
 0x36f   :  { %v1963_v3 = vmax.f32 %v1734_v63, 0.0  ;;  %3608 = vmatmul.msk.f32.gmra.mxu1 %vm1100_vm2, %v1053_v62 }
 0x371   :  { %2293 = vmatmul.f32.gmra.mxu2 %v1963_v3  ;;  %2694 = vmatmul.f32.gmra.mxu3 %v1963_v3  ;;  %v150_v3 = vld [vmem:[%s5001_s0 + $0x390] sm:$0xff] }
 0x372   :  { %v858_v4 = vpop.f32.mrf.mxu0 }
 0x373   :  { %v859_v37 = vadd.f32 %v4551_v8, %v858_v4 }
 0x374   :  { %v1736_v5 = vpop.f32.mrf.mxu1  ;;  %v2246_v6 = vpop.f32.mrf.mxu2 }
 0x375   :  { %v1054_v7 = vmax.f32 %v859_v37, 0.0  ;;  %v1737_v55 = vadd.f32 %v4634_v11, %v1736_v5  ;;  %v2986_v9 = vmax.f32 %v2985_v0, %v2246_v6  ;;  %v2647_v10 = vpop.f32.mrf.mxu3  ;;  %3497 = vmatmul.msk.f32.gmra.mxu0 %vm170_vm1, %v146_v35 }
 0x376   :  { %v3007_v46 = vmax.f32 %v3006_v2, %v2647_v10 }
 0x377   :  { %v1964_v13 = vmax.f32 %v1737_v55, 0.0  ;;  %3609 = vmatmul.msk.f32.gmra.mxu1 %vm1100_vm2, %v1054_v7 }
 0x379   :  { %2296 = vmatmul.f32.gmra.mxu2 %v1964_v13  ;;  %2697 = vmatmul.f32.gmra.mxu3 %v1964_v13 }
 0x37a   :  { %v861_v15 = vpop.f32.mrf.mxu0 }
 0x37b   :  { %v862_v18 = vadd.f32 %v4551_v8, %v861_v15 }
 0x37c   :  { %v1739_v19 = vpop.f32.mrf.mxu1  ;;  %v2249_v20 = vpop.f32.mrf.mxu2 }
 0x37d   :  { %v1055_v21 = vmax.f32 %v862_v18, 0.0  ;;  %v1740_v22 = vadd.f32 %v4634_v11, %v1739_v19  ;;  %v2987_v23 = vmax.f32 %v2986_v9, %v2249_v20  ;;  %v2650_v24 = vpop.f32.mrf.mxu3  ;;  %3498 = vmatmul.msk.f32.gmra.mxu0 %vm170_vm1, %v147_v17  ;;  %v151_v20 = vld [vmem:[%s5001_s0 + $0x398] sm:$0xff] }
 0x37e   :  { %v3008_v27 = vmax.f32 %v3007_v46, %v2650_v24 }
 0x37f   :  { %v1965_v28 = vmax.f32 %v1740_v22, 0.0  ;;  %3610 = vmatmul.msk.f32.gmra.mxu1 %vm1100_vm2, %v1055_v21 }
 0x381   :  { %2299 = vmatmul.f32.gmra.mxu2 %v1965_v28  ;;  %2700 = vmatmul.f32.gmra.mxu3 %v1965_v28 }
 0x382   :  { %v864_v29 = vpop.f32.mrf.mxu0 }
 0x383   :  { %v865_v31 = vadd.f32 %v4551_v8, %v864_v29 }
 0x384   :  { %v1742_v32 = vpop.f32.mrf.mxu1  ;;  %v2252_v33 = vpop.f32.mrf.mxu2 }
 0x385   :  { %v1056_v34 = vmax.f32 %v865_v31, 0.0  ;;  %v1743_v36 = vadd.f32 %v4634_v11, %v1742_v32  ;;  %v2988_v38 = vmax.f32 %v2987_v23, %v2252_v33  ;;  %v2653_v39 = vpop.f32.mrf.mxu3  ;;  %3499 = vmatmul.msk.f32.gmra.mxu0 %vm170_vm1, %v148_v30  ;;  %v152_v30 = vld [vmem:[%s5001_s0 + $0x3a0] sm:$0xff] }
 0x386   :  { %v3009_v40 = vmax.f32 %v3008_v27, %v2653_v39 }
 0x387   :  { %v1966_v41 = vmax.f32 %v1743_v36, 0.0  ;;  %v2989_v42 = vrot.slane %v2988_v38, 4  ;;  %3611 = vmatmul.msk.f32.gmra.mxu1 %vm1100_vm2, %v1056_v34 }
 0x388   :  { %v3010_v43 = vrot.slane %v3009_v40, 4 }
 0x389   :  { %v2990_v44 = vmax.f32 %v2988_v38, %v2989_v42  ;;  %2302 = vmatmul.f32.gmra.mxu2 %v1966_v41  ;;  %2703 = vmatmul.f32.gmra.mxu3 %v1966_v41 }
 0x38a   :  { %v3011_v60 = vmax.f32 %v3009_v40, %v3010_v43  ;;  %v867_v48 = vpop.f32.mrf.mxu0  ;;  %v153_v43 = vld [vmem:[%s5001_s0 + $0x3a8] sm:$0xff] }
 0x38b   :  { %v2991_v45 = vrot.slane %v2990_v44, 2  ;;  %v868_v50 = vadd.f32 %v4551_v8, %v867_v48 }
 0x38c   :  { %v3012_v47 = vrot.slane %v3011_v60, 2  ;;  %v1745_v51 = vpop.f32.mrf.mxu1  ;;  %v2255_v52 = vpop.f32.mrf.mxu2 }
 0x38d   :  { %v2992_v53 = vmax.f32 %v2990_v44, %v2991_v45  ;;  %v1057_v54 = vmax.f32 %v868_v50, 0.0  ;;  %v1746_v26 = vadd.f32 %v4634_v11, %v1745_v51  ;;  %v2656_v56 = vpop.f32.mrf.mxu3  ;;  %3500 = vmatmul.msk.f32.gmra.mxu0 %vm170_vm1, %v149_v49 }
 0x38e   :  { %v3013_v57 = vmax.f32 %v3011_v60, %v3012_v47 }
 0x38f   :  { %v2993_v61 = vrot.slane %v2992_v53, 1  ;;  %v1967_v62 = vmax.f32 %v1746_v26, 0.0  ;;  %3612 = vmatmul.msk.f32.gmra.mxu1 %vm1100_vm2, %v1057_v54  ;;  %v154_v54 = vld [vmem:[%s5001_s0 + $0x3b0] sm:$0xff] }
 0x390   :  { %v3014_v63 = vrot.slane %v3013_v57, 1 }
 0x391   :  { %v2994_v0 = vmax.f32 %v2992_v53, %v2993_v61  ;;  %2305 = vmatmul.f32.gmra.mxu2 %v1967_v62  ;;  %2706 = vmatmul.f32.gmra.mxu3 %v1967_v62 }
 0x392   :  { %v3015_v1 = vmax.f32 %v3013_v57, %v3014_v63  ;;  %v870_v2 = vpop.f32.mrf.mxu0 }
 0x393   :  { %v3196_v4 = vadd.f32 %v4462_v12, %v2994_v0  ;;  %v871_v35 = vadd.f32 %v4551_v8, %v870_v2 }
 0x394   :  { %v3197_v37 = vadd.f32 %v4464_v16, %v3015_v1  ;;  %v1748_v5 = vpop.f32.mrf.mxu1  ;;  %v2258_v6 = vpop.f32.mrf.mxu2 }
 0x395   :  { %v3264_v7 = vrot.slane %v3196_v4, 5  ;;  %v1058_v55 = vmax.f32 %v871_v35, 0.0  ;;  %v1749_v9 = vadd.f32 %v4634_v11, %v1748_v5  ;;  %v3016_v10 = vmax.f32 %v2255_v52, %v2258_v6  ;;  %v2659_v46 = vpop.f32.mrf.mxu3  ;;  %3501 = vmatmul.msk.f32.gmra.mxu0 %vm170_vm1, %v150_v3  ;;  %v3212_v3 = vld [vmem:[%s5008_s7 + $0x30] sm:$0xff]  ;;  %v155_v35 = vld [vmem:[%s5001_s0 + $0x3b8] sm:$0xff] }
 0x396   :  { %v3283_v13 = vrot.slane %v3197_v37, 5  ;;  %v3037_v14 = vmax.f32 %v2656_v56, %v2659_v46  ;;  %3304 = vmatpush.msrb.mxu0 %v3212_v3  ;;  %v3228_v46 = vld [vmem:[%s5008_s7 + $0xb0] sm:$0xff]  ;;  %v160_v3 = vld [vmem:[%s5001_s0 + $0x3e0] sm:$0xff] }
 0x397   :  { %v1968_v15 = vmax.f32 %v1749_v9, 0.0  ;;  %3613 = vmatmul.msk.f32.gmra.mxu1 %vm1100_vm2, %v1058_v55  ;;  %v4752_v17 = vsel %vm3265_vm5, %v3264_v7, %v4615_v58 }
 0x398   :  { %v4755_v18 = vsel %vm3265_vm5, %v3283_v13, %v4618_v59  ;;  %3324 = vmatpush.msrb.mxu1 %v3228_v46 }
 0x399   :  { %2308 = vmatmul.f32.gmra.mxu2 %v1968_v15  ;;  %2709 = vmatmul.f32.gmra.mxu3 %v1968_v15 }
 0x39a   :  { %v873_v19 = vpop.f32.mrf.mxu0 }
 0x39b   :  { %v874_v21 = vadd.f32 %v4551_v8, %v873_v19  ;;  %v156_v19 = vld [vmem:[%s5001_s0 + $0x3c0] sm:$0xff] }
 0x39c   :  { %v1751_v22 = vpop.f32.mrf.mxu1  ;;  %v2261_v23 = vpop.f32.mrf.mxu2 }
 0x39d   :  { %v1059_v24 = vmax.f32 %v874_v21, 0.0  ;;  %v1752_v25 = vadd.f32 %v4634_v11, %v1751_v22  ;;  %v3017_v27 = vmax.f32 %v3016_v10, %v2261_v23  ;;  %v2662_v58 = vpop.f32.mrf.mxu3  ;;  %3502 = vmatmul.msk.f32.gmra.mxu0 %vm170_vm1, %v151_v20 }
 0x39e   :  { %v3038_v59 = vmax.f32 %v3037_v14, %v2662_v58 }
 0x39f   :  { %v1969_v28 = vmax.f32 %v1752_v25, 0.0  ;;  %3614 = vmatmul.msk.f32.gmra.mxu1 %vm1100_vm2, %v1059_v24 }
 0x3a1   :  { %2311 = vmatmul.f32.gmra.mxu2 %v1969_v28  ;;  %2712 = vmatmul.f32.gmra.mxu3 %v1969_v28 }
 0x3a2   :  { %v876_v29 = vpop.f32.mrf.mxu0 }
 0x3a3   :  { %v877_v31 = vadd.f32 %v4551_v8, %v876_v29  ;;  %v157_v29 = vld [vmem:[%s5001_s0 + $0x3c8] sm:$0xff] }
 0x3a4   :  { %v1754_v32 = vpop.f32.mrf.mxu1  ;;  %v2264_v33 = vpop.f32.mrf.mxu2 }
 0x3a5   :  { %v1060_v34 = vmax.f32 %v877_v31, 0.0  ;;  %v1755_v36 = vadd.f32 %v4634_v11, %v1754_v32  ;;  %v3018_v38 = vmax.f32 %v3017_v27, %v2264_v33  ;;  %v2665_v39 = vpop.f32.mrf.mxu3  ;;  %3503 = vmatmul.msk.f32.gmra.mxu0 %vm170_vm1, %v152_v30 }
 0x3a6   :  { %v3039_v40 = vmax.f32 %v3038_v59, %v2665_v39 }
 0x3a7   :  { %v1970_v41 = vmax.f32 %v1755_v36, 0.0  ;;  %3615 = vmatmul.msk.f32.gmra.mxu1 %vm1100_vm2, %v1060_v34 }
 0x3a9   :  { %2314 = vmatmul.f32.gmra.mxu2 %v1970_v41  ;;  %2715 = vmatmul.f32.gmra.mxu3 %v1970_v41 }
 0x3aa   :  { %v879_v42 = vpop.f32.mrf.mxu0 }
 0x3ab   :  { %v880_v44 = vadd.f32 %v4551_v8, %v879_v42  ;;  %v4818_v42 = vld [vmem:[%s5003_s2] ss:$0 sm:$0xff] }
 0x3ac   :  { %v1757_v60 = vpop.f32.mrf.mxu1  ;;  %v2267_v48 = vpop.f32.mrf.mxu2 }
 0x3ad   :  { %v1061_v49 = vmax.f32 %v880_v44, 0.0  ;;  %v1758_v45 = vadd.f32 %v4634_v11, %v1757_v60  ;;  %v3019_v50 = vmax.f32 %v3018_v38, %v2267_v48  ;;  %v2668_v47 = vpop.f32.mrf.mxu3  ;;  %3504 = vmatmul.msk.f32.gmra.mxu0 %vm170_vm1, %v153_v43 }
 0x3ae   :  { %v3040_v51 = vmax.f32 %v3039_v40, %v2668_v47 }
 0x3af   :  { %v1971_v52 = vmax.f32 %v1758_v45, 0.0  ;;  %3616 = vmatmul.msk.f32.gmra.mxu1 %vm1100_vm2, %v1061_v49 }
 0x3b1   :  { %2317 = vmatmul.f32.gmra.mxu2 %v1971_v52  ;;  %2718 = vmatmul.f32.gmra.mxu3 %v1971_v52 }
 0x3b2   :  { %v882_v53 = vpop.f32.mrf.mxu0 }
 0x3b3   :  { %v883_v26 = vadd.f32 %v4551_v8, %v882_v53  ;;  %v159_v53 = vld [vmem:[%s5001_s0 + $0x3d8] sm:$0xff] }
 0x3b4   :  { %v1760_v56 = vpop.f32.mrf.mxu1  ;;  %v2270_v57 = vpop.f32.mrf.mxu2 }
 0x3b5   :  { %v1062_v61 = vmax.f32 %v883_v26, 0.0  ;;  %v1761_v62 = vadd.f32 %v4634_v11, %v1760_v56  ;;  %v3020_v63 = vmax.f32 %v3019_v50, %v2270_v57  ;;  %v2671_v0 = vpop.f32.mrf.mxu3  ;;  %3505 = vmatmul.msk.f32.gmra.mxu0 %vm170_vm1, %v154_v54 }
 0x3b6   :  { %v3041_v1 = vmax.f32 %v3040_v51, %v2671_v0 }
 0x3b7   :  { %v1972_v2 = vmax.f32 %v1761_v62, 0.0  ;;  %3617 = vmatmul.msk.f32.gmra.mxu1 %vm1100_vm2, %v1062_v61 }
 0x3b9   :  { %2320 = vmatmul.f32.gmra.mxu2 %v1972_v2  ;;  %2721 = vmatmul.f32.gmra.mxu3 %v1972_v2 }
 0x3ba   :  { %v885_v4 = vpop.f32.mrf.mxu0 }
 0x3bb   :  { %v886_v37 = vadd.f32 %v4551_v8, %v885_v4 }
 0x3bc   :  { %v1763_v5 = vpop.f32.mrf.mxu1  ;;  %v2273_v6 = vpop.f32.mrf.mxu2 }
 0x3bd   :  { %v1063_v7 = vmax.f32 %v886_v37, 0.0  ;;  %v1764_v55 = vadd.f32 %v4634_v11, %v1763_v5  ;;  %v3021_v9 = vmax.f32 %v3020_v63, %v2273_v6  ;;  %v2674_v10 = vpop.f32.mrf.mxu3  ;;  %3506 = vmatmul.msk.f32.gmra.mxu0 %vm170_vm1, %v155_v35 }
 0x3be   :  { %v3042_v13 = vmax.f32 %v3041_v1, %v2674_v10 }
 0x3bf   :  { %v1973_v14 = vmax.f32 %v1764_v55, 0.0  ;;  %3618 = vmatmul.msk.f32.gmra.mxu1 %vm1100_vm2, %v1063_v7 }
 0x3c1   :  { %2323 = vmatmul.f32.gmra.mxu2 %v1973_v14  ;;  %2724 = vmatmul.f32.gmra.mxu3 %v1973_v14 }
 0x3c2   :  { %v888_v15 = vpop.f32.mrf.mxu0 }
 0x3c3   :  { %v889_v20 = vadd.f32 %v4551_v8, %v888_v15 }
 0x3c4   :  { %v1766_v21 = vpop.f32.mrf.mxu1  ;;  %v2276_v22 = vpop.f32.mrf.mxu2 }
 0x3c5   :  { %v1064_v23 = vmax.f32 %v889_v20, 0.0  ;;  %v1767_v24 = vadd.f32 %v4634_v11, %v1766_v21  ;;  %v3022_v25 = vmax.f32 %v3021_v9, %v2276_v22  ;;  %v2677_v27 = vpop.f32.mrf.mxu3  ;;  %3507 = vmatmul.msk.f32.gmra.mxu0 %vm170_vm1, %v156_v19 }
 0x3c6   :  { %v3043_v58 = vmax.f32 %v3042_v13, %v2677_v27  ;;  %v161_v13 = vld [vmem:[%s5001_s0 + $0x3e8] sm:$0xff] }
 0x3c7   :  { %v1974_v59 = vmax.f32 %v1767_v24, 0.0  ;;  %3619 = vmatmul.msk.f32.gmra.mxu1 %vm1100_vm2, %v1064_v23 }
 0x3c9   :  { %2326 = vmatmul.f32.gmra.mxu2 %v1974_v59  ;;  %2727 = vmatmul.f32.gmra.mxu3 %v1974_v59 }
 0x3ca   :  { %v891_v28 = vpop.f32.mrf.mxu0 }
 0x3cb   :  { %v892_v30 = vadd.f32 %v4551_v8, %v891_v28  ;;  %v158_v8 = vld [vmem:[%s5001_s0 + $0x3d0] sm:$0xff] }
 0x3cc   :  { %v1769_v31 = vpop.f32.mrf.mxu1  ;;  %v2279_v32 = vpop.f32.mrf.mxu2 }
 0x3cd   :  { %v1065_v33 = vmax.f32 %v892_v30, 0.0  ;;  %v1770_v34 = vadd.f32 %v4634_v11, %v1769_v31  ;;  %v3023_v36 = vmax.f32 %v3022_v25, %v2279_v32  ;;  %v2680_v38 = vpop.f32.mrf.mxu3  ;;  %3508 = vmatmul.msk.f32.gmra.mxu0 %vm170_vm1, %v157_v29 }
 0x3ce   :  { %v3044_v39 = vmax.f32 %v3043_v58, %v2680_v38  ;;  %v162_v58 = vld [vmem:[%s5001_s0 + $0x3f0] sm:$0xff]  ;;  %v3211_v38 = vld [vmem:[%s5008_s7 + $0x28] sm:$0xff] }
 0x3cf   :  { %v1975_v40 = vmax.f32 %v1770_v34, 0.0  ;;  %3620 = vmatmul.msk.f32.gmra.mxu1 %vm1100_vm2, %v1065_v33  ;;  %3305 = vmatpush.msrb.mxu0 %v3211_v38 }
 0x3d1   :  { %2329 = vmatmul.f32.gmra.mxu2 %v1975_v40  ;;  %2730 = vmatmul.f32.gmra.mxu3 %v1975_v40  ;;  %v163_v40 = vld [vmem:[%s5001_s0 + $0x3f8] sm:$0xff]  ;;  %s3372_s0 = sshll.u32 %s5011_s10, 4  ;;  %s3361_s10 = sshll.u32 %s5010_s9, 4  ;;  %s3373_s0 = int_to_ptr.hbm [resolvable:$true] %s3372_s0  ;;  %s3362_s10 = int_to_ptr.hbm [resolvable:$true] %s3361_s10 }
 0x3d2   :  { %v894_v41 = vpop.f32.mrf.mxu0 }
 0x3d3   :  { %v895_v43 = vadd.f32 %v4818_v42, %v894_v41 }
 0x3d4   :  { %v1772_v44 = vpop.f32.mrf.mxu1  ;;  %v2282_v60 = vpop.f32.mrf.mxu2 }
 0x3d5   :  { %v1066_v48 = vmax.f32 %v895_v43, 0.0  ;;  %v1773_v49 = vadd.f32 %v4634_v11, %v1772_v44  ;;  %v3024_v45 = vmax.f32 %v3023_v36, %v2282_v60  ;;  %v2683_v50 = vpop.f32.mrf.mxu3  ;;  %3509 = vmatmul.msk.f32.gmra.mxu0 %vm170_vm1, %v158_v8 }
 0x3d6   :  { %v3045_v47 = vmax.f32 %v3044_v39, %v2683_v50 }
 0x3d7   :  { %v1976_v51 = vmax.f32 %v1773_v49, 0.0  ;;  %3621 = vmatmul.msk.f32.gmra.mxu1 %vm1100_vm2, %v1066_v48 }
 0x3d9   :  { %2332 = vmatmul.f32.gmra.mxu2 %v1976_v51  ;;  %2733 = vmatmul.f32.gmra.mxu3 %v1976_v51 }
 0x3da   :  { %v897_v52 = vpop.f32.mrf.mxu0 }
 0x3db   :  { %v898_v54 = vadd.f32 %v4818_v42, %v897_v52 }
 0x3dc   :  { %v1775_v26 = vpop.f32.mrf.mxu1  ;;  %v2285_v56 = vpop.f32.mrf.mxu2 }
 0x3dd   :  { %v1067_v57 = vmax.f32 %v898_v54, 0.0  ;;  %v1776_v61 = vadd.f32 %v4634_v11, %v1775_v26  ;;  %v3025_v62 = vmax.f32 %v3024_v45, %v2285_v56  ;;  %v2686_v63 = vpop.f32.mrf.mxu3  ;;  %3510 = vmatmul.msk.f32.gmra.mxu0 %vm170_vm1, %v159_v53  ;;  %v3227_v45 = vld [vmem:[%s5008_s7 + $0xa8] sm:$0xff] }
 0x3de   :  { %v3046_v0 = vmax.f32 %v3045_v47, %v2686_v63  ;;  %3325 = vmatpush.msrb.mxu1 %v3227_v45 }
 0x3df   :  { %v1977_v1 = vmax.f32 %v1776_v61, 0.0  ;;  %3622 = vmatmul.msk.f32.gmra.mxu1 %vm1100_vm2, %v1067_v57 }
 0x3e1   :  { %2335 = vmatmul.f32.gmra.mxu2 %v1977_v1  ;;  %2736 = vmatmul.f32.gmra.mxu3 %v1977_v1 }
 0x3e2   :  { %v900_v2 = vpop.f32.mrf.mxu0 }
 0x3e3   :  { %v901_v4 = vadd.f32 %v4818_v42, %v900_v2 }
 0x3e4   :  { %v1778_v35 = vpop.f32.mrf.mxu1  ;;  %v2288_v37 = vpop.f32.mrf.mxu2 }
 0x3e5   :  { %v1068_v5 = vmax.f32 %v901_v4, 0.0  ;;  %v1779_v6 = vadd.f32 %v4634_v11, %v1778_v35  ;;  %v3026_v7 = vmax.f32 %v3025_v62, %v2288_v37  ;;  %v2689_v55 = vpop.f32.mrf.mxu3  ;;  %3511 = vmatmul.msk.f32.gmra.mxu0 %vm170_vm1, %v160_v3 }
 0x3e6   :  { %v3047_v9 = vmax.f32 %v3046_v0, %v2689_v55 }
 0x3e7   :  { %v1978_v10 = vmax.f32 %v1779_v6, 0.0  ;;  %3623 = vmatmul.msk.f32.gmra.mxu1 %vm1100_vm2, %v1068_v5 }
 0x3e9   :  { %2338 = vmatmul.f32.gmra.mxu2 %v1978_v10  ;;  %2739 = vmatmul.f32.gmra.mxu3 %v1978_v10 }
 0x3ea   :  { %v903_v46 = vpop.f32.mrf.mxu0 }
 0x3eb   :  { %v904_v14 = vadd.f32 %v4818_v42, %v903_v46 }
 0x3ec   :  { %v1781_v15 = vpop.f32.mrf.mxu1  ;;  %v2291_v19 = vpop.f32.mrf.mxu2 }
 0x3ed   :  { %v1069_v20 = vmax.f32 %v904_v14, 0.0  ;;  %v1782_v21 = vadd.f32 %v4634_v11, %v1781_v15  ;;  %v3027_v22 = vmax.f32 %v3026_v7, %v2291_v19  ;;  %v2692_v23 = vpop.f32.mrf.mxu3  ;;  %3512 = vmatmul.msk.f32.gmra.mxu0 %vm170_vm1, %v161_v13 }
 0x3ee   :  { %v3048_v24 = vmax.f32 %v3047_v9, %v2692_v23 }
 0x3ef   :  { %v1979_v25 = vmax.f32 %v1782_v21, 0.0  ;;  %3624 = vmatmul.msk.f32.gmra.mxu1 %vm1100_vm2, %v1069_v20 }
 0x3f1   :  { %2341 = vmatmul.f32.gmra.mxu2 %v1979_v25  ;;  %2742 = vmatmul.f32.gmra.mxu3 %v1979_v25 }
 0x3f2   :  { %v906_v27 = vpop.f32.mrf.mxu0 }
 0x3f3   :  { %v907_v59 = vadd.f32 %v4818_v42, %v906_v27 }
 0x3f4   :  { %v1784_v28 = vpop.f32.mrf.mxu1  ;;  %v2294_v29 = vpop.f32.mrf.mxu2 }
 0x3f5   :  { %v1070_v30 = vmax.f32 %v907_v59, 0.0  ;;  %v1785_v31 = vadd.f32 %v4634_v11, %v1784_v28  ;;  %v3028_v32 = vmax.f32 %v3027_v22, %v2294_v29  ;;  %v2695_v33 = vpop.f32.mrf.mxu3  ;;  %3513 = vmatmul.msk.f32.gmra.mxu0 %vm170_vm1, %v162_v58 }
 0x3f6   :  { %v3049_v34 = vmax.f32 %v3048_v24, %v2695_v33 }
 0x3f7   :  { %v1980_v36 = vmax.f32 %v1785_v31, 0.0  ;;  %3625 = vmatmul.msk.f32.gmra.mxu1 %vm1100_vm2, %v1070_v30 }
 0x3f9   :  { %2344 = vmatmul.f32.gmra.mxu2 %v1980_v36  ;;  %2745 = vmatmul.f32.gmra.mxu3 %v1980_v36 }
 0x3fa   :  { %v909_v39 = vpop.f32.mrf.mxu0 }
 0x3fb   :  { %v910_v41 = vadd.f32 %v4818_v42, %v909_v39 }
 0x3fc   :  { %v1787_v8 = vpop.f32.mrf.mxu1  ;;  %v2297_v43 = vpop.f32.mrf.mxu2 }
 0x3fd   :  { %v1071_v44 = vmax.f32 %v910_v41, 0.0  ;;  %v1788_v60 = vadd.f32 %v4634_v11, %v1787_v8  ;;  %v3029_v48 = vmax.f32 %v3028_v32, %v2297_v43  ;;  %v2698_v49 = vpop.f32.mrf.mxu3  ;;  %3514 = vmatmul.msk.f32.gmra.mxu0 %vm170_vm1, %v163_v40 }
 0x3fe   :  { %v3050_v50 = vmax.f32 %v3049_v34, %v2698_v49 }
 0x3ff   :  { %v1981_v47 = vmax.f32 %v1788_v60, 0.0  ;;  %3626 = vmatmul.msk.f32.gmra.mxu1 %vm1100_vm2, %v1071_v44 }
 0x401   :  { %2347 = vmatmul.f32.gmra.mxu2 %v1981_v47  ;;  %2748 = vmatmul.f32.gmra.mxu3 %v1981_v47 }
 0x402   :  { %v912_v51 = vpop.f32.mrf.mxu0 }
 0x403   :  { %v913_v52 = vadd.f32 %v4818_v42, %v912_v51 }
 0x404   :  { %v1790_v53 = vpop.f32.mrf.mxu1  ;;  %v2300_v54 = vpop.f32.mrf.mxu2 }
 0x405   :  { %v1072_v26 = vmax.f32 %v913_v52, 0.0  ;;  %v1791_v56 = vadd.f32 %v4634_v11, %v1790_v53  ;;  %v3030_v57 = vmax.f32 %v3029_v48, %v2300_v54  ;;  %v2701_v61 = vpop.f32.mrf.mxu3  ;;  %v4889_v52 = vld [vmem:[%s5005_s4] ss:$0 sm:$0xff] }
 0x406   :  { %v3051_v62 = vmax.f32 %v3050_v50, %v2701_v61 }
 0x407   :  { %v1982_v63 = vmax.f32 %v1791_v56, 0.0  ;;  %v3031_v0 = vrot.slane %v3030_v57, 4  ;;  %3627 = vmatmul.msk.f32.gmra.mxu1 %vm1100_vm2, %v1072_v26 }
 0x408   :  { %v3052_v1 = vrot.slane %v3051_v62, 4 }
 0x409   :  { %v3032_v2 = vmax.f32 %v3030_v57, %v3031_v0  ;;  %2350 = vmatmul.f32.gmra.mxu2 %v1982_v63  ;;  %2751 = vmatmul.f32.gmra.mxu3 %v1982_v63 }
 0x40a   :  { %v3053_v3 = vmax.f32 %v3051_v62, %v3052_v1  ;;  %v915_v4 = vpop.f32.mrf.mxu0 }
 0x40b   :  { %v3033_v35 = vrot.slane %v3032_v2, 2  ;;  %v916_v37 = vadd.f32 %v4818_v42, %v915_v4 }
 0x40c   :  { %v3054_v5 = vrot.slane %v3053_v3, 2  ;;  %v1793_v6 = vpop.f32.mrf.mxu1  ;;  %v2303_v7 = vpop.f32.mrf.mxu2 }
 0x40d   :  { %v3034_v55 = vmax.f32 %v3032_v2, %v3033_v35  ;;  %v1073_v9 = vmax.f32 %v916_v37, 0.0  ;;  %v1794_v10 = vadd.f32 %v4634_v11, %v1793_v6  ;;  %v2704_v46 = vpop.f32.mrf.mxu3 }
 0x40e   :  { %v3055_v13 = vmax.f32 %v3053_v3, %v3054_v5 }
 0x40f   :  { %v3035_v14 = vrot.slane %v3034_v55, 1  ;;  %v1983_v15 = vmax.f32 %v1794_v10, 0.0  ;;  %3628 = vmatmul.msk.f32.gmra.mxu1 %vm1100_vm2, %v1073_v9 }
 0x410   :  { %v3056_v19 = vrot.slane %v3055_v13, 1 }
 0x411   :  { %v3036_v20 = vmax.f32 %v3034_v55, %v3035_v14  ;;  %2353 = vmatmul.f32.gmra.mxu2 %v1983_v15  ;;  %2754 = vmatmul.f32.gmra.mxu3 %v1983_v15  ;;  %v3210_v15 = vld [vmem:[%s5008_s7 + $0x20] sm:$0xff] }
 0x412   :  { %v3057_v21 = vmax.f32 %v3055_v13, %v3056_v19  ;;  %v918_v22 = vpop.f32.mrf.mxu0  ;;  %3306 = vmatpush.msrb.mxu0 %v3210_v15 }
 0x413   :  { %v3198_v23 = vadd.f32 %v4462_v12, %v3036_v20  ;;  %v919_v24 = vadd.f32 %v4818_v42, %v918_v22 }
 0x414   :  { %v3199_v25 = vadd.f32 %v4464_v16, %v3057_v21  ;;  %v1796_v27 = vpop.f32.mrf.mxu1  ;;  %v2306_v58 = vpop.f32.mrf.mxu2 }
 0x415   :  { %v3267_v59 = vrot.slane %v3198_v23, 4  ;;  %v1074_v28 = vmax.f32 %v919_v24, 0.0  ;;  %v1797_v29 = vadd.f32 %v4634_v11, %v1796_v27  ;;  %v3058_v30 = vmax.f32 %v2303_v7, %v2306_v58  ;;  %v2707_v31 = vpop.f32.mrf.mxu3  ;;  %v3226_v58 = vld [vmem:[%s5008_s7 + $0xa0] sm:$0xff] }
 0x416   :  { %v3285_v32 = vrot.slane %v3199_v25, 4  ;;  %v3079_v33 = vmax.f32 %v2704_v46, %v2707_v31  ;;  %3326 = vmatpush.msrb.mxu1 %v3226_v58 }
 0x417   :  { %v1984_v34 = vmax.f32 %v1797_v29, 0.0  ;;  %3629 = vmatmul.msk.f32.gmra.mxu1 %vm1100_vm2, %v1074_v28  ;;  %v4877_v36 = vsel %vm3268_vm6, %v3267_v59, %v4752_v17 }
 0x418   :  { %v4880_v38 = vsel %vm3268_vm6, %v3285_v32, %v4755_v18 }
 0x419   :  { %2356 = vmatmul.f32.gmra.mxu2 %v1984_v34  ;;  %2757 = vmatmul.f32.gmra.mxu3 %v1984_v34 }
 0x41a   :  { %v921_v39 = vpop.f32.mrf.mxu0 }
 0x41b   :  { %v922_v40 = vadd.f32 %v4818_v42, %v921_v39 }
 0x41c   :  { %v1799_v41 = vpop.f32.mrf.mxu1  ;;  %v2309_v8 = vpop.f32.mrf.mxu2 }
 0x41d   :  { %v1075_v43 = vmax.f32 %v922_v40, 0.0  ;;  %v1800_v44 = vadd.f32 %v4634_v11, %v1799_v41  ;;  %v3059_v60 = vmax.f32 %v3058_v30, %v2309_v8  ;;  %v2710_v48 = vpop.f32.mrf.mxu3 }
 0x41e   :  { %v3080_v49 = vmax.f32 %v3079_v33, %v2710_v48 }
 0x41f   :  { %v1985_v45 = vmax.f32 %v1800_v44, 0.0  ;;  %3630 = vmatmul.msk.f32.gmra.mxu1 %vm1100_vm2, %v1075_v43 }
 0x421   :  { %2359 = vmatmul.f32.gmra.mxu2 %v1985_v45  ;;  %2760 = vmatmul.f32.gmra.mxu3 %v1985_v45 }
 0x422   :  { %v924_v17 = vpop.f32.mrf.mxu0 }
 0x423   :  { %v925_v18 = vadd.f32 %v4818_v42, %v924_v17 }
 0x424   :  { %v1802_v50 = vpop.f32.mrf.mxu1  ;;  %v2312_v47 = vpop.f32.mrf.mxu2 }
 0x425   :  { %v1076_v51 = vmax.f32 %v925_v18, 0.0  ;;  %v1803_v11 = vadd.f32 %v4889_v52, %v1802_v50  ;;  %v3060_v53 = vmax.f32 %v3059_v60, %v2312_v47  ;;  %v2713_v54 = vpop.f32.mrf.mxu3 }
 0x426   :  { %v3081_v26 = vmax.f32 %v3080_v49, %v2713_v54 }
 0x427   :  { %v1986_v56 = vmax.f32 %v1803_v11, 0.0  ;;  %3631 = vmatmul.msk.f32.gmra.mxu1 %vm1100_vm2, %v1076_v51 }
 0x429   :  { %2362 = vmatmul.f32.gmra.mxu2 %v1986_v56  ;;  %2763 = vmatmul.f32.gmra.mxu3 %v1986_v56 }
 0x42a   :  { %v927_v57 = vpop.f32.mrf.mxu0 }
 0x42b   :  { %v928_v61 = vadd.f32 %v4818_v42, %v927_v57 }
 0x42c   :  { %v1805_v62 = vpop.f32.mrf.mxu1  ;;  %v2315_v63 = vpop.f32.mrf.mxu2 }
 0x42d   :  { %v1077_v0 = vmax.f32 %v928_v61, 0.0  ;;  %v1806_v1 = vadd.f32 %v4889_v52, %v1805_v62  ;;  %v3061_v2 = vmax.f32 %v3060_v53, %v2315_v63  ;;  %v2716_v3 = vpop.f32.mrf.mxu3 }
 0x42e   :  { %v3082_v4 = vmax.f32 %v3081_v26, %v2716_v3 }
 0x42f   :  { %v1987_v35 = vmax.f32 %v1806_v1, 0.0  ;;  %3632 = vmatmul.msk.f32.gmra.mxu1 %vm1100_vm2, %v1077_v0 }
 0x431   :  { %2365 = vmatmul.f32.gmra.mxu2 %v1987_v35  ;;  %2766 = vmatmul.f32.gmra.mxu3 %v1987_v35 }
 0x432   :  { %v930_v37 = vpop.f32.mrf.mxu0 }
 0x433   :  { %v931_v5 = vadd.f32 %v4818_v42, %v930_v37 }
 0x434   :  { %v1808_v6 = vpop.f32.mrf.mxu1  ;;  %v2318_v7 = vpop.f32.mrf.mxu2 }
 0x435   :  { %v1078_v55 = vmax.f32 %v931_v5, 0.0  ;;  %v1809_v9 = vadd.f32 %v4889_v52, %v1808_v6  ;;  %v3062_v10 = vmax.f32 %v3061_v2, %v2318_v7  ;;  %v2719_v46 = vpop.f32.mrf.mxu3 }
 0x436   :  { %v3083_v13 = vmax.f32 %v3082_v4, %v2719_v46 }
 0x437   :  { %v1988_v14 = vmax.f32 %v1809_v9, 0.0  ;;  %3633 = vmatmul.msk.f32.gmra.mxu1 %vm1100_vm2, %v1078_v55 }
 0x439   :  { %2368 = vmatmul.f32.gmra.mxu2 %v1988_v14  ;;  %2769 = vmatmul.f32.gmra.mxu3 %v1988_v14 }
 0x43a   :  { %v933_v19 = vpop.f32.mrf.mxu0 }
 0x43b   :  { %v934_v20 = vadd.f32 %v4818_v42, %v933_v19 }
 0x43c   :  { %v1811_v21 = vpop.f32.mrf.mxu1  ;;  %v2321_v22 = vpop.f32.mrf.mxu2 }
 0x43d   :  { %v1079_v23 = vmax.f32 %v934_v20, 0.0  ;;  %v1812_v24 = vadd.f32 %v4889_v52, %v1811_v21  ;;  %v3063_v25 = vmax.f32 %v3062_v10, %v2321_v22  ;;  %v2722_v27 = vpop.f32.mrf.mxu3 }
 0x43e   :  { %v3084_v59 = vmax.f32 %v3083_v13, %v2722_v27 }
 0x43f   :  { %v1989_v28 = vmax.f32 %v1812_v24, 0.0  ;;  %3634 = vmatmul.msk.f32.gmra.mxu1 %vm1100_vm2, %v1079_v23 }
 0x441   :  { %2371 = vmatmul.f32.gmra.mxu2 %v1989_v28  ;;  %2772 = vmatmul.f32.gmra.mxu3 %v1989_v28 }
 0x442   :  { %v936_v29 = vpop.f32.mrf.mxu0 }
 0x443   :  { %v937_v30 = vadd.f32 %v4818_v42, %v936_v29 }
 0x444   :  { %v1814_v31 = vpop.f32.mrf.mxu1  ;;  %v2324_v32 = vpop.f32.mrf.mxu2 }
 0x445   :  { %v1080_v33 = vmax.f32 %v937_v30, 0.0  ;;  %v1815_v34 = vadd.f32 %v4889_v52, %v1814_v31  ;;  %v3064_v39 = vmax.f32 %v3063_v25, %v2324_v32  ;;  %v2725_v40 = vpop.f32.mrf.mxu3 }
 0x446   :  { %v3085_v41 = vmax.f32 %v3084_v59, %v2725_v40 }
 0x447   :  { %v1990_v8 = vmax.f32 %v1815_v34, 0.0  ;;  %3635 = vmatmul.msk.f32.gmra.mxu1 %vm1100_vm2, %v1080_v33 }
 0x449   :  { %2374 = vmatmul.f32.gmra.mxu2 %v1990_v8  ;;  %2775 = vmatmul.f32.gmra.mxu3 %v1990_v8 }
 0x44a   :  { %v939_v43 = vpop.f32.mrf.mxu0 }
 0x44b   :  { %v940_v44 = vadd.f32 %v4818_v42, %v939_v43 }
 0x44c   :  { %v1817_v60 = vpop.f32.mrf.mxu1  ;;  %v2327_v48 = vpop.f32.mrf.mxu2 }
 0x44d   :  { %v1081_v49 = vmax.f32 %v940_v44, 0.0  ;;  %v1818_v45 = vadd.f32 %v4889_v52, %v1817_v60  ;;  %v3065_v17 = vmax.f32 %v3064_v39, %v2327_v48  ;;  %v2728_v18 = vpop.f32.mrf.mxu3  ;;  %v3209_v60 = vld [vmem:[%s5008_s7 + $0x18] sm:$0xff] }
 0x44e   :  { %v3086_v50 = vmax.f32 %v3085_v41, %v2728_v18  ;;  %3307 = vmatpush.msrb.mxu0 %v3209_v60  ;;  %v3225_v48 = vld [vmem:[%s5008_s7 + $0x98] sm:$0xff] }
 0x44f   :  { %v1991_v47 = vmax.f32 %v1818_v45, 0.0  ;;  %3636 = vmatmul.msk.f32.gmra.mxu1 %vm1100_vm2, %v1081_v49 }
 0x450   :  { %3327 = vmatpush.msrb.mxu1 %v3225_v48 }
 0x451   :  { %2377 = vmatmul.f32.gmra.mxu2 %v1991_v47  ;;  %2778 = vmatmul.f32.gmra.mxu3 %v1991_v47 }
 0x452   :  { %v942_v51 = vpop.f32.mrf.mxu0 }
 0x453   :  { %v943_v11 = vadd.f32 %v4818_v42, %v942_v51 }
 0x454   :  { %v1820_v53 = vpop.f32.mrf.mxu1  ;;  %v2330_v54 = vpop.f32.mrf.mxu2 }
 0x455   :  { %v1082_v26 = vmax.f32 %v943_v11, 0.0  ;;  %v1821_v56 = vadd.f32 %v4889_v52, %v1820_v53  ;;  %v3066_v57 = vmax.f32 %v3065_v17, %v2330_v54  ;;  %v2731_v61 = vpop.f32.mrf.mxu3 }
 0x456   :  { %v3087_v62 = vmax.f32 %v3086_v50, %v2731_v61 }
 0x457   :  { %v1992_v63 = vmax.f32 %v1821_v56, 0.0  ;;  %3637 = vmatmul.msk.f32.gmra.mxu1 %vm1100_vm2, %v1082_v26 }
 0x459   :  { %2380 = vmatmul.f32.gmra.mxu2 %v1992_v63  ;;  %2781 = vmatmul.f32.gmra.mxu3 %v1992_v63 }
 0x45a   :  { %v945_v0 = vpop.f32.mrf.mxu0 }
 0x45b   :  { %v946_v1 = vadd.f32 %v4818_v42, %v945_v0 }
 0x45c   :  { %v1823_v2 = vpop.f32.mrf.mxu1  ;;  %v2333_v3 = vpop.f32.mrf.mxu2 }
 0x45d   :  { %v1083_v4 = vmax.f32 %v946_v1, 0.0  ;;  %v1824_v35 = vadd.f32 %v4889_v52, %v1823_v2  ;;  %v3067_v37 = vmax.f32 %v3066_v57, %v2333_v3  ;;  %v2734_v5 = vpop.f32.mrf.mxu3 }
 0x45e   :  { %v3088_v6 = vmax.f32 %v3087_v62, %v2734_v5 }
 0x45f   :  { %v1993_v7 = vmax.f32 %v1824_v35, 0.0  ;;  %3638 = vmatmul.msk.f32.gmra.mxu1 %vm1100_vm2, %v1083_v4 }
 0x461   :  { %2383 = vmatmul.f32.gmra.mxu2 %v1993_v7  ;;  %2784 = vmatmul.f32.gmra.mxu3 %v1993_v7 }
 0x462   :  { %v948_v55 = vpop.f32.mrf.mxu0 }
 0x463   :  { %v949_v9 = vadd.f32 %v4818_v42, %v948_v55 }
 0x464   :  { %v1826_v10 = vpop.f32.mrf.mxu1  ;;  %v2336_v46 = vpop.f32.mrf.mxu2 }
 0x465   :  { %v1084_v13 = vmax.f32 %v949_v9, 0.0  ;;  %v1827_v14 = vadd.f32 %v4889_v52, %v1826_v10  ;;  %v3068_v15 = vmax.f32 %v3067_v37, %v2336_v46  ;;  %v2737_v19 = vpop.f32.mrf.mxu3 }
 0x466   :  { %v3089_v20 = vmax.f32 %v3088_v6, %v2737_v19 }
 0x467   :  { %v1994_v21 = vmax.f32 %v1827_v14, 0.0  ;;  %3639 = vmatmul.msk.f32.gmra.mxu1 %vm1100_vm2, %v1084_v13 }
 0x469   :  { %2386 = vmatmul.f32.gmra.mxu2 %v1994_v21  ;;  %2787 = vmatmul.f32.gmra.mxu3 %v1994_v21 }
 0x46a   :  { %v951_v22 = vpop.f32.mrf.mxu0 }
 0x46b   :  { %v952_v23 = vadd.f32 %v4818_v42, %v951_v22 }
 0x46c   :  { %v1829_v24 = vpop.f32.mrf.mxu1  ;;  %v2339_v25 = vpop.f32.mrf.mxu2 }
 0x46d   :  { %v1085_v27 = vmax.f32 %v952_v23, 0.0  ;;  %v1830_v58 = vadd.f32 %v4889_v52, %v1829_v24  ;;  %v3069_v59 = vmax.f32 %v3068_v15, %v2339_v25  ;;  %v2740_v28 = vpop.f32.mrf.mxu3 }
 0x46e   :  { %v3090_v29 = vmax.f32 %v3089_v20, %v2740_v28 }
 0x46f   :  { %v1995_v30 = vmax.f32 %v1830_v58, 0.0  ;;  %3640 = vmatmul.msk.f32.gmra.mxu1 %vm1100_vm2, %v1085_v27 }
 0x471   :  { %2389 = vmatmul.f32.gmra.mxu2 %v1995_v30  ;;  %2790 = vmatmul.f32.gmra.mxu3 %v1995_v30 }
 0x472   :  { %v954_v31 = vpop.f32.mrf.mxu0 }
 0x473   :  { %v955_v32 = vadd.f32 %v4818_v42, %v954_v31 }
 0x474   :  { %v1832_v33 = vpop.f32.mrf.mxu1  ;;  %v2342_v34 = vpop.f32.mrf.mxu2 }
 0x475   :  { %v1086_v39 = vmax.f32 %v955_v32, 0.0  ;;  %v1833_v40 = vadd.f32 %v4889_v52, %v1832_v33  ;;  %v3070_v41 = vmax.f32 %v3069_v59, %v2342_v34  ;;  %v2743_v8 = vpop.f32.mrf.mxu3 }
 0x476   :  { %v3091_v43 = vmax.f32 %v3090_v29, %v2743_v8 }
 0x477   :  { %v1996_v44 = vmax.f32 %v1833_v40, 0.0  ;;  %3641 = vmatmul.msk.f32.gmra.mxu1 %vm1100_vm2, %v1086_v39 }
 0x479   :  { %2392 = vmatmul.f32.gmra.mxu2 %v1996_v44  ;;  %2793 = vmatmul.f32.gmra.mxu3 %v1996_v44 }
 0x47a   :  { %v957_v49 = vpop.f32.mrf.mxu0 }
 0x47b   :  { %v958_v45 = vadd.f32 %v4818_v42, %v957_v49 }
 0x47c   :  { %v1835_v17 = vpop.f32.mrf.mxu1  ;;  %v2345_v18 = vpop.f32.mrf.mxu2 }
 0x47d   :  { %v1087_v50 = vmax.f32 %v958_v45, 0.0  ;;  %v1836_v47 = vadd.f32 %v4889_v52, %v1835_v17  ;;  %v3071_v51 = vmax.f32 %v3070_v41, %v2345_v18  ;;  %v2746_v11 = vpop.f32.mrf.mxu3 }
 0x47e   :  { %v3092_v53 = vmax.f32 %v3091_v43, %v2746_v11 }
 0x47f   :  { %v1997_v54 = vmax.f32 %v1836_v47, 0.0  ;;  %3642 = vmatmul.msk.f32.gmra.mxu1 %vm1100_vm2, %v1087_v50 }
 0x481   :  { %2395 = vmatmul.f32.gmra.mxu2 %v1997_v54  ;;  %2796 = vmatmul.f32.gmra.mxu3 %v1997_v54 }
 0x484   :  { %v1838_v26 = vpop.f32.mrf.mxu1  ;;  %v2348_v56 = vpop.f32.mrf.mxu2 }
 0x485   :  { %v1839_v57 = vadd.f32 %v4889_v52, %v1838_v26  ;;  %v3072_v61 = vmax.f32 %v3071_v51, %v2348_v56  ;;  %v2749_v62 = vpop.f32.mrf.mxu3 }
 0x486   :  { %v3093_v42 = vmax.f32 %v3092_v53, %v2749_v62  ;;  %v3208_v62 = vld [vmem:[%s5008_s7 + $0x10] sm:$0xff] }
 0x487   :  { %v1998_v63 = vmax.f32 %v1839_v57, 0.0  ;;  %v3073_v0 = vrot.slane %v3072_v61, 4  ;;  %3308 = vmatpush.msrb.mxu0 %v3208_v62 }
 0x488   :  { %v3094_v1 = vrot.slane %v3093_v42, 4 }
 0x489   :  { %v3074_v2 = vmax.f32 %v3072_v61, %v3073_v0  ;;  %2398 = vmatmul.f32.gmra.mxu2 %v1998_v63  ;;  %2799 = vmatmul.f32.gmra.mxu3 %v1998_v63 }
 0x48a   :  { %v3095_v3 = vmax.f32 %v3093_v42, %v3094_v1  ;;  %v3224_v42 = vld [vmem:[%s5008_s7 + $0x90] sm:$0xff] }
 0x48b   :  { %v3075_v4 = vrot.slane %v3074_v2, 2  ;;  %3328 = vmatpush.msrb.mxu1 %v3224_v42 }
 0x48c   :  { %v3096_v35 = vrot.slane %v3095_v3, 2  ;;  %v1841_v37 = vpop.f32.mrf.mxu1  ;;  %v2351_v5 = vpop.f32.mrf.mxu2 }
 0x48d   :  { %v3076_v6 = vmax.f32 %v3074_v2, %v3075_v4  ;;  %v1842_v7 = vadd.f32 %v4889_v52, %v1841_v37  ;;  %v2752_v55 = vpop.f32.mrf.mxu3 }
 0x48e   :  { %v3097_v9 = vmax.f32 %v3095_v3, %v3096_v35 }
 0x48f   :  { %v3077_v10 = vrot.slane %v3076_v6, 1  ;;  %v1999_v46 = vmax.f32 %v1842_v7, 0.0 }
 0x490   :  { %v3098_v13 = vrot.slane %v3097_v9, 1 }
 0x491   :  { %v3078_v14 = vmax.f32 %v3076_v6, %v3077_v10  ;;  %2401 = vmatmul.f32.gmra.mxu2 %v1999_v46  ;;  %2802 = vmatmul.f32.gmra.mxu3 %v1999_v46 }
 0x492   :  { %v3099_v15 = vmax.f32 %v3097_v9, %v3098_v13 }
 0x493   :  { %v3200_v19 = vadd.f32 %v4462_v12, %v3078_v14 }
 0x494   :  { %v3201_v20 = vadd.f32 %v4464_v16, %v3099_v15  ;;  %v1844_v21 = vpop.f32.mrf.mxu1  ;;  %v2354_v22 = vpop.f32.mrf.mxu2 }
 0x495   :  { %v3270_v23 = vrot.slane %v3200_v19, 3  ;;  %v1845_v24 = vadd.f32 %v4889_v52, %v1844_v21  ;;  %v3100_v25 = vmax.f32 %v2351_v5, %v2354_v22  ;;  %v2755_v27 = vpop.f32.mrf.mxu3 }
 0x496   :  { %v3287_v58 = vrot.slane %v3201_v20, 3  ;;  %v3121_v59 = vmax.f32 %v2752_v55, %v2755_v27 }
 0x497   :  { %v2000_v28 = vmax.f32 %v1845_v24, 0.0  ;;  %v4944_v29 = vsel %vm3271_vm7, %v3270_v23, %v4877_v36 }
 0x498   :  { %v4947_v30 = vsel %vm3271_vm7, %v3287_v58, %v4880_v38 }
 0x499   :  { %2404 = vmatmul.f32.gmra.mxu2 %v2000_v28  ;;  %2805 = vmatmul.f32.gmra.mxu3 %v2000_v28 }
 0x49c   :  { %v1847_v31 = vpop.f32.mrf.mxu1  ;;  %v2357_v32 = vpop.f32.mrf.mxu2 }
 0x49d   :  { %v1848_v33 = vadd.f32 %v4889_v52, %v1847_v31  ;;  %v3101_v34 = vmax.f32 %v3100_v25, %v2357_v32  ;;  %v2758_v39 = vpop.f32.mrf.mxu3 }
 0x49e   :  { %v3122_v40 = vmax.f32 %v3121_v59, %v2758_v39 }
 0x49f   :  { %v2001_v41 = vmax.f32 %v1848_v33, 0.0 }
 0x4a1   :  { %2407 = vmatmul.f32.gmra.mxu2 %v2001_v41  ;;  %2808 = vmatmul.f32.gmra.mxu3 %v2001_v41 }
 0x4a4   :  { %v1850_v8 = vpop.f32.mrf.mxu1  ;;  %v2360_v43 = vpop.f32.mrf.mxu2 }
 0x4a5   :  { %v1851_v36 = vadd.f32 %v4889_v52, %v1850_v8  ;;  %v3102_v44 = vmax.f32 %v3101_v34, %v2360_v43  ;;  %v2761_v60 = vpop.f32.mrf.mxu3 }
 0x4a6   :  { %v3123_v38 = vmax.f32 %v3122_v40, %v2761_v60 }
 0x4a7   :  { %v2002_v48 = vmax.f32 %v1851_v36, 0.0 }
 0x4a9   :  { %2410 = vmatmul.f32.gmra.mxu2 %v2002_v48  ;;  %2811 = vmatmul.f32.gmra.mxu3 %v2002_v48 }
 0x4ac   :  { %v1853_v49 = vpop.f32.mrf.mxu1  ;;  %v2363_v45 = vpop.f32.mrf.mxu2 }
 0x4ad   :  { %v1854_v17 = vadd.f32 %v4889_v52, %v1853_v49  ;;  %v3103_v18 = vmax.f32 %v3102_v44, %v2363_v45  ;;  %v2764_v50 = vpop.f32.mrf.mxu3 }
 0x4ae   :  { %v3124_v47 = vmax.f32 %v3123_v38, %v2764_v50 }
 0x4af   :  { %v2003_v51 = vmax.f32 %v1854_v17, 0.0 }
 0x4b1   :  { %2413 = vmatmul.f32.gmra.mxu2 %v2003_v51  ;;  %2814 = vmatmul.f32.gmra.mxu3 %v2003_v51 }
 0x4b4   :  { %v1856_v11 = vpop.f32.mrf.mxu1  ;;  %v2366_v53 = vpop.f32.mrf.mxu2 }
 0x4b5   :  { %v1857_v54 = vadd.f32 %v4889_v52, %v1856_v11  ;;  %v3104_v26 = vmax.f32 %v3103_v18, %v2366_v53  ;;  %v2767_v56 = vpop.f32.mrf.mxu3 }
 0x4b6   :  { %v3125_v57 = vmax.f32 %v3124_v47, %v2767_v56 }
 0x4b7   :  { %v2004_v61 = vmax.f32 %v1857_v54, 0.0 }
 0x4b9   :  { %2416 = vmatmul.f32.gmra.mxu2 %v2004_v61  ;;  %2817 = vmatmul.f32.gmra.mxu3 %v2004_v61  ;;  %v3223_v61 = vld [vmem:[%s5008_s7 + $0x88] sm:$0xff] }
 0x4ba   :  { %3329 = vmatpush.msrb.mxu1 %v3223_v61 }
 0x4bc   :  { %v1859_v63 = vpop.f32.mrf.mxu1  ;;  %v2369_v0 = vpop.f32.mrf.mxu2 }
 0x4bd   :  { %v1860_v1 = vadd.f32 %v4889_v52, %v1859_v63  ;;  %v3105_v2 = vmax.f32 %v3104_v26, %v2369_v0  ;;  %v2770_v3 = vpop.f32.mrf.mxu3 }
 0x4be   :  { %v3126_v4 = vmax.f32 %v3125_v57, %v2770_v3  ;;  %v3207_v57 = vld [vmem:[%s5008_s7 + $0x8] sm:$0xff] }
 0x4bf   :  { %v2005_v35 = vmax.f32 %v1860_v1, 0.0  ;;  %3309 = vmatpush.msrb.mxu0 %v3207_v57 }
 0x4c1   :  { %2419 = vmatmul.f32.gmra.mxu2 %v2005_v35  ;;  %2820 = vmatmul.f32.gmra.mxu3 %v2005_v35 }
 0x4c4   :  { %v1862_v37 = vpop.f32.mrf.mxu1  ;;  %v2372_v5 = vpop.f32.mrf.mxu2 }
 0x4c5   :  { %v1863_v6 = vadd.f32 %v4889_v52, %v1862_v37  ;;  %v3106_v7 = vmax.f32 %v3105_v2, %v2372_v5  ;;  %v2773_v55 = vpop.f32.mrf.mxu3 }
 0x4c6   :  { %v3127_v9 = vmax.f32 %v3126_v4, %v2773_v55 }
 0x4c7   :  { %v2006_v10 = vmax.f32 %v1863_v6, 0.0 }
 0x4c9   :  { %2422 = vmatmul.f32.gmra.mxu2 %v2006_v10  ;;  %2823 = vmatmul.f32.gmra.mxu3 %v2006_v10 }
 0x4cc   :  { %v1865_v46 = vpop.f32.mrf.mxu1  ;;  %v2375_v13 = vpop.f32.mrf.mxu2 }
 0x4cd   :  { %v1866_v14 = vadd.f32 %v4889_v52, %v1865_v46  ;;  %v3107_v15 = vmax.f32 %v3106_v7, %v2375_v13  ;;  %v2776_v19 = vpop.f32.mrf.mxu3 }
 0x4ce   :  { %v3128_v20 = vmax.f32 %v3127_v9, %v2776_v19 }
 0x4cf   :  { %v2007_v21 = vmax.f32 %v1866_v14, 0.0 }
 0x4d1   :  { %2425 = vmatmul.f32.gmra.mxu2 %v2007_v21  ;;  %2826 = vmatmul.f32.gmra.mxu3 %v2007_v21 }
 0x4d4   :  { %v1868_v22 = vpop.f32.mrf.mxu1  ;;  %v2378_v23 = vpop.f32.mrf.mxu2 }
 0x4d5   :  { %v1869_v24 = vadd.f32 %v4889_v52, %v1868_v22  ;;  %v3108_v25 = vmax.f32 %v3107_v15, %v2378_v23  ;;  %v2779_v27 = vpop.f32.mrf.mxu3 }
 0x4d6   :  { %v3129_v58 = vmax.f32 %v3128_v20, %v2779_v27 }
 0x4d7   :  { %v2008_v59 = vmax.f32 %v1869_v24, 0.0 }
 0x4d9   :  { %2428 = vmatmul.f32.gmra.mxu2 %v2008_v59  ;;  %2829 = vmatmul.f32.gmra.mxu3 %v2008_v59 }
 0x4dc   :  { %v1871_v28 = vpop.f32.mrf.mxu1  ;;  %v2381_v31 = vpop.f32.mrf.mxu2 }
 0x4dd   :  { %v1872_v32 = vadd.f32 %v4889_v52, %v1871_v28  ;;  %v3109_v33 = vmax.f32 %v3108_v25, %v2381_v31  ;;  %v2782_v34 = vpop.f32.mrf.mxu3 }
 0x4de   :  { %v3130_v39 = vmax.f32 %v3129_v58, %v2782_v34 }
 0x4df   :  { %v2009_v40 = vmax.f32 %v1872_v32, 0.0 }
 0x4e1   :  { %2431 = vmatmul.f32.gmra.mxu2 %v2009_v40  ;;  %2832 = vmatmul.f32.gmra.mxu3 %v2009_v40 }
 0x4e4   :  { %v1874_v41 = vpop.f32.mrf.mxu1  ;;  %v2384_v8 = vpop.f32.mrf.mxu2 }
 0x4e5   :  { %v1875_v43 = vadd.f32 %v4889_v52, %v1874_v41  ;;  %v3110_v36 = vmax.f32 %v3109_v33, %v2384_v8  ;;  %v2785_v44 = vpop.f32.mrf.mxu3 }
 0x4e6   :  { %v3131_v60 = vmax.f32 %v3130_v39, %v2785_v44 }
 0x4e7   :  { %v2010_v38 = vmax.f32 %v1875_v43, 0.0 }
 0x4e9   :  { %2434 = vmatmul.f32.gmra.mxu2 %v2010_v38  ;;  %2835 = vmatmul.f32.gmra.mxu3 %v2010_v38 }
 0x4ec   :  { %v1877_v48 = vpop.f32.mrf.mxu1  ;;  %v2387_v49 = vpop.f32.mrf.mxu2 }
 0x4ed   :  { %v1878_v45 = vadd.f32 %v4889_v52, %v1877_v48  ;;  %v3111_v17 = vmax.f32 %v3110_v36, %v2387_v49  ;;  %v2788_v18 = vpop.f32.mrf.mxu3 }
 0x4ee   :  { %v3132_v50 = vmax.f32 %v3131_v60, %v2788_v18 }
 0x4ef   :  { %v2011_v47 = vmax.f32 %v1878_v45, 0.0 }
 0x4f1   :  { %2437 = vmatmul.f32.gmra.mxu2 %v2011_v47  ;;  %2838 = vmatmul.f32.gmra.mxu3 %v2011_v47 }
 0x4f4   :  { %v1880_v51 = vpop.f32.mrf.mxu1  ;;  %v2390_v11 = vpop.f32.mrf.mxu2 }
 0x4f5   :  { %v1881_v53 = vadd.f32 %v4889_v52, %v1880_v51  ;;  %v3112_v54 = vmax.f32 %v3111_v17, %v2390_v11  ;;  %v2791_v26 = vpop.f32.mrf.mxu3 }
 0x4f6   :  { %v3133_v56 = vmax.f32 %v3132_v50, %v2791_v26 }
 0x4f7   :  { %v2012_v62 = vmax.f32 %v1881_v53, 0.0 }
 0x4f9   :  { %2440 = vmatmul.f32.gmra.mxu2 %v2012_v62  ;;  %2841 = vmatmul.f32.gmra.mxu3 %v2012_v62 }
 0x4fc   :  { %v1883_v42 = vpop.f32.mrf.mxu1  ;;  %v2393_v63 = vpop.f32.mrf.mxu2 }
 0x4fd   :  { %v1884_v0 = vadd.f32 %v4889_v52, %v1883_v42  ;;  %v3113_v1 = vmax.f32 %v3112_v54, %v2393_v63  ;;  %v2794_v2 = vpop.f32.mrf.mxu3 }
 0x4fe   :  { %v3134_v3 = vmax.f32 %v3133_v56, %v2794_v2 }
 0x4ff   :  { %v2013_v4 = vmax.f32 %v1884_v0, 0.0 }
 0x501   :  { %2443 = vmatmul.f32.gmra.mxu2 %v2013_v4  ;;  %2844 = vmatmul.f32.gmra.mxu3 %v2013_v4 }
 0x504   :  { %v2396_v35 = vpop.f32.mrf.mxu2 }
 0x505   :  { %v3114_v37 = vmax.f32 %v3113_v1, %v2396_v35  ;;  %v2797_v5 = vpop.f32.mrf.mxu3 }
 0x506   :  { %v3135_v6 = vmax.f32 %v3134_v3, %v2797_v5 }
 0x507   :  { %v3115_v7 = vrot.slane %v3114_v37, 4 }
 0x508   :  { %v3136_v55 = vrot.slane %v3135_v6, 4 }
 0x509   :  { %v3116_v9 = vmax.f32 %v3114_v37, %v3115_v7 }
 0x50a   :  { %v3137_v10 = vmax.f32 %v3135_v6, %v3136_v55 }
 0x50b   :  { %v3117_v46 = vrot.slane %v3116_v9, 2 }
 0x50c   :  { %v3138_v13 = vrot.slane %v3137_v10, 2  ;;  %v2399_v14 = vpop.f32.mrf.mxu2 }
 0x50d   :  { %v3118_v15 = vmax.f32 %v3116_v9, %v3117_v46  ;;  %v2800_v19 = vpop.f32.mrf.mxu3 }
 0x50e   :  { %v3139_v52 = vmax.f32 %v3137_v10, %v3138_v13 }
 0x50f   :  { %v3119_v20 = vrot.slane %v3118_v15, 1 }
 0x510   :  { %v3140_v21 = vrot.slane %v3139_v52, 1 }
 0x511   :  { %v3120_v22 = vmax.f32 %v3118_v15, %v3119_v20 }
 0x512   :  { %v3141_v23 = vmax.f32 %v3139_v52, %v3140_v21 }
 0x513   :  { %v3202_v24 = vadd.f32 %v4462_v12, %v3120_v22 }
 0x514   :  { %v3203_v25 = vadd.f32 %v4464_v16, %v3141_v23  ;;  %v2402_v27 = vpop.f32.mrf.mxu2 }
 0x515   :  { %v3273_v58 = vrot.slane %v3202_v24, 2  ;;  %v3142_v59 = vmax.f32 %v2399_v14, %v2402_v27  ;;  %v2803_v28 = vpop.f32.mrf.mxu3 }
 0x516   :  { %v3289_v31 = vrot.slane %v3203_v25, 2  ;;  %v3163_v32 = vmax.f32 %v2800_v19, %v2803_v28 }
 0x517   :  { %v4977_v33 = vsel %vm3274_vm8, %v3273_v58, %v4944_v29  ;;  %v3206_v29 = vld [vmem:[%s5008_s7] sm:$0xff] }
 0x518   :  { %v4980_v34 = vsel %vm3274_vm8, %v3289_v31, %v4947_v30  ;;  %v3222_v30 = vld [vmem:[%s5008_s7 + $0x80] sm:$0xff]  ;;  %3310 = vmatpush.msrb.mxu0 %v3206_v29 }
 0x519   :  { %3330 = vmatpush.msrb.mxu1 %v3222_v30 }
 0x51c   :  { %v2405_v39 = vpop.f32.mrf.mxu2 }
 0x51d   :  { %v3143_v40 = vmax.f32 %v3142_v59, %v2405_v39  ;;  %v2806_v41 = vpop.f32.mrf.mxu3 }
 0x51e   :  { %v3164_v8 = vmax.f32 %v3163_v32, %v2806_v41 }
 0x524   :  { %v2408_v43 = vpop.f32.mrf.mxu2 }
 0x525   :  { %v3144_v36 = vmax.f32 %v3143_v40, %v2408_v43  ;;  %v2809_v44 = vpop.f32.mrf.mxu3 }
 0x526   :  { %v3165_v60 = vmax.f32 %v3164_v8, %v2809_v44 }
 0x52c   :  { %v2411_v38 = vpop.f32.mrf.mxu2 }
 0x52d   :  { %v3145_v48 = vmax.f32 %v3144_v36, %v2411_v38  ;;  %v2812_v49 = vpop.f32.mrf.mxu3 }
 0x52e   :  { %v3166_v45 = vmax.f32 %v3165_v60, %v2812_v49 }
 0x534   :  { %v2414_v17 = vpop.f32.mrf.mxu2 }
 0x535   :  { %v2815_v18 = vpop.f32.mrf.mxu3  ;;  %v3146_v1 = vmax.f32 %v3145_v48, %v2414_v17 }
 0x536   :  { %v3167_v2 = vmax.f32 %v3166_v45, %v2815_v18 }
 0x53c   :  { %v2417_v50 = vpop.f32.mrf.mxu2 }
 0x53d   :  { %v2818_v47 = vpop.f32.mrf.mxu3  ;;  %v3147_v3 = vmax.f32 %v3146_v1, %v2417_v50  ;;  %v3647_v50 = vld [vmem:[%s5009_s8] ss:$0 sm:$0xff]  ;;  %s3709_s8 = smov [#allocation2]  }
 0x53e   :  { %v3168_v4 = vmax.f32 %v3167_v2, %v2818_v47  ;;  %s3359_s3 = sshll.u32 %s3709_s8, 4  ;;  %s3360_s3 = int_to_ptr.vmem [resolvable:$true] %s3359_s3 }
 0x544   :  { %v2420_v51 = vpop.f32.mrf.mxu2 }
 0x545   :  { %v2821_v11 = vpop.f32.mrf.mxu3  ;;  %v3148_v37 = vmax.f32 %v3147_v3, %v2420_v51 }
 0x546   :  { %v3169_v6 = vmax.f32 %v3168_v4, %v2821_v11 }
 0x54c   :  { %v2423_v53 = vpop.f32.mrf.mxu2 }
 0x54d   :  { %v2824_v54 = vpop.f32.mrf.mxu3  ;;  %v3149_v7 = vmax.f32 %v3148_v37, %v2423_v53 }
 0x54e   :  { %v3170_v55 = vmax.f32 %v3169_v6, %v2824_v54 }
 0x554   :  { %v2426_v26 = vpop.f32.mrf.mxu2 }
 0x555   :  { %v2827_v56 = vpop.f32.mrf.mxu3  ;;  %v3150_v9 = vmax.f32 %v3149_v7, %v2426_v26 }
 0x556   :  { %v3171_v10 = vmax.f32 %v3170_v55, %v2827_v56 }
 0x55c   :  { %v2429_v57 = vpop.f32.mrf.mxu2 }
 0x55d   :  { %v2830_v61 = vpop.f32.mrf.mxu3  ;;  %v3151_v46 = vmax.f32 %v3150_v9, %v2429_v57 }
 0x55e   :  { %v3172_v13 = vmax.f32 %v3171_v10, %v2830_v61 }
 0x564   :  { %v2432_v62 = vpop.f32.mrf.mxu2 }
 0x565   :  { %v2833_v42 = vpop.f32.mrf.mxu3  ;;  %v3152_v15 = vmax.f32 %v3151_v46, %v2432_v62 }
 0x566   :  { %v3173_v52 = vmax.f32 %v3172_v13, %v2833_v42 }
 0x56c   :  { %v2435_v63 = vpop.f32.mrf.mxu2 }
 0x56d   :  { %v2836_v0 = vpop.f32.mrf.mxu3  ;;  %v3153_v20 = vmax.f32 %v3152_v15, %v2435_v63 }
 0x56e   :  { %v3174_v21 = vmax.f32 %v3173_v52, %v2836_v0 }
 0x574   :  { %v2438_v35 = vpop.f32.mrf.mxu2 }
 0x575   :  { %v2839_v5 = vpop.f32.mrf.mxu3  ;;  %v3154_v22 = vmax.f32 %v3153_v20, %v2438_v35 }
 0x576   :  { %v3175_v23 = vmax.f32 %v3174_v21, %v2839_v5 }
 0x57c   :  { %v2441_v14 = vpop.f32.mrf.mxu2 }
 0x57d   :  { %v2842_v19 = vpop.f32.mrf.mxu3  ;;  %v3155_v24 = vmax.f32 %v3154_v22, %v2441_v14 }
 0x57e   :  { %v3176_v25 = vmax.f32 %v3175_v23, %v2842_v19 }
 0x584   :  { %v2444_v27 = vpop.f32.mrf.mxu2 }
 0x585   :  { %v3156_v58 = vmax.f32 %v3155_v24, %v2444_v27  ;;  %v2845_v59 = vpop.f32.mrf.mxu3 }
 0x586   :  { %v3177_v28 = vmax.f32 %v3176_v25, %v2845_v59 }
 0x587   :  { %v3157_v31 = vrot.slane %v3156_v58, 4 }
 0x588   :  { %v3178_v32 = vrot.slane %v3177_v28, 4 }
 0x589   :  { %v3158_v39 = vmax.f32 %v3156_v58, %v3157_v31 }
 0x58a   :  { %v3179_v40 = vmax.f32 %v3177_v28, %v3178_v32 }
 0x58b   :  { %v3159_v41 = vrot.slane %v3158_v39, 2 }
 0x58c   :  { %v3180_v8 = vrot.slane %v3179_v40, 2 }
 0x58d   :  { %v3160_v43 = vmax.f32 %v3158_v39, %v3159_v41 }
 0x58e   :  { %v3181_v36 = vmax.f32 %v3179_v40, %v3180_v8 }
 0x58f   :  { %v3161_v44 = vrot.slane %v3160_v43, 1 }
 0x590   :  { %v3182_v60 = vrot.slane %v3181_v36, 1 }
 0x591   :  { %v3162_v38 = vmax.f32 %v3160_v43, %v3161_v44 }
 0x592   :  { %v3183_v48 = vmax.f32 %v3181_v36, %v3182_v60 }
 0x593   :  { %v3204_v49 = vadd.f32 %v4462_v12, %v3162_v38 }
 0x594   :  { %v3205_v45 = vadd.f32 %v4464_v16, %v3183_v48 }
 0x595   :  { %v3276_v17 = vrot.slane %v3204_v49, 1 }
 0x596   :  { %v3291_v18 = vrot.slane %v3205_v45, 1 }
 0x597   :  { %v3278_v29 = vsel %vm3277_vm9, %v3276_v17, %v4977_v33 }
 0x598   :  { %3311 = vmatmul.f32.vlgmr.msrb.gmra.mxu0 %v3278_v29  ;;  %3352 = vst [vmem:[#allocation4] sm:$0xff] %v3278_v29  ;;  %v3292_v30 = vsel %vm3277_vm9, %v3291_v18, %v4980_v34 }
 0x599   :  { %3331 = vmatmul.f32.vlgmr.msrb.gmra.mxu1 %v3292_v30  ;;  %3353 = vst [vmem:[#allocation4 + $0x8] sm:$0xff] %v3292_v30 }
 0x59a   :  { %3375 = dma.vmem_to_hbm [thread:$0]  %s3371_s21, 256, %s3373_s0, [#allocation5]  }
 0x615   :  { %v3312_v47 = vpop.f32.mrf.mxu0 }
 0x616   :  { %v3313_v51 = vadd.f32 %v3647_v50, %v3312_v47  ;;  %v3332_v12 = vpop.f32.mrf.mxu1 }
 0x618   :  { %v3333_v11 = vadd.f32 %v3332_v12, %v3313_v51 }
 0x61a   :  { %v3335_v53 = vmax.f32 %v3333_v11, 0.0 }
 0x61c   :  { %v3336_v16 = vmul.f32 %v3335_v53, %v3335_v53 }
 0x61e   :  { %3337 = vadd.xlane.f32.xlu0 %v3336_v16 }
 0x691   :  { %v3338_v33 = vpop.xlane.xlu0 %3337 }
 0x692   :  { %v3339_v34 = vmax.f32 %v3338_v33, 1e-24 }
 0x694   :  { %3648 = vrsqrt.f32 %v3339_v34  ;;  %vm3346_vm11 = vweird.f32 %v3339_v34 }
 0x69a   :  { %v3649_v54 = vpop.eup %3648 }
 0x69b   :  { %v3341_v26 = vmul.f32 %v3649_v54, %v3339_v34  ;;  %vm3347_vm10 = vweird.f32 %v3649_v54 }
 0x69c   :  { %vm3348_vm12 = vmor %vm3346_vm11, %vm3347_vm10 }
 0x69d   :  { %v3342_v56 = vmul.f32 %v3649_v54, %v3341_v26 }
 0x69f   :  { %v3343_v57 = vmul.f32 0.5, %v3342_v56 }
 0x6a1   :  { %v3344_v61 = vsub.f32 1.5, %v3343_v57 }
 0x6a3   :  { %v3345_v62 = vmul.f32 %v3649_v54, %v3344_v61 }
 0x6a5   :  { %v3349_v42 = vsel %vm3348_vm12, %v3649_v54, %v3345_v62 }
 0x6a6   :  { %v3350_v63 = vmul.f32 %v3349_v42, %v3335_v53 }
 0x6a8   :  { %3351 = vst [vmem:[#allocation2] sm:$0xff] %v3350_v63 }
 0x6a9   :  { %3364 = dma.vmem_to_hbm [thread:$0]  %s3360_s3, 128, %s3362_s10, [#allocation3]  }
 0x6aa   :  { %3704 = dma.done.wait [#allocation3], 128  }
 0x6ab   :  { %3705 = vsyncadd [#allocation3], 4294967168 }
 0x6ac   :  { %3706 = dma.done.wait [#allocation5], 256  }
 0x6ad   :  { %3707 = vsyncadd [#allocation5], 4294967040 }
 0x6ae   :  { %3384 = vsyncpa [#allocation3], 1 }
 0x6af   :  { %3385 = vsyncpa [#allocation5], 1 }

</bundles_post_ra>
